<compile_context>
chip_gen: v5e
topology: v5e:2x2
jax: 0.10.0
libtpu: 0.0.40
codegen_flags: <defaults>
</compile_context>

<pallas_src>
import numpy as np

import jax
import jax.numpy as jnp
from jax.experimental import pallas as pl
from jax.experimental.pallas import tpu as pltpu


# ---------------------------------------------------------------------------
# The fused Pallas kernel
# ---------------------------------------------------------------------------
def _lenet_fused_kernel(a0_ref, s1_ref, t1_ref, b1_ref,
                        s2_ref, t2_ref, b2_ref,
                        s3_ref, f1_ref, bf1_ref,
                        w2_ref, bf2_ref, w3_ref, bf3_ref,
                        out_ref):
    f32 = jnp.float32

    def block_matmul(s_ref, x, t_ref, bias_ref):
        # sum_k (S_k @ x) @ T_k + bias  -- all 2-D MXU matmuls, f32 accumulate.
        acc = jnp.zeros((s_ref.shape[1], t_ref.shape[2]), f32)
        for k in range(s_ref.shape[0]):
            lhs = jnp.dot(s_ref[k], x, preferred_element_type=f32)
            acc = acc + jnp.dot(lhs, t_ref[k], preferred_element_type=f32)
        return acc + bias_ref[...]

    def pool(y):
        # Parity-split layout: 2x2 max pool == max of 4 vreg-aligned quadrants.
        rb = y.shape[0] // 2
        lb = y.shape[1] // 2
        return jnp.maximum(
            jnp.maximum(y[0:rb, 0:lb], y[0:rb, lb:2 * lb]),
            jnp.maximum(y[rb:2 * rb, 0:lb], y[rb:2 * rb, lb:2 * lb]))

    def relu(v):
        return jnp.maximum(v, 0.0)

    a0 = a0_ref[...]                                                   # [B*H, 128]
    p1 = pool(relu(block_matmul(s1_ref, a0, t1_ref, b1_ref)))          # [32, 128]
    p2 = pool(relu(block_matmul(s2_ref, p1, t2_ref, b2_ref)))          # [16, 128]
    h1 = relu(block_matmul(s3_ref, p2, f1_ref, bf1_ref))               # [8, 128]
    h2 = relu(jnp.dot(h1, w2_ref[...], preferred_element_type=f32) + bf2_ref[...])
    logits = jnp.dot(h2, w3_ref[...], preferred_element_type=f32) + bf3_ref[...]
    out_ref[...] = logits[0:out_ref.shape[0], 0:out_ref.shape[1]]


# ---------------------------------------------------------------------------
# One-time host-side packing of the PyTorch-style parameters
# ---------------------------------------------------------------------------
def pack_lenet_params(params, batch_size, image_hw):
    """Build the MXU-friendly operands (selection + Toeplitz + padded FC mats).

    Done ONCE, outside the jitted forward.  Everything is f32 and padded so
    that every in-kernel matmul is 128/256 lanes wide.
    """
    B, H, K = batch_size, image_hw, 5
    OC1, OC2, NF1, NF2, NF3 = 6, 16, 120, 84, 10

    w1 = np.asarray(params["conv1_w"], np.float32)   # [6, C, 5, 5]
    b1 = np.asarray(params["conv1_b"], np.float32)
    w2 = np.asarray(params["conv2_w"], np.float32)   # [16, 6, 5, 5]
    b2 = np.asarray(params["conv2_b"], np.float32)
    wf1 = np.asarray(params["fc1_w"], np.float32)    # [120, 16*PH2*PH2]
    bf1 = np.asarray(params["fc1_b"], np.float32)
    wf2 = np.asarray(params["fc2_w"], np.float32)    # [84, 120]
    bf2 = np.asarray(params["fc2_b"], np.float32)
    wf3 = np.asarray(params["fc3_w"], np.float32)    # [10, 84]
    bf3 = np.asarray(params["fc3_b"], np.float32)

    C = w1.shape[1]
    OH1 = H - K + 1
    PH1 = OH1 // 2
    OH2 = PH1 - K + 1
    PH2 = OH2 // 2
    assert wf1.shape[1] == OC2 * PH2 * PH2, "fc1 size inconsistent with image_hw"

    RB1, RB2, RB3, LANE = 32, 16, 8, 128
    assert C * H <= LANE and B * PH1 <= RB1 and OC1 * PH1 <= LANE
    assert B * PH2 <= RB2 and OC2 * PH2 <= LANE and B <= RB3

    # ---- conv1: S1 picks the kh-shifted input rows (parity-split output rows);
    #             T1 is the banded weight matrix (kw shift + channels,
    #             parity-split output lanes). ----
    s1 = np.zeros((K, 2 * RB1, B * H), np.float32)
    t1 = np.zeros((K, LANE, 2 * LANE), np.float32)
    b1r = np.zeros((1, 2 * LANE), np.float32)
    for p in range(2):
        for b in range(B):
            for ph in range(PH1):
                for kh in range(K):
                    s1[kh, p * RB1 + b * PH1 + ph, b * H + 2 * ph + p + kh] = 1.0
    for q in range(2):
        for oc in range(OC1):
            for pw in range(PH1):
                col = q * LANE + oc * PH1 + pw
                b1r[0, col] = b1[oc]
                for kh in range(K):
                    for kw in range(K):
                        w = 2 * pw + q + kw
                        for c in range(C):
                            t1[kh, c * H + w, col] = w1[oc, c, kh, kw]

    # ---- conv2 (same scheme, input is the pooled [b*PH1+row, c*PH1+col] map) ----
    s2 = np.zeros((K, 2 * RB2, RB1), np.float32)
    t2 = np.zeros((K, LANE, 2 * LANE), np.float32)
    b2r = np.zeros((1, 2 * LANE), np.float32)
    for p in range(2):
        for b in range(B):
            for ph in range(PH2):
                for kh in range(K):
                    s2[kh, p * RB2 + b * PH2 + ph, b * PH1 + 2 * ph + p + kh] = 1.0
    for q in range(2):
        for oc in range(OC2):
            for pw in range(PH2):
                col = q * LANE + oc * PH2 + pw
                b2r[0, col] = b2[oc]
                for kh in range(K):
                    for kw in range(K):
                        j = 2 * pw + q + kw
                        for c in range(OC1):
                            t2[kh, c * PH1 + j, col] = w2[oc, c, kh, kw]

    # ---- fc1: sum over the PH2 pooled rows; torch flatten order is (c, i, j) ----
    s3 = np.zeros((PH2, RB3, RB2), np.float32)
    f1 = np.zeros((PH2, LANE, LANE), np.float32)
    bf1r = np.zeros((1, LANE), np.float32)
    bf1r[0, :NF1] = bf1
    for i in range(PH2):
        for b in range(B):
            s3[i, b, b * PH2 + i] = 1.0
        for c in range(OC2):
            for j in range(PH2):
                f1[i, c * PH2 + j, :NF1] = wf1[:, c * PH2 * PH2 + i * PH2 + j]

    # ---- fc2 / fc3: pre-transposed, zero-padded to 128x128 ----
    w2p = np.zeros((LANE, LANE), np.float32)
    w2p[:NF1, :NF2] = wf2.T
    bf2r = np.zeros((1, LANE), np.float32)
    bf2r[0, :NF2] = bf2
    w3p = np.zeros((LANE, LANE), np.float32)
    w3p[:NF2, :NF3] = wf3.T
    bf3r = np.zeros((1, LANE), np.float32)
    bf3r[0, :NF3] = bf3

    pack = dict(s1=s1, t1=t1, b1=b1r, s2=s2, t2=t2, b2=b2r,
                s3=s3, f1=f1, bf1=bf1r, w2=w2p, bf2=bf2r, w3=w3p, bf3=bf3r)
    return {k: jnp.asarray(v) for k, v in pack.items()}


# ---------------------------------------------------------------------------
# Forward pass (single pallas_call)
# ---------------------------------------------------------------------------
def lenet_forward(x, pack):
    """x: NCHW float32 -> [B, 10] logits (matches the PyTorch LeNet forward)."""
    B, C, H, W = x.shape
    assert C * W <= 128
    # Only per-input layout glue: NCHW -> rows (b, h), lanes (c, w), pad to 128.
    a0 = jnp.transpose(x, (0, 2, 1, 3)).reshape(B * H, C * W)
    a0 = jnp.pad(a0, ((0, 0), (0, 128 - C * W))).astype(jnp.float32)

    operands = (a0, pack["s1"], pack["t1"], pack["b1"],
                pack["s2"], pack["t2"], pack["b2"],
                pack["s3"], pack["f1"], pack["bf1"],
                pack["w2"], pack["bf2"], pack["w3"], pack["bf3"])
    vmem = pl.BlockSpec(memory_space=pltpu.MemorySpace.VMEM)
    return pl.pallas_call(
        _lenet_fused_kernel,
        out_shape=jax.ShapeDtypeStruct((B, 10), jnp.float32),
        in_specs=[vmem] * len(operands),
        out_specs=vmem,
    )(*operands)


# ---------------------------------------------------------------------------
# Pure-JAX reference (plain XLA, no Pallas) -- used only as a numerical check
# ---------------------------------------------------------------------------
def lenet_reference(x, params):
    hi = jax.lax.Precision.HIGHEST

    def conv(v, w, b):
        OC, C, K, _ = w.shape
        Bn, _, H, W = v.shape
        OH, OW = H - K + 1, W - K + 1
        out = jnp.zeros((Bn, OC, OH, OW), jnp.float32) + b[None, :, None, None]
        for kh in range(K):
            for kw in range(K):
                patch = v[:, :, kh:kh + OH, kw:kw + OW]
                out = out + jnp.einsum("bchw,oc->bohw", patch, w[:, :, kh, kw],
                                       precision=hi)
        return out

    def pool(v):
        return jnp.maximum(
            jnp.maximum(v[:, :, 0::2, 0::2], v[:, :, 0::2, 1::2]),
            jnp.maximum(v[:, :, 1::2, 0::2], v[:, :, 1::2, 1::2]))

    out = pool(jax.nn.relu(conv(x, params["conv1_w"], params["conv1_b"])))
    out = pool(jax.nn.relu(conv(out, params["conv2_w"], params["conv2_b"])))
    out = out.reshape(out.shape[0], -1)
    out = jax.nn.relu(jnp.dot(out, params["fc1_w"].T, precision=hi) + params["fc1_b"])
    out = jax.nn.relu(jnp.dot(out, params["fc2_w"].T, precision=hi) + params["fc2_b"])
    return jnp.dot(out, params["fc3_w"].T, precision=hi) + params["fc3_b"]


# ---------------------------------------------------------------------------
# Parameter init (mimics torch defaults: U(-1/sqrt(fan_in), +1/sqrt(fan_in)))
# ---------------------------------------------------------------------------
def init_params(key, dataset="cifar"):
    in_ch = 1 if dataset == "mnist" else 3
    fc1_in = 16 * 4 * 4 if dataset == "mnist" else 16 * 5 * 5

    def uni(k, shape, fan_in):
        bound = 1.0 / (fan_in ** 0.5)
        return jax.random.uniform(k, shape, jnp.float32, -bound, bound)

    ks = jax.random.split(key, 10)
    return {
        "conv1_w": uni(ks[0], (6, in_ch, 5, 5), in_ch * 25),
        "conv1_b": uni(ks[1], (6,), in_ch * 25),
        "conv2_w": uni(ks[2], (16, 6, 5, 5), 6 * 25),
        "conv2_b": uni(ks[3], (16,), 6 * 25),
        "fc1_w": uni(ks[4], (120, fc1_in), fc1_in),
        "fc1_b": uni(ks[5], (120,), fc1_in),
        "fc2_w": uni(ks[6], (84, 120), 120),
        "fc2_b": uni(ks[7], (84,), 120),
        "fc3_w": uni(ks[8], (10, 84), 84),
        "fc3_b": uni(ks[9], (10,), 84),
    }


if __name__ == "__main__":
    key = jax.random.PRNGKey(0)
    k_param, k_x = jax.random.split(key)

    # CIFAR-style LeNet: input [B=2, C=3, H=32, W=32] (fc1 expects 16*5*5=400).
    params = init_params(k_param, dataset="cifar")
    x = jax.random.normal(k_x, (2, 3, 32, 32), dtype=jnp.float32)

    # One-time weight packing (outside jit), then a single fused Pallas call.
    pack = pack_lenet_params(params, batch_size=x.shape[0], image_hw=x.shape[2])
    fwd = jax.jit(lenet_forward)
    logits = fwd(x, pack)
    jax.block_until_ready(logits)

    assert logits.shape == (2, 10), logits.shape
    assert logits.dtype == jnp.float32

    ref = lenet_reference(x, params)
    err = float(jnp.max(jnp.abs(logits - ref)))
    assert err < 5e-2, f"mismatch vs reference: max abs err = {err}"
    print("KERNEL_OK")
</pallas_src>

<mosaic_0001>
module attributes {stable_mosaic.version = 11 : i64} {
  func.func @_lenet_fused_kernel(%arg0: memref<64x128xf32, #tpu.memory_space<vmem>>, %arg1: memref<5x64x64xf32, #tpu.memory_space<vmem>>, %arg2: memref<5x128x256xf32, #tpu.memory_space<vmem>>, %arg3: memref<1x256xf32, #tpu.memory_space<vmem>>, %arg4: memref<5x32x32xf32, #tpu.memory_space<vmem>>, %arg5: memref<5x128x256xf32, #tpu.memory_space<vmem>>, %arg6: memref<1x256xf32, #tpu.memory_space<vmem>>, %arg7: memref<5x8x16xf32, #tpu.memory_space<vmem>>, %arg8: memref<5x128x128xf32, #tpu.memory_space<vmem>>, %arg9: memref<1x128xf32, #tpu.memory_space<vmem>>, %arg10: memref<128x128xf32, #tpu.memory_space<vmem>>, %arg11: memref<1x128xf32, #tpu.memory_space<vmem>>, %arg12: memref<128x128xf32, #tpu.memory_space<vmem>>, %arg13: memref<1x128xf32, #tpu.memory_space<vmem>>, %arg14: memref<2x10xf32, #tpu.memory_space<vmem>>) attributes {dimension_semantics = [], scalar_prefetch = 0 : i64, scratch_operands = 0 : i64, tpu.core_type = #tpu.core_type<tc>} {
    %c0 = arith.constant 0 : index
    %c0_0 = arith.constant 0 : index
    %0 = vector.load %arg0[%c0, %c0_0] : memref<64x128xf32, #tpu.memory_space<vmem>>, vector<64x128xf32>
    %cst = arith.constant 0.000000e+00 : f32
    %1 = vector.broadcast %cst : f32 to vector<64x256xf32>
    %c0_1 = arith.constant 0 : index
    %c0_2 = arith.constant 0 : index
    %c0_3 = arith.constant 0 : index
    %2 = vector.load %arg1[%c0_1, %c0_2, %c0_3] : memref<5x64x64xf32, #tpu.memory_space<vmem>>, vector<1x64x64xf32>
    %3 = vector.shape_cast %2 : vector<1x64x64xf32> to vector<64x64xf32>
    %cst_4 = arith.constant dense<0.000000e+00> : vector<64x128xf32>
    %4 = tpu.matmul %3, %0, %cst_4 {dimension_numbers = #tpu.dot_dimension_numbers<[1], [0], [0], [1], [0, 0, 1, 1], [], []>} : vector<64x64xf32>, vector<64x128xf32>, vector<64x128xf32> -> vector<64x128xf32>
    %c0_5 = arith.constant 0 : index
    %c0_6 = arith.constant 0 : index
    %c0_7 = arith.constant 0 : index
    %5 = vector.load %arg2[%c0_5, %c0_6, %c0_7] : memref<5x128x256xf32, #tpu.memory_space<vmem>>, vector<1x128x256xf32>
    %6 = vector.shape_cast %5 : vector<1x128x256xf32> to vector<128x256xf32>
    %cst_8 = arith.constant dense<0.000000e+00> : vector<64x256xf32>
    %7 = tpu.matmul %4, %6, %cst_8 {dimension_numbers = #tpu.dot_dimension_numbers<[1], [0], [0], [1], [0, 0, 1, 1], [], []>} : vector<64x128xf32>, vector<128x256xf32>, vector<64x256xf32> -> vector<64x256xf32>
    %8 = arith.addf %1, %7 : vector<64x256xf32>
    %c1 = arith.constant 1 : index
    %c0_9 = arith.constant 0 : index
    %c0_10 = arith.constant 0 : index
    %9 = vector.load %arg1[%c1, %c0_9, %c0_10] : memref<5x64x64xf32, #tpu.memory_space<vmem>>, vector<1x64x64xf32>
    %10 = vector.shape_cast %9 : vector<1x64x64xf32> to vector<64x64xf32>
    %cst_11 = arith.constant dense<0.000000e+00> : vector<64x128xf32>
    %11 = tpu.matmul %10, %0, %cst_11 {dimension_numbers = #tpu.dot_dimension_numbers<[1], [0], [0], [1], [0, 0, 1, 1], [], []>} : vector<64x64xf32>, vector<64x128xf32>, vector<64x128xf32> -> vector<64x128xf32>
    %c1_12 = arith.constant 1 : index
    %c0_13 = arith.constant 0 : index
    %c0_14 = arith.constant 0 : index
    %12 = vector.load %arg2[%c1_12, %c0_13, %c0_14] : memref<5x128x256xf32, #tpu.memory_space<vmem>>, vector<1x128x256xf32>
    %13 = vector.shape_cast %12 : vector<1x128x256xf32> to vector<128x256xf32>
    %cst_15 = arith.constant dense<0.000000e+00> : vector<64x256xf32>
    %14 = tpu.matmul %11, %13, %cst_15 {dimension_numbers = #tpu.dot_dimension_numbers<[1], [0], [0], [1], [0, 0, 1, 1], [], []>} : vector<64x128xf32>, vector<128x256xf32>, vector<64x256xf32> -> vector<64x256xf32>
    %15 = arith.addf %8, %14 : vector<64x256xf32>
    %c2 = arith.constant 2 : index
    %c0_16 = arith.constant 0 : index
    %c0_17 = arith.constant 0 : index
    %16 = vector.load %arg1[%c2, %c0_16, %c0_17] : memref<5x64x64xf32, #tpu.memory_space<vmem>>, vector<1x64x64xf32>
    %17 = vector.shape_cast %16 : vector<1x64x64xf32> to vector<64x64xf32>
    %cst_18 = arith.constant dense<0.000000e+00> : vector<64x128xf32>
    %18 = tpu.matmul %17, %0, %cst_18 {dimension_numbers = #tpu.dot_dimension_numbers<[1], [0], [0], [1], [0, 0, 1, 1], [], []>} : vector<64x64xf32>, vector<64x128xf32>, vector<64x128xf32> -> vector<64x128xf32>
    %c2_19 = arith.constant 2 : index
    %c0_20 = arith.constant 0 : index
    %c0_21 = arith.constant 0 : index
    %19 = vector.load %arg2[%c2_19, %c0_20, %c0_21] : memref<5x128x256xf32, #tpu.memory_space<vmem>>, vector<1x128x256xf32>
    %20 = vector.shape_cast %19 : vector<1x128x256xf32> to vector<128x256xf32>
    %cst_22 = arith.constant dense<0.000000e+00> : vector<64x256xf32>
    %21 = tpu.matmul %18, %20, %cst_22 {dimension_numbers = #tpu.dot_dimension_numbers<[1], [0], [0], [1], [0, 0, 1, 1], [], []>} : vector<64x128xf32>, vector<128x256xf32>, vector<64x256xf32> -> vector<64x256xf32>
    %22 = arith.addf %15, %21 : vector<64x256xf32>
    %c3 = arith.constant 3 : index
    %c0_23 = arith.constant 0 : index
    %c0_24 = arith.constant 0 : index
    %23 = vector.load %arg1[%c3, %c0_23, %c0_24] : memref<5x64x64xf32, #tpu.memory_space<vmem>>, vector<1x64x64xf32>
    %24 = vector.shape_cast %23 : vector<1x64x64xf32> to vector<64x64xf32>
    %cst_25 = arith.constant dense<0.000000e+00> : vector<64x128xf32>
    %25 = tpu.matmul %24, %0, %cst_25 {dimension_numbers = #tpu.dot_dimension_numbers<[1], [0], [0], [1], [0, 0, 1, 1], [], []>} : vector<64x64xf32>, vector<64x128xf32>, vector<64x128xf32> -> vector<64x128xf32>
    %c3_26 = arith.constant 3 : index
    %c0_27 = arith.constant 0 : index
    %c0_28 = arith.constant 0 : index
    %26 = vector.load %arg2[%c3_26, %c0_27, %c0_28] : memref<5x128x256xf32, #tpu.memory_space<vmem>>, vector<1x128x256xf32>
    %27 = vector.shape_cast %26 : vector<1x128x256xf32> to vector<128x256xf32>
    %cst_29 = arith.constant dense<0.000000e+00> : vector<64x256xf32>
    %28 = tpu.matmul %25, %27, %cst_29 {dimension_numbers = #tpu.dot_dimension_numbers<[1], [0], [0], [1], [0, 0, 1, 1], [], []>} : vector<64x128xf32>, vector<128x256xf32>, vector<64x256xf32> -> vector<64x256xf32>
    %29 = arith.addf %22, %28 : vector<64x256xf32>
    %c4 = arith.constant 4 : index
    %c0_30 = arith.constant 0 : index
    %c0_31 = arith.constant 0 : index
    %30 = vector.load %arg1[%c4, %c0_30, %c0_31] : memref<5x64x64xf32, #tpu.memory_space<vmem>>, vector<1x64x64xf32>
    %31 = vector.shape_cast %30 : vector<1x64x64xf32> to vector<64x64xf32>
    %cst_32 = arith.constant dense<0.000000e+00> : vector<64x128xf32>
    %32 = tpu.matmul %31, %0, %cst_32 {dimension_numbers = #tpu.dot_dimension_numbers<[1], [0], [0], [1], [0, 0, 1, 1], [], []>} : vector<64x64xf32>, vector<64x128xf32>, vector<64x128xf32> -> vector<64x128xf32>
    %c4_33 = arith.constant 4 : index
    %c0_34 = arith.constant 0 : index
    %c0_35 = arith.constant 0 : index
    %33 = vector.load %arg2[%c4_33, %c0_34, %c0_35] : memref<5x128x256xf32, #tpu.memory_space<vmem>>, vector<1x128x256xf32>
    %34 = vector.shape_cast %33 : vector<1x128x256xf32> to vector<128x256xf32>
    %cst_36 = arith.constant dense<0.000000e+00> : vector<64x256xf32>
    %35 = tpu.matmul %32, %34, %cst_36 {dimension_numbers = #tpu.dot_dimension_numbers<[1], [0], [0], [1], [0, 0, 1, 1], [], []>} : vector<64x128xf32>, vector<128x256xf32>, vector<64x256xf32> -> vector<64x256xf32>
    %36 = arith.addf %29, %35 : vector<64x256xf32>
    %c0_37 = arith.constant 0 : index
    %c0_38 = arith.constant 0 : index
    %37 = vector.load %arg3[%c0_37, %c0_38] : memref<1x256xf32, #tpu.memory_space<vmem>>, vector<1x256xf32>
    %38 = vector.broadcast %37 : vector<1x256xf32> to vector<64x256xf32>
    %39 = arith.addf %36, %38 : vector<64x256xf32>
    %cst_39 = arith.constant 0.000000e+00 : f32
    %40 = vector.broadcast %cst_39 : f32 to vector<64x256xf32>
    %41 = arith.maximumf %39, %40 : vector<64x256xf32>
    %42 = vector.extract_strided_slice %41 {offsets = [0, 0], sizes = [32, 128], strides = [1, 1]} : vector<64x256xf32> to vector<32x128xf32>
    %43 = vector.extract_strided_slice %41 {offsets = [0, 128], sizes = [32, 128], strides = [1, 1]} : vector<64x256xf32> to vector<32x128xf32>
    %44 = arith.maximumf %42, %43 : vector<32x128xf32>
    %45 = vector.extract_strided_slice %41 {offsets = [32, 0], sizes = [32, 128], strides = [1, 1]} : vector<64x256xf32> to vector<32x128xf32>
    %46 = vector.extract_strided_slice %41 {offsets = [32, 128], sizes = [32, 128], strides = [1, 1]} : vector<64x256xf32> to vector<32x128xf32>
    %47 = arith.maximumf %45, %46 : vector<32x128xf32>
    %48 = arith.maximumf %44, %47 : vector<32x128xf32>
    %cst_40 = arith.constant 0.000000e+00 : f32
    %49 = vector.broadcast %cst_40 : f32 to vector<32x256xf32>
    %c0_41 = arith.constant 0 : index
    %c0_42 = arith.constant 0 : index
    %c0_43 = arith.constant 0 : index
    %50 = vector.load %arg4[%c0_41, %c0_42, %c0_43] : memref<5x32x32xf32, #tpu.memory_space<vmem>>, vector<1x32x32xf32>
    %51 = vector.shape_cast %50 : vector<1x32x32xf32> to vector<32x32xf32>
    %cst_44 = arith.constant dense<0.000000e+00> : vector<32x128xf32>
    %52 = tpu.matmul %51, %48, %cst_44 {dimension_numbers = #tpu.dot_dimension_numbers<[1], [0], [0], [1], [0, 0, 1, 1], [], []>} : vector<32x32xf32>, vector<32x128xf32>, vector<32x128xf32> -> vector<32x128xf32>
    %c0_45 = arith.constant 0 : index
    %c0_46 = arith.constant 0 : index
    %c0_47 = arith.constant 0 : index
    %53 = vector.load %arg5[%c0_45, %c0_46, %c0_47] : memref<5x128x256xf32, #tpu.memory_space<vmem>>, vector<1x128x256xf32>
    %54 = vector.shape_cast %53 : vector<1x128x256xf32> to vector<128x256xf32>
    %cst_48 = arith.constant dense<0.000000e+00> : vector<32x256xf32>
    %55 = tpu.matmul %52, %54, %cst_48 {dimension_numbers = #tpu.dot_dimension_numbers<[1], [0], [0], [1], [0, 0, 1, 1], [], []>} : vector<32x128xf32>, vector<128x256xf32>, vector<32x256xf32> -> vector<32x256xf32>
    %56 = arith.addf %49, %55 : vector<32x256xf32>
    %c1_49 = arith.constant 1 : index
    %c0_50 = arith.constant 0 : index
    %c0_51 = arith.constant 0 : index
    %57 = vector.load %arg4[%c1_49, %c0_50, %c0_51] : memref<5x32x32xf32, #tpu.memory_space<vmem>>, vector<1x32x32xf32>
    %58 = vector.shape_cast %57 : vector<1x32x32xf32> to vector<32x32xf32>
    %cst_52 = arith.constant dense<0.000000e+00> : vector<32x128xf32>
    %59 = tpu.matmul %58, %48, %cst_52 {dimension_numbers = #tpu.dot_dimension_numbers<[1], [0], [0], [1], [0, 0, 1, 1], [], []>} : vector<32x32xf32>, vector<32x128xf32>, vector<32x128xf32> -> vector<32x128xf32>
    %c1_53 = arith.constant 1 : index
    %c0_54 = arith.constant 0 : index
    %c0_55 = arith.constant 0 : index
    %60 = vector.load %arg5[%c1_53, %c0_54, %c0_55] : memref<5x128x256xf32, #tpu.memory_space<vmem>>, vector<1x128x256xf32>
    %61 = vector.shape_cast %60 : vector<1x128x256xf32> to vector<128x256xf32>
    %cst_56 = arith.constant dense<0.000000e+00> : vector<32x256xf32>
    %62 = tpu.matmul %59, %61, %cst_56 {dimension_numbers = #tpu.dot_dimension_numbers<[1], [0], [0], [1], [0, 0, 1, 1], [], []>} : vector<32x128xf32>, vector<128x256xf32>, vector<32x256xf32> -> vector<32x256xf32>
    %63 = arith.addf %56, %62 : vector<32x256xf32>
    %c2_57 = arith.constant 2 : index
    %c0_58 = arith.constant 0 : index
    %c0_59 = arith.constant 0 : index
    %64 = vector.load %arg4[%c2_57, %c0_58, %c0_59] : memref<5x32x32xf32, #tpu.memory_space<vmem>>, vector<1x32x32xf32>
    %65 = vector.shape_cast %64 : vector<1x32x32xf32> to vector<32x32xf32>
    %cst_60 = arith.constant dense<0.000000e+00> : vector<32x128xf32>
    %66 = tpu.matmul %65, %48, %cst_60 {dimension_numbers = #tpu.dot_dimension_numbers<[1], [0], [0], [1], [0, 0, 1, 1], [], []>} : vector<32x32xf32>, vector<32x128xf32>, vector<32x128xf32> -> vector<32x128xf32>
    %c2_61 = arith.constant 2 : index
    %c0_62 = arith.constant 0 : index
    %c0_63 = arith.constant 0 : index
    %67 = vector.load %arg5[%c2_61, %c0_62, %c0_63] : memref<5x128x256xf32, #tpu.memory_space<vmem>>, vector<1x128x256xf32>
    %68 = vector.shape_cast %67 : vector<1x128x256xf32> to vector<128x256xf32>
    %cst_64 = arith.constant dense<0.000000e+00> : vector<32x256xf32>
    %69 = tpu.matmul %66, %68, %cst_64 {dimension_numbers = #tpu.dot_dimension_numbers<[1], [0], [0], [1], [0, 0, 1, 1], [], []>} : vector<32x128xf32>, vector<128x256xf32>, vector<32x256xf32> -> vector<32x256xf32>
    %70 = arith.addf %63, %69 : vector<32x256xf32>
    %c3_65 = arith.constant 3 : index
    %c0_66 = arith.constant 0 : index
    %c0_67 = arith.constant 0 : index
    %71 = vector.load %arg4[%c3_65, %c0_66, %c0_67] : memref<5x32x32xf32, #tpu.memory_space<vmem>>, vector<1x32x32xf32>
    %72 = vector.shape_cast %71 : vector<1x32x32xf32> to vector<32x32xf32>
    %cst_68 = arith.constant dense<0.000000e+00> : vector<32x128xf32>
    %73 = tpu.matmul %72, %48, %cst_68 {dimension_numbers = #tpu.dot_dimension_numbers<[1], [0], [0], [1], [0, 0, 1, 1], [], []>} : vector<32x32xf32>, vector<32x128xf32>, vector<32x128xf32> -> vector<32x128xf32>
    %c3_69 = arith.constant 3 : index
    %c0_70 = arith.constant 0 : index
    %c0_71 = arith.constant 0 : index
    %74 = vector.load %arg5[%c3_69, %c0_70, %c0_71] : memref<5x128x256xf32, #tpu.memory_space<vmem>>, vector<1x128x256xf32>
    %75 = vector.shape_cast %74 : vector<1x128x256xf32> to vector<128x256xf32>
    %cst_72 = arith.constant dense<0.000000e+00> : vector<32x256xf32>
    %76 = tpu.matmul %73, %75, %cst_72 {dimension_numbers = #tpu.dot_dimension_numbers<[1], [0], [0], [1], [0, 0, 1, 1], [], []>} : vector<32x128xf32>, vector<128x256xf32>, vector<32x256xf32> -> vector<32x256xf32>
    %77 = arith.addf %70, %76 : vector<32x256xf32>
    %c4_73 = arith.constant 4 : index
    %c0_74 = arith.constant 0 : index
    %c0_75 = arith.constant 0 : index
    %78 = vector.load %arg4[%c4_73, %c0_74, %c0_75] : memref<5x32x32xf32, #tpu.memory_space<vmem>>, vector<1x32x32xf32>
    %79 = vector.shape_cast %78 : vector<1x32x32xf32> to vector<32x32xf32>
    %cst_76 = arith.constant dense<0.000000e+00> : vector<32x128xf32>
    %80 = tpu.matmul %79, %48, %cst_76 {dimension_numbers = #tpu.dot_dimension_numbers<[1], [0], [0], [1], [0, 0, 1, 1], [], []>} : vector<32x32xf32>, vector<32x128xf32>, vector<32x128xf32> -> vector<32x128xf32>
    %c4_77 = arith.constant 4 : index
    %c0_78 = arith.constant 0 : index
    %c0_79 = arith.constant 0 : index
    %81 = vector.load %arg5[%c4_77, %c0_78, %c0_79] : memref<5x128x256xf32, #tpu.memory_space<vmem>>, vector<1x128x256xf32>
    %82 = vector.shape_cast %81 : vector<1x128x256xf32> to vector<128x256xf32>
    %cst_80 = arith.constant dense<0.000000e+00> : vector<32x256xf32>
    %83 = tpu.matmul %80, %82, %cst_80 {dimension_numbers = #tpu.dot_dimension_numbers<[1], [0], [0], [1], [0, 0, 1, 1], [], []>} : vector<32x128xf32>, vector<128x256xf32>, vector<32x256xf32> -> vector<32x256xf32>
    %84 = arith.addf %77, %83 : vector<32x256xf32>
    %c0_81 = arith.constant 0 : index
    %c0_82 = arith.constant 0 : index
    %85 = vector.load %arg6[%c0_81, %c0_82] : memref<1x256xf32, #tpu.memory_space<vmem>>, vector<1x256xf32>
    %86 = vector.broadcast %85 : vector<1x256xf32> to vector<32x256xf32>
    %87 = arith.addf %84, %86 : vector<32x256xf32>
    %cst_83 = arith.constant 0.000000e+00 : f32
    %88 = vector.broadcast %cst_83 : f32 to vector<32x256xf32>
    %89 = arith.maximumf %87, %88 : vector<32x256xf32>
    %90 = vector.extract_strided_slice %89 {offsets = [0, 0], sizes = [16, 128], strides = [1, 1]} : vector<32x256xf32> to vector<16x128xf32>
    %91 = vector.extract_strided_slice %89 {offsets = [0, 128], sizes = [16, 128], strides = [1, 1]} : vector<32x256xf32> to vector<16x128xf32>
    %92 = arith.maximumf %90, %91 : vector<16x128xf32>
    %93 = vector.extract_strided_slice %89 {offsets = [16, 0], sizes = [16, 128], strides = [1, 1]} : vector<32x256xf32> to vector<16x128xf32>
    %94 = vector.extract_strided_slice %89 {offsets = [16, 128], sizes = [16, 128], strides = [1, 1]} : vector<32x256xf32> to vector<16x128xf32>
    %95 = arith.maximumf %93, %94 : vector<16x128xf32>
    %96 = arith.maximumf %92, %95 : vector<16x128xf32>
    %cst_84 = arith.constant 0.000000e+00 : f32
    %97 = vector.broadcast %cst_84 : f32 to vector<8x128xf32>
    %c0_85 = arith.constant 0 : index
    %c0_86 = arith.constant 0 : index
    %c0_87 = arith.constant 0 : index
    %98 = vector.load %arg7[%c0_85, %c0_86, %c0_87] : memref<5x8x16xf32, #tpu.memory_space<vmem>>, vector<1x8x16xf32>
    %99 = vector.shape_cast %98 : vector<1x8x16xf32> to vector<8x16xf32>
    %cst_88 = arith.constant dense<0.000000e+00> : vector<8x128xf32>
    %100 = tpu.matmul %99, %96, %cst_88 {dimension_numbers = #tpu.dot_dimension_numbers<[1], [0], [0], [1], [0, 0, 1, 1], [], []>} : vector<8x16xf32>, vector<16x128xf32>, vector<8x128xf32> -> vector<8x128xf32>
    %c0_89 = arith.constant 0 : index
    %c0_90 = arith.constant 0 : index
    %c0_91 = arith.constant 0 : index
    %101 = vector.load %arg8[%c0_89, %c0_90, %c0_91] : memref<5x128x128xf32, #tpu.memory_space<vmem>>, vector<1x128x128xf32>
    %102 = vector.shape_cast %101 : vector<1x128x128xf32> to vector<128x128xf32>
    %cst_92 = arith.constant dense<0.000000e+00> : vector<8x128xf32>
    %103 = tpu.matmul %100, %102, %cst_92 {dimension_numbers = #tpu.dot_dimension_numbers<[1], [0], [0], [1], [0, 0, 1, 1], [], []>} : vector<8x128xf32>, vector<128x128xf32>, vector<8x128xf32> -> vector<8x128xf32>
    %104 = arith.addf %97, %103 : vector<8x128xf32>
    %c1_93 = arith.constant 1 : index
    %c0_94 = arith.constant 0 : index
    %c0_95 = arith.constant 0 : index
    %105 = vector.load %arg7[%c1_93, %c0_94, %c0_95] : memref<5x8x16xf32, #tpu.memory_space<vmem>>, vector<1x8x16xf32>
    %106 = vector.shape_cast %105 : vector<1x8x16xf32> to vector<8x16xf32>
    %cst_96 = arith.constant dense<0.000000e+00> : vector<8x128xf32>
    %107 = tpu.matmul %106, %96, %cst_96 {dimension_numbers = #tpu.dot_dimension_numbers<[1], [0], [0], [1], [0, 0, 1, 1], [], []>} : vector<8x16xf32>, vector<16x128xf32>, vector<8x128xf32> -> vector<8x128xf32>
    %c1_97 = arith.constant 1 : index
    %c0_98 = arith.constant 0 : index
    %c0_99 = arith.constant 0 : index
    %108 = vector.load %arg8[%c1_97, %c0_98, %c0_99] : memref<5x128x128xf32, #tpu.memory_space<vmem>>, vector<1x128x128xf32>
    %109 = vector.shape_cast %108 : vector<1x128x128xf32> to vector<128x128xf32>
    %cst_100 = arith.constant dense<0.000000e+00> : vector<8x128xf32>
    %110 = tpu.matmul %107, %109, %cst_100 {dimension_numbers = #tpu.dot_dimension_numbers<[1], [0], [0], [1], [0, 0, 1, 1], [], []>} : vector<8x128xf32>, vector<128x128xf32>, vector<8x128xf32> -> vector<8x128xf32>
    %111 = arith.addf %104, %110 : vector<8x128xf32>
    %c2_101 = arith.constant 2 : index
    %c0_102 = arith.constant 0 : index
    %c0_103 = arith.constant 0 : index
    %112 = vector.load %arg7[%c2_101, %c0_102, %c0_103] : memref<5x8x16xf32, #tpu.memory_space<vmem>>, vector<1x8x16xf32>
    %113 = vector.shape_cast %112 : vector<1x8x16xf32> to vector<8x16xf32>
    %cst_104 = arith.constant dense<0.000000e+00> : vector<8x128xf32>
    %114 = tpu.matmul %113, %96, %cst_104 {dimension_numbers = #tpu.dot_dimension_numbers<[1], [0], [0], [1], [0, 0, 1, 1], [], []>} : vector<8x16xf32>, vector<16x128xf32>, vector<8x128xf32> -> vector<8x128xf32>
    %c2_105 = arith.constant 2 : index
    %c0_106 = arith.constant 0 : index
    %c0_107 = arith.constant 0 : index
    %115 = vector.load %arg8[%c2_105, %c0_106, %c0_107] : memref<5x128x128xf32, #tpu.memory_space<vmem>>, vector<1x128x128xf32>
    %116 = vector.shape_cast %115 : vector<1x128x128xf32> to vector<128x128xf32>
    %cst_108 = arith.constant dense<0.000000e+00> : vector<8x128xf32>
    %117 = tpu.matmul %114, %116, %cst_108 {dimension_numbers = #tpu.dot_dimension_numbers<[1], [0], [0], [1], [0, 0, 1, 1], [], []>} : vector<8x128xf32>, vector<128x128xf32>, vector<8x128xf32> -> vector<8x128xf32>
    %118 = arith.addf %111, %117 : vector<8x128xf32>
    %c3_109 = arith.constant 3 : index
    %c0_110 = arith.constant 0 : index
    %c0_111 = arith.constant 0 : index
    %119 = vector.load %arg7[%c3_109, %c0_110, %c0_111] : memref<5x8x16xf32, #tpu.memory_space<vmem>>, vector<1x8x16xf32>
    %120 = vector.shape_cast %119 : vector<1x8x16xf32> to vector<8x16xf32>
    %cst_112 = arith.constant dense<0.000000e+00> : vector<8x128xf32>
    %121 = tpu.matmul %120, %96, %cst_112 {dimension_numbers = #tpu.dot_dimension_numbers<[1], [0], [0], [1], [0, 0, 1, 1], [], []>} : vector<8x16xf32>, vector<16x128xf32>, vector<8x128xf32> -> vector<8x128xf32>
    %c3_113 = arith.constant 3 : index
    %c0_114 = arith.constant 0 : index
    %c0_115 = arith.constant 0 : index
    %122 = vector.load %arg8[%c3_113, %c0_114, %c0_115] : memref<5x128x128xf32, #tpu.memory_space<vmem>>, vector<1x128x128xf32>
    %123 = vector.shape_cast %122 : vector<1x128x128xf32> to vector<128x128xf32>
    %cst_116 = arith.constant dense<0.000000e+00> : vector<8x128xf32>
    %124 = tpu.matmul %121, %123, %cst_116 {dimension_numbers = #tpu.dot_dimension_numbers<[1], [0], [0], [1], [0, 0, 1, 1], [], []>} : vector<8x128xf32>, vector<128x128xf32>, vector<8x128xf32> -> vector<8x128xf32>
    %125 = arith.addf %118, %124 : vector<8x128xf32>
    %c4_117 = arith.constant 4 : index
    %c0_118 = arith.constant 0 : index
    %c0_119 = arith.constant 0 : index
    %126 = vector.load %arg7[%c4_117, %c0_118, %c0_119] : memref<5x8x16xf32, #tpu.memory_space<vmem>>, vector<1x8x16xf32>
    %127 = vector.shape_cast %126 : vector<1x8x16xf32> to vector<8x16xf32>
    %cst_120 = arith.constant dense<0.000000e+00> : vector<8x128xf32>
    %128 = tpu.matmul %127, %96, %cst_120 {dimension_numbers = #tpu.dot_dimension_numbers<[1], [0], [0], [1], [0, 0, 1, 1], [], []>} : vector<8x16xf32>, vector<16x128xf32>, vector<8x128xf32> -> vector<8x128xf32>
    %c4_121 = arith.constant 4 : index
    %c0_122 = arith.constant 0 : index
    %c0_123 = arith.constant 0 : index
    %129 = vector.load %arg8[%c4_121, %c0_122, %c0_123] : memref<5x128x128xf32, #tpu.memory_space<vmem>>, vector<1x128x128xf32>
    %130 = vector.shape_cast %129 : vector<1x128x128xf32> to vector<128x128xf32>
    %cst_124 = arith.constant dense<0.000000e+00> : vector<8x128xf32>
    %131 = tpu.matmul %128, %130, %cst_124 {dimension_numbers = #tpu.dot_dimension_numbers<[1], [0], [0], [1], [0, 0, 1, 1], [], []>} : vector<8x128xf32>, vector<128x128xf32>, vector<8x128xf32> -> vector<8x128xf32>
    %132 = arith.addf %125, %131 : vector<8x128xf32>
    %c0_125 = arith.constant 0 : index
    %c0_126 = arith.constant 0 : index
    %133 = vector.load %arg9[%c0_125, %c0_126] : memref<1x128xf32, #tpu.memory_space<vmem>>, vector<1x128xf32>
    %134 = vector.broadcast %133 : vector<1x128xf32> to vector<8x128xf32>
    %135 = arith.addf %132, %134 : vector<8x128xf32>
    %cst_127 = arith.constant 0.000000e+00 : f32
    %136 = vector.broadcast %cst_127 : f32 to vector<8x128xf32>
    %137 = arith.maximumf %135, %136 : vector<8x128xf32>
    %c0_128 = arith.constant 0 : index
    %c0_129 = arith.constant 0 : index
    %138 = vector.load %arg10[%c0_128, %c0_129] : memref<128x128xf32, #tpu.memory_space<vmem>>, vector<128x128xf32>
    %cst_130 = arith.constant dense<0.000000e+00> : vector<8x128xf32>
    %139 = tpu.matmul %137, %138, %cst_130 {dimension_numbers = #tpu.dot_dimension_numbers<[1], [0], [0], [1], [0, 0, 1, 1], [], []>} : vector<8x128xf32>, vector<128x128xf32>, vector<8x128xf32> -> vector<8x128xf32>
    %c0_131 = arith.constant 0 : index
    %c0_132 = arith.constant 0 : index
    %140 = vector.load %arg11[%c0_131, %c0_132] : memref<1x128xf32, #tpu.memory_space<vmem>>, vector<1x128xf32>
    %141 = vector.broadcast %140 : vector<1x128xf32> to vector<8x128xf32>
    %142 = arith.addf %139, %141 : vector<8x128xf32>
    %cst_133 = arith.constant 0.000000e+00 : f32
    %143 = vector.broadcast %cst_133 : f32 to vector<8x128xf32>
    %144 = arith.maximumf %142, %143 : vector<8x128xf32>
    %c0_134 = arith.constant 0 : index
    %c0_135 = arith.constant 0 : index
    %145 = vector.load %arg12[%c0_134, %c0_135] : memref<128x128xf32, #tpu.memory_space<vmem>>, vector<128x128xf32>
    %cst_136 = arith.constant dense<0.000000e+00> : vector<8x128xf32>
    %146 = tpu.matmul %144, %145, %cst_136 {dimension_numbers = #tpu.dot_dimension_numbers<[1], [0], [0], [1], [0, 0, 1, 1], [], []>} : vector<8x128xf32>, vector<128x128xf32>, vector<8x128xf32> -> vector<8x128xf32>
    %c0_137 = arith.constant 0 : index
    %c0_138 = arith.constant 0 : index
    %147 = vector.load %arg13[%c0_137, %c0_138] : memref<1x128xf32, #tpu.memory_space<vmem>>, vector<1x128xf32>
    %148 = vector.broadcast %147 : vector<1x128xf32> to vector<8x128xf32>
    %149 = arith.addf %146, %148 : vector<8x128xf32>
    %150 = vector.extract_strided_slice %149 {offsets = [0, 0], sizes = [2, 10], strides = [1, 1]} : vector<8x128xf32> to vector<2x10xf32>
    %c0_139 = arith.constant 0 : index
    %c0_140 = arith.constant 0 : index
    %151 = vector.load %arg14[%c0_139, %c0_140] : memref<2x10xf32, #tpu.memory_space<vmem>>, vector<2x10xf32>
    tpu.vector_store %arg14[%c0_139, %c0_140], %150 {strides = array<i32>} : memref<2x10xf32, #tpu.memory_space<vmem>>, vector<2x10xf32>,
    return
  }
}

</mosaic_0001>

<bundles_post_ra>
// kernel: lenet_forward.1
= control target key start
LH: loop header
LB: loop body
LE: loop exit
PB: predicated region body
PF: predicated region fallthrough
CT: control target
= control target key end

     0   :  { %19 = vsyncpa [#allocation3], 0  ;;  %s3527_s0 = inlined_call_operand.vmem [shape: f32[64,128], index: 0, kind: input, shape index: {}]   ;;  %s3528_s1 = inlined_call_operand.hbm [shape: f32[5,64,64], index: 1, kind: input, shape index: {}]   ;;  %s3529_s2 = inlined_call_operand.hbm [shape: f32[5,128,256], index: 2, kind: input, shape index: {}]   ;;  %s3530_s3 = inlined_call_operand.vmem [shape: f32[1,256], index: 3, kind: input, shape index: {}]   ;;  %s3531_s4 = inlined_call_operand.vmem [shape: f32[5,32,32], index: 4, kind: input, shape index: {}]   ;;  %s3532_s5 = inlined_call_operand.hbm [shape: f32[5,128,256], index: 5, kind: input, shape index: {}]   ;;  %s3533_s6 = inlined_call_operand.vmem [shape: f32[1,256], index: 6, kind: input, shape index: {}]   ;;  %s3534_s7 = inlined_call_operand.vmem [shape: f32[5,8,16], index: 7, kind: input, shape index: {}]   ;;  %s3535_s8 = inlined_call_operand.vmem [shape: f32[5,128,128], index: 8, kind: input, shape index: {}]   ;;  %s3536_s9 = inlined_call_operand.vmem [shape: f32[1,128], index: 9, kind: input, shape index: {}]   ;;  %s3537_s10 = inlined_call_operand.hbm [shape: f32[128,128], index: 10, kind: input, shape index: {}]   ;;  %s3538_s11 = inlined_call_operand.vmem [shape: f32[1,128], index: 11, kind: input, shape index: {}]   ;;  %s3539_s12 = inlined_call_operand.hbm [shape: f32[128,128], index: 12, kind: input, shape index: {}]   ;;  %s3540_s13 = inlined_call_operand.vmem [shape: f32[1,128], index: 13, kind: input, shape index: {}]   ;;  %s3541_s14 = inlined_call_operand.hbm [shape: f32[2,10], index: 14, kind: output, shape index: {}]  }
   0x1   :  { %20 = vsyncpa [#allocation6], 0 }
   0x2   :  { %21 = vsyncpa [#allocation9], 0  ;;  %s42_s15 = sshll.u32 %s3529_s2, 4  ;;  %s43_s15 = int_to_ptr.hbm [resolvable:$true] %s42_s15 }
   0x3   :  { %22 = vsyncpa [#allocation4], 0  ;;  %s2646_s16 = smov [#allocation5]   ;;  %s2647_s18 = smov 256  }
   0x4   :  { %s44_s17 = sshll.u32 %s2646_s16, 4  ;;  %s2648_s19 = smov 16   ;;  %s45_s17 = int_to_ptr.vmem [resolvable:$true] %s44_s17 }
   0x5   :  { %50 = dma.hbm_to_vmem [thread:$0]  %s43_s15, 20480, %s45_s17, [#allocation6], %s2647_s18, %s2647_s18, %s2648_s19  }
   0x6   :  { %s80_s22 = sshll.u32 %s3537_s10, 4  ;;  %s2649_s23 = smov [#allocation8]   ;;  %s81_s22 = int_to_ptr.hbm [resolvable:$true] %s80_s22 }
   0x7   :  { %s82_s24 = sshll.u32 %s2649_s23, 4  ;;  %s29_s27 = sshll.u32 %s3528_s1, 4  ;;  %s83_s24 = int_to_ptr.vmem [resolvable:$true] %s82_s24  ;;  %s30_s27 = int_to_ptr.hbm [resolvable:$true] %s29_s27 }
   0x8   :  { %s2650_s2 = smov 128   ;;  %s2651_s28 = smov 8  }
   0x9   :  { %88 = dma.hbm_to_vmem [thread:$0]  %s81_s22, 2048, %s83_s24, [#allocation9], %s2650_s2, %s2650_s2, %s2651_s28  }
   0xa   :  { %s59_s15 = sshll.u32 %s3532_s5, 4  ;;  %s2652_s16 = smov [#allocation2]   ;;  %s60_s15 = int_to_ptr.hbm [resolvable:$true] %s59_s15 }
   0xb   :  { %s31_s17 = sshll.u32 %s2652_s16, 4  ;;  %s2653_s10 = smov [#allocation7]   ;;  %s32_s17 = int_to_ptr.vmem [resolvable:$true] %s31_s17 }
   0xc   :  { %37 = dma.hbm_to_vmem [thread:$0]  %s30_s27, 5120, %s32_s17, [#allocation3], %s2650_s2, %s2650_s2, %s2651_s28  }
   0xd   :  { %s61_s20 = sshll.u32 %s2653_s10, 4  ;;  %s95_s1 = sshll.u32 %s3539_s12, 4  ;;  %s62_s20 = int_to_ptr.vmem [resolvable:$true] %s61_s20  ;;  %s96_s1 = int_to_ptr.hbm [resolvable:$true] %s95_s1 }
   0xe   :  { %67 = dma.hbm_to_vmem [thread:$0]  %s60_s15, 20480, %s62_s20, [#allocation6], %s2647_s18, %s2647_s18, %s2648_s19  }
   0xf   :  { %s2654_s25 = smov [#allocation10]  }
  0x10   :  { %s97_s22 = sshll.u32 %s2654_s25, 4  ;;  %s98_s22 = int_to_ptr.vmem [resolvable:$true] %s97_s22 }
  0x11   :  { %103 = dma.hbm_to_vmem [thread:$0]  %s96_s1, 2048, %s98_s22, [#allocation9], %s2650_s2, %s2650_s2, %s2651_s28  }
  0x12   :  { %2638 = dma.done.wait [#allocation3], 5120  }
  0x13   :  { %2639 = vsyncadd [#allocation3], 4294962176 }
  0x14   :  { %2640 = dma.done.wait [#allocation6], 40960  }
  0x15   :  { %2641 = vsyncadd [#allocation6], 4294926336 }
  0x16   :  { %2642 = dma.done.wait [#allocation9], 4096  }
  0x17   :  { %2643 = vsyncadd [#allocation9], 4294963200  ;;  %v2749_v0 = vld [vmem:[%s3527_s0 + $0x38] sm:$0xff]  ;;  %v2754_v1 = vld [vmem:[%s3527_s0 + $0x30] sm:$0xff]  ;;  %vm142_vm0 = vcmask 523264   ;;  %vm1180_vm1 = vcmask 261120  }
  0x18   :  { %281 = vmatpush.msra.mxu1 %v2749_v0  ;;  %175 = vmatpush.msra.mxu0 %v2749_v0  ;;  %v2761_v2 = vld [vmem:[%s3527_s0 + $0x28] sm:$0xff]  ;;  %v2768_v3 = vld [vmem:[%s3527_s0 + $0x20] sm:$0xff]  ;;  %v2775_v4 = vld [vmem:[%s3527_s0 + $0x18] sm:$0xff]  ;;  %vm1913_vm2 = vcmask 130048   ;;  %s2655_s16 = smov [#allocation11]   ;;  %vm2311_vm3 = vcmask 74752  }
  0x19   :  { %v2782_v5 = vld [vmem:[%s3527_s0 + $0x10] sm:$0xff]  ;;  %v2789_v6 = vld [vmem:[%s3527_s0 + $0x8] sm:$0xff]  ;;  %v2796_v7 = vld [vmem:[%s3527_s0] sm:$0xff]  ;;  %s2318_s17 = sshll.u32 %s2655_s16, 4  ;;  %s2320_s0 = sshll.u32 %s3541_s14, 4  ;;  %s2319_s17 = int_to_ptr.vmem [resolvable:$true] %s2318_s17  ;;  %s2321_s0 = int_to_ptr.hbm [resolvable:$true] %s2320_s0 }
  0x1a   :  { %282 = vmatpush.msra.mxu1 %v2754_v1  ;;  %176 = vmatpush.msra.mxu0 %v2754_v1  ;;  %v241_v8 = vld [vmem:[#allocation2 + $0x40] sm:$0xff]  ;;  %v242_v10 = vld [vmem:[#allocation2 + $0x48] sm:$0xff]  ;;  %v243_v12 = vld [vmem:[#allocation2 + $0x50] sm:$0xff] }
  0x1b   :  { %v134_v9 = vld [vmem:[#allocation2] sm:$0xff]  ;;  %v135_v11 = vld [vmem:[#allocation2 + $0x8] sm:$0xff]  ;;  %v136_v13 = vld [vmem:[#allocation2 + $0x10] sm:$0xff] }
  0x1c   :  { %283 = vmatpush.msra.mxu1 %v2761_v2  ;;  %177 = vmatpush.msra.mxu0 %v2761_v2  ;;  %v244_v14 = vld [vmem:[#allocation2 + $0x58] sm:$0xff]  ;;  %v345_v16 = vld [vmem:[#allocation5 + $0x1f0] sm:$0xff]  ;;  %v343_v18 = vld [vmem:[#allocation5 + $0x1e0] sm:$0xff] }
  0x1d   :  { %v137_v15 = vld [vmem:[#allocation2 + $0x18] sm:$0xff]  ;;  %347 = vmatpush.msra.mxu2 %v345_v16  ;;  %v344_v19 = vld [vmem:[#allocation5 + $0x1e8] sm:$0xff]  ;;  %v341_v20 = vld [vmem:[#allocation5 + $0x1d0] sm:$0xff] }
  0x1e   :  { %284 = vmatpush.msra.mxu1 %v2768_v3  ;;  %178 = vmatpush.msra.mxu0 %v2768_v3  ;;  %v346_v17 = vld [vmem:[#allocation5 + $0x1f8] sm:$0xff]  ;;  %v339_v22 = vld [vmem:[#allocation5 + $0x1c0] sm:$0xff]  ;;  %v238_v23 = vld [vmem:[#allocation5 + $0xf0] sm:$0xff] }
  0x1f   :  { %388 = vmatpush.msra.mxu3 %v346_v17  ;;  %v342_v21 = vld [vmem:[#allocation5 + $0x1d8] sm:$0xff]  ;;  %348 = vmatpush.msra.mxu2 %v343_v18  ;;  %v340_v25 = vld [vmem:[#allocation5 + $0x1c8] sm:$0xff]  ;;  %v236_v26 = vld [vmem:[#allocation5 + $0xe0] sm:$0xff] }
  0x20   :  { %285 = vmatpush.msra.mxu1 %v2775_v4  ;;  %179 = vmatpush.msra.mxu0 %v2775_v4  ;;  %v239_v24 = vld [vmem:[#allocation5 + $0xf8] sm:$0xff]  ;;  %v237_v27 = vld [vmem:[#allocation5 + $0xe8] sm:$0xff]  ;;  %v245_v28 = vld [vmem:[#allocation2 + $0x60] sm:$0xff] }
  0x21   :  { %389 = vmatpush.msra.mxu3 %v344_v19  ;;  %v138_v29 = vld [vmem:[#allocation2 + $0x20] sm:$0xff]  ;;  %349 = vmatpush.msra.mxu2 %v341_v20  ;;  %v337_v30 = vld [vmem:[#allocation5 + $0x1b0] sm:$0xff]  ;;  %v338_v31 = vld [vmem:[#allocation5 + $0x1b8] sm:$0xff] }
  0x22   :  { %286 = vmatpush.msra.mxu1 %v2782_v5  ;;  %180 = vmatpush.msra.mxu0 %v2782_v5  ;;  %v234_v32 = vld [vmem:[#allocation5 + $0xd0] sm:$0xff]  ;;  %v235_v33 = vld [vmem:[#allocation5 + $0xd8] sm:$0xff]  ;;  %v335_v34 = vld [vmem:[#allocation5 + $0x1a0] sm:$0xff] }
  0x23   :  { %390 = vmatpush.msra.mxu3 %v342_v21  ;;  %350 = vmatpush.msra.mxu2 %v339_v22  ;;  %v336_v35 = vld [vmem:[#allocation5 + $0x1a8] sm:$0xff]  ;;  %v232_v36 = vld [vmem:[#allocation5 + $0xc0] sm:$0xff]  ;;  %v333_v38 = vld [vmem:[#allocation5 + $0x190] sm:$0xff] }
  0x24   :  { %287 = vmatpush.msra.mxu1 %v2789_v6  ;;  %181 = vmatpush.msra.mxu0 %v2789_v6  ;;  %v233_v37 = vld [vmem:[#allocation5 + $0xc8] sm:$0xff]  ;;  %v334_v39 = vld [vmem:[#allocation5 + $0x198] sm:$0xff]  ;;  %v230_v40 = vld [vmem:[#allocation5 + $0xb0] sm:$0xff] }
  0x25   :  { %391 = vmatpush.msra.mxu3 %v340_v25  ;;  %351 = vmatpush.msra.mxu2 %v337_v30  ;;  %v231_v41 = vld [vmem:[#allocation5 + $0xb8] sm:$0xff]  ;;  %v331_v42 = vld [vmem:[#allocation5 + $0x180] sm:$0xff]  ;;  %v332_v43 = vld [vmem:[#allocation5 + $0x188] sm:$0xff] }
  0x26   :  { %288 = vmatpush.msra.mxu1 %v2796_v7  ;;  %182 = vmatpush.msra.mxu0 %v2796_v7  ;;  %v246_v44 = vld [vmem:[#allocation2 + $0x68] sm:$0xff]  ;;  %v329_v46 = vld [vmem:[#allocation5 + $0x170] sm:$0xff]  ;;  %v330_v47 = vld [vmem:[#allocation5 + $0x178] sm:$0xff] }
  0x27   :  { %2340 = vmatmul.msk.f32.vlgmr.msra.gmra.mxu1 %vm142_vm0, %v241_v8  ;;  %2332 = vmatmul.msk.f32.vlgmr.msra.gmra.mxu0 %vm142_vm0, %v134_v9  ;;  %v139_v45 = vld [vmem:[#allocation2 + $0x28] sm:$0xff]  ;;  %v228_v48 = vld [vmem:[#allocation5 + $0xa0] sm:$0xff]  ;;  %v226_v52 = vld [vmem:[#allocation5 + $0x90] sm:$0xff] }
  0x28   :  { %429 = vmatpush.msrb.mxu0 %v238_v23  ;;  %470 = vmatpush.msrb.mxu1 %v239_v24  ;;  %v229_v49 = vld [vmem:[#allocation5 + $0xa8] sm:$0xff]  ;;  %v327_v50 = vld [vmem:[#allocation5 + $0x160] sm:$0xff]  ;;  %v227_v53 = vld [vmem:[#allocation5 + $0x98] sm:$0xff] }
  0x29   :  { %392 = vmatpush.msra.mxu3 %v338_v31  ;;  %352 = vmatpush.msra.mxu2 %v335_v34  ;;  %v328_v51 = vld [vmem:[#allocation5 + $0x168] sm:$0xff]  ;;  %v325_v54 = vld [vmem:[#allocation5 + $0x150] sm:$0xff]  ;;  %v326_v55 = vld [vmem:[#allocation5 + $0x158] sm:$0xff] }
  0x2a   :  { %430 = vmatpush.msrb.mxu0 %v236_v26  ;;  %471 = vmatpush.msrb.mxu1 %v237_v27  ;;  %v224_v56 = vld [vmem:[#allocation5 + $0x80] sm:$0xff]  ;;  %v225_v57 = vld [vmem:[#allocation5 + $0x88] sm:$0xff]  ;;  %v247_v60 = vld [vmem:[#allocation2 + $0x70] sm:$0xff] }
  0x2b   :  { %393 = vmatpush.msra.mxu3 %v336_v35  ;;  %353 = vmatpush.msra.mxu2 %v333_v38  ;;  %v323_v58 = vld [vmem:[#allocation5 + $0x140] sm:$0xff]  ;;  %v324_v59 = vld [vmem:[#allocation5 + $0x148] sm:$0xff]  ;;  %v140_v61 = vld [vmem:[#allocation2 + $0x30] sm:$0xff] }
  0x2c   :  { %431 = vmatpush.msrb.mxu0 %v234_v32  ;;  %472 = vmatpush.msrb.mxu1 %v235_v33  ;;  %v222_v62 = vld [vmem:[#allocation5 + $0x70] sm:$0xff]  ;;  %v223_v63 = vld [vmem:[#allocation5 + $0x78] sm:$0xff]  ;;  %v216_v18 = vld [vmem:[#allocation5 + $0x40] sm:$0xff] }
  0x2d   :  { %394 = vmatpush.msra.mxu3 %v334_v39  ;;  %354 = vmatpush.msra.mxu2 %v331_v42  ;;  %v321_v8 = vld [vmem:[#allocation5 + $0x130] sm:$0xff]  ;;  %v322_v9 = vld [vmem:[#allocation5 + $0x138] sm:$0xff]  ;;  %v217_v19 = vld [vmem:[#allocation5 + $0x48] sm:$0xff] }
  0x2e   :  { %432 = vmatpush.msrb.mxu0 %v232_v36  ;;  %473 = vmatpush.msrb.mxu1 %v233_v37  ;;  %v317_v16 = vld [vmem:[#allocation5 + $0x110] sm:$0xff]  ;;  %v318_v17 = vld [vmem:[#allocation5 + $0x118] sm:$0xff]  ;;  %v315_v22 = vld [vmem:[#allocation5 + $0x100] sm:$0xff] }
  0x2f   :  { %2341 = vmatmul.msk.f32.gmra.mxu1 %vm142_vm0, %v242_v10  ;;  %2333 = vmatmul.msk.f32.gmra.mxu0 %vm142_vm0, %v135_v11  ;;  %v220_v10 = vld [vmem:[#allocation5 + $0x60] sm:$0xff]  ;;  %v221_v11 = vld [vmem:[#allocation5 + $0x68] sm:$0xff]  ;;  %v248_v20 = vld [vmem:[#allocation2 + $0x78] sm:$0xff] }
  0x30   :  { %433 = vmatpush.msrb.mxu0 %v230_v40  ;;  %474 = vmatpush.msrb.mxu1 %v231_v41  ;;  %v141_v21 = vld [vmem:[#allocation2 + $0x38] sm:$0xff]  ;;  %v316_v23 = vld [vmem:[#allocation5 + $0x108] sm:$0xff]  ;;  %v214_v24 = vld [vmem:[#allocation5 + $0x30] sm:$0xff] }
  0x31   :  { %395 = vmatpush.msra.mxu3 %v332_v43  ;;  %355 = vmatpush.msra.mxu2 %v329_v46  ;;  %v215_v25 = vld [vmem:[#allocation5 + $0x38] sm:$0xff]  ;;  %v212_v26 = vld [vmem:[#allocation5 + $0x20] sm:$0xff]  ;;  %v213_v27 = vld [vmem:[#allocation5 + $0x28] sm:$0xff] }
  0x32   :  { %434 = vmatpush.msrb.mxu0 %v228_v48  ;;  %475 = vmatpush.msrb.mxu1 %v229_v49  ;;  %v208_v30 = vld [vmem:[#allocation5] sm:$0xff]  ;;  %v209_v31 = vld [vmem:[#allocation5 + $0x8] sm:$0xff] }
  0x33   :  { %396 = vmatpush.msra.mxu3 %v330_v47  ;;  %356 = vmatpush.msra.mxu2 %v327_v50  ;;  %v512_v48 = vld [vmem:[#allocation2 + $0x80] sm:$0xff]  ;;  %v513_v50 = vld [vmem:[#allocation2 + $0x88] sm:$0xff] }
  0x34   :  { %435 = vmatpush.msrb.mxu0 %v226_v52  ;;  %476 = vmatpush.msrb.mxu1 %v227_v53  ;;  %v717_v49 = vld [vmem:[#allocation2 + $0xc0] sm:$0xff]  ;;  %v514_v52 = vld [vmem:[#allocation2 + $0x90] sm:$0xff] }
  0x35   :  { %397 = vmatpush.msra.mxu3 %v328_v51  ;;  %357 = vmatpush.msra.mxu2 %v325_v54  ;;  %v718_v51 = vld [vmem:[#allocation2 + $0xc8] sm:$0xff]  ;;  %v719_v53 = vld [vmem:[#allocation2 + $0xd0] sm:$0xff]  ;;  %v515_v54 = vld [vmem:[#allocation2 + $0x98] sm:$0xff] }
  0x36   :  { %436 = vmatpush.msrb.mxu0 %v224_v56  ;;  %477 = vmatpush.msrb.mxu1 %v225_v57  ;;  %v516_v56 = vld [vmem:[#allocation2 + $0xa0] sm:$0xff] }
  0x37   :  { %2342 = vmatmul.msk.f32.gmra.mxu1 %vm142_vm0, %v243_v12  ;;  %2334 = vmatmul.msk.f32.gmra.mxu0 %vm142_vm0, %v136_v13  ;;  %v319_v12 = vld [vmem:[#allocation5 + $0x120] sm:$0xff]  ;;  %v320_v13 = vld [vmem:[#allocation5 + $0x128] sm:$0xff] }
  0x38   :  { %398 = vmatpush.msra.mxu3 %v326_v55  ;;  %358 = vmatpush.msra.mxu2 %v323_v58  ;;  %v720_v55 = vld [vmem:[#allocation2 + $0xd8] sm:$0xff]  ;;  %v721_v57 = vld [vmem:[#allocation2 + $0xe0] sm:$0xff]  ;;  %v517_v58 = vld [vmem:[#allocation2 + $0xa8] sm:$0xff] }
  0x39   :  { %437 = vmatpush.msrb.mxu0 %v222_v62  ;;  %478 = vmatpush.msrb.mxu1 %v223_v63  ;;  %v519_v62 = vld [vmem:[#allocation2 + $0xb8] sm:$0xff] }
  0x3a   :  { %399 = vmatpush.msra.mxu3 %v324_v59  ;;  %359 = vmatpush.msra.mxu2 %v321_v8  ;;  %v722_v59 = vld [vmem:[#allocation2 + $0xe8] sm:$0xff]  ;;  %v724_v63 = vld [vmem:[#allocation2 + $0xf8] sm:$0xff] }
  0x3b   :  { %438 = vmatpush.msrb.mxu0 %v220_v10  ;;  %479 = vmatpush.msrb.mxu1 %v221_v11  ;;  %v616_v10 = vld [vmem:[#allocation5 + $0x2f0] sm:$0xff]  ;;  %v617_v11 = vld [vmem:[#allocation5 + $0x2f8] sm:$0xff] }
  0x3c   :  { %400 = vmatpush.msra.mxu3 %v322_v9  ;;  %360 = vmatpush.msra.mxu2 %v319_v12  ;;  %v614_v12 = vld [vmem:[#allocation5 + $0x2e0] sm:$0xff] }
  0x3e   :  { %401 = vmatpush.msra.mxu3 %v320_v13  ;;  %361 = vmatpush.msra.mxu2 %v317_v16  ;;  %v615_v13 = vld [vmem:[#allocation5 + $0x2e8] sm:$0xff]  ;;  %v612_v16 = vld [vmem:[#allocation5 + $0x2d0] sm:$0xff] }
  0x3f   :  { %2343 = vmatmul.msk.f32.gmra.mxu1 %vm142_vm0, %v244_v14  ;;  %2335 = vmatmul.msk.f32.gmra.mxu0 %vm142_vm0, %v137_v15  ;;  %v218_v14 = vld [vmem:[#allocation5 + $0x50] sm:$0xff]  ;;  %v219_v15 = vld [vmem:[#allocation5 + $0x58] sm:$0xff] }
  0x40   :  { %439 = vmatpush.msrb.mxu0 %v218_v14  ;;  %480 = vmatpush.msrb.mxu1 %v219_v15  ;;  %v821_v14 = vld [vmem:[#allocation5 + $0x3f0] sm:$0xff] }
  0x41   :  { %402 = vmatpush.msra.mxu3 %v318_v17  ;;  %362 = vmatpush.msra.mxu2 %v315_v22  ;;  %v613_v17 = vld [vmem:[#allocation5 + $0x2d8] sm:$0xff] }
  0x42   :  { %440 = vmatpush.msrb.mxu0 %v216_v18  ;;  %481 = vmatpush.msrb.mxu1 %v217_v19  ;;  %v819_v18 = vld [vmem:[#allocation5 + $0x3e0] sm:$0xff] }
  0x43   :  { %403 = vmatpush.msra.mxu3 %v316_v23  ;;  %552 = vmatpush.msrb.mxu2 %v2749_v0  ;;  %v610_v19 = vld [vmem:[#allocation5 + $0x2c0] sm:$0xff]  ;;  %v608_v23 = vld [vmem:[#allocation5 + $0x2b0] sm:$0xff] }
  0x44   :  { %441 = vmatpush.msrb.mxu0 %v214_v24  ;;  %482 = vmatpush.msrb.mxu1 %v215_v25  ;;  %v609_v24 = vld [vmem:[#allocation5 + $0x2b8] sm:$0xff]  ;;  %v815_v25 = vld [vmem:[#allocation5 + $0x3c0] sm:$0xff] }
  0x45   :  { %553 = vmatpush.msrb.mxu2 %v2754_v1  ;;  %618 = vmatpush.msrb.mxu3 %v616_v10 }
  0x46   :  { %442 = vmatpush.msrb.mxu0 %v212_v26  ;;  %483 = vmatpush.msrb.mxu1 %v213_v27  ;;  %v606_v26 = vld [vmem:[#allocation5 + $0x2a0] sm:$0xff]  ;;  %v607_v27 = vld [vmem:[#allocation5 + $0x2a8] sm:$0xff] }
  0x47   :  { %2344 = vmatmul.msk.f32.gmra.mxu1 %vm142_vm0, %v245_v28  ;;  %2336 = vmatmul.msk.f32.gmra.mxu0 %vm142_vm0, %v138_v29  ;;  %v210_v28 = vld [vmem:[#allocation5 + $0x10] sm:$0xff]  ;;  %v211_v29 = vld [vmem:[#allocation5 + $0x18] sm:$0xff] }
  0x48   :  { %443 = vmatpush.msrb.mxu0 %v210_v28  ;;  %484 = vmatpush.msrb.mxu1 %v211_v29  ;;  %v813_v28 = vld [vmem:[#allocation5 + $0x3b0] sm:$0xff] }
  0x49   :  { %554 = vmatpush.msrb.mxu2 %v2761_v2  ;;  %619 = vmatpush.msrb.mxu3 %v614_v12 }
  0x4a   :  { %444 = vmatpush.msrb.mxu0 %v208_v30  ;;  %485 = vmatpush.msrb.mxu1 %v209_v31  ;;  %v604_v30 = vld [vmem:[#allocation5 + $0x290] sm:$0xff]  ;;  %v605_v31 = vld [vmem:[#allocation5 + $0x298] sm:$0xff] }
  0x4b   :  { %555 = vmatpush.msrb.mxu2 %v2768_v3  ;;  %620 = vmatpush.msrb.mxu3 %v612_v16 }
  0x4c   :  { %757 = vmatpush.msra.mxu1 %v2749_v0  ;;  %659 = vmatpush.msra.mxu0 %v617_v11  ;;  %v791_v11 = vld [vmem:[#allocation5 + $0x300] sm:$0xff] }
  0x4d   :  { %556 = vmatpush.msrb.mxu2 %v2775_v4  ;;  %621 = vmatpush.msrb.mxu3 %v610_v19  ;;  %v814_v19 = vld [vmem:[#allocation5 + $0x3b8] sm:$0xff] }
  0x4e   :  { %758 = vmatpush.msra.mxu1 %v2754_v1  ;;  %660 = vmatpush.msra.mxu0 %v615_v13 }
  0x4f   :  { %2345 = vmatmul.msk.f32.gmra.mxu1 %vm142_vm0, %v246_v44  ;;  %2337 = vmatmul.msk.f32.gmra.mxu0 %vm142_vm0, %v139_v45 }
  0x50   :  { %557 = vmatpush.msrb.mxu2 %v2782_v5  ;;  %759 = vmatpush.msra.mxu1 %v2761_v2 }
  0x51   :  { %661 = vmatpush.msra.mxu0 %v613_v17  ;;  %622 = vmatpush.msrb.mxu3 %v608_v23  ;;  %v820_v17 = vld [vmem:[#allocation5 + $0x3e8] sm:$0xff]  ;;  %v810_v23 = vld [vmem:[#allocation5 + $0x398] sm:$0xff] }
  0x52   :  { %558 = vmatpush.msrb.mxu2 %v2789_v6  ;;  %760 = vmatpush.msra.mxu1 %v2768_v3 }
  0x53   :  { %623 = vmatpush.msrb.mxu3 %v606_v26  ;;  %v806_v26 = vld [vmem:[#allocation5 + $0x378] sm:$0xff] }
  0x54   :  { %559 = vmatpush.msrb.mxu2 %v2796_v7  ;;  %761 = vmatpush.msra.mxu1 %v2775_v4 }
  0x55   :  { %624 = vmatpush.msrb.mxu3 %v604_v30  ;;  %v802_v30 = vld [vmem:[#allocation5 + $0x358] sm:$0xff] }
  0x56   :  { %762 = vmatpush.msra.mxu1 %v2782_v5 }
  0x57   :  { %2346 = vmatmul.msk.f32.gmra.mxu1 %vm142_vm0, %v247_v60  ;;  %2338 = vmatmul.msk.f32.gmra.mxu0 %vm142_vm0, %v140_v61  ;;  %v518_v60 = vld [vmem:[#allocation2 + $0xb0] sm:$0xff] }
  0x58   :  { %763 = vmatpush.msra.mxu1 %v2789_v6  ;;  %v723_v61 = vld [vmem:[#allocation2 + $0xf0] sm:$0xff] }
  0x5a   :  { %764 = vmatpush.msra.mxu1 %v2796_v7 }
  0x5f   :  { %2347 = vmatmul.msk.f32.gmra.mxu1 %vm142_vm0, %v248_v20  ;;  %2339 = vmatmul.msk.f32.gmra.mxu0 %vm142_vm0, %v141_v21  ;;  %v611_v20 = vld [vmem:[#allocation5 + $0x2c8] sm:$0xff]  ;;  %v817_v21 = vld [vmem:[#allocation5 + $0x3d0] sm:$0xff] }
  0x60   :  { %662 = vmatpush.msra.mxu0 %v611_v20  ;;  %v812_v20 = vld [vmem:[#allocation5 + $0x3a8] sm:$0xff] }
  0x62   :  { %663 = vmatpush.msra.mxu0 %v609_v24  ;;  %v808_v24 = vld [vmem:[#allocation5 + $0x388] sm:$0xff] }
  0x64   :  { %664 = vmatpush.msra.mxu0 %v607_v27  ;;  %v804_v27 = vld [vmem:[#allocation5 + $0x368] sm:$0xff] }
  0x66   :  { %665 = vmatpush.msra.mxu0 %v605_v31  ;;  %v800_v31 = vld [vmem:[#allocation5 + $0x348] sm:$0xff] }
  0xa4   :  { %v290_v32 = vpop.f32.mrf.mxu1  ;;  %v184_v33 = vpop.f32.mrf.mxu0 }
  0xa5   :  { %363 = vmatmul.f32.vlgmr.msra.gmra.mxu2 %v290_v32  ;;  %404 = vmatmul.f32.vlgmr.msra.gmra.mxu3 %v290_v32  ;;  %v811_v32 = vld [vmem:[#allocation5 + $0x3a0] sm:$0xff] }
  0xa6   :  { %445 = vmatmul.f32.vlgmr.msrb.gmra.mxu0 %v184_v33  ;;  %486 = vmatmul.f32.vlgmr.msrb.gmra.mxu1 %v184_v33  ;;  %v602_v33 = vld [vmem:[#allocation5 + $0x280] sm:$0xff] }
  0xa7   :  { %823 = vmatpush.msra.mxu2 %v821_v14  ;;  %625 = vmatpush.msrb.mxu3 %v602_v33  ;;  %v798_v33 = vld [vmem:[#allocation5 + $0x338] sm:$0xff] }
  0xa9   :  { %824 = vmatpush.msra.mxu2 %v819_v18 }
  0xab   :  { %825 = vmatpush.msra.mxu2 %v817_v21 }
  0xac   :  { %v293_v34 = vpop.f32.mrf.mxu1  ;;  %v187_v35 = vpop.f32.mrf.mxu0 }
  0xad   :  { %366 = vmatmul.f32.gmra.mxu2 %v293_v34  ;;  %407 = vmatmul.f32.gmra.mxu3 %v293_v34  ;;  %v603_v34 = vld [vmem:[#allocation5 + $0x288] sm:$0xff] }
  0xae   :  { %448 = vmatmul.f32.gmra.mxu0 %v187_v35  ;;  %489 = vmatmul.f32.gmra.mxu1 %v187_v35  ;;  %v809_v35 = vld [vmem:[#allocation5 + $0x390] sm:$0xff] }
  0xaf   :  { %826 = vmatpush.msra.mxu2 %v815_v25  ;;  %666 = vmatpush.msra.mxu0 %v603_v34  ;;  %v796_v34 = vld [vmem:[#allocation5 + $0x328] sm:$0xff] }
  0xb1   :  { %827 = vmatpush.msra.mxu2 %v813_v28 }
  0xb3   :  { %828 = vmatpush.msra.mxu2 %v811_v32 }
  0xb4   :  { %v296_v36 = vpop.f32.mrf.mxu1  ;;  %v190_v37 = vpop.f32.mrf.mxu0 }
  0xb5   :  { %369 = vmatmul.f32.gmra.mxu2 %v296_v36  ;;  %410 = vmatmul.f32.gmra.mxu3 %v296_v36 }
  0xb6   :  { %451 = vmatmul.f32.gmra.mxu0 %v190_v37  ;;  %492 = vmatmul.f32.gmra.mxu1 %v190_v37  ;;  %v600_v37 = vld [vmem:[#allocation5 + $0x270] sm:$0xff] }
  0xb7   :  { %829 = vmatpush.msra.mxu2 %v809_v35  ;;  %626 = vmatpush.msrb.mxu3 %v600_v37  ;;  %v794_v37 = vld [vmem:[#allocation5 + $0x318] sm:$0xff] }
  0xbc   :  { %v299_v38 = vpop.f32.mrf.mxu1  ;;  %v193_v39 = vpop.f32.mrf.mxu0 }
  0xbd   :  { %372 = vmatmul.f32.gmra.mxu2 %v299_v38  ;;  %413 = vmatmul.f32.gmra.mxu3 %v299_v38  ;;  %v601_v38 = vld [vmem:[#allocation5 + $0x278] sm:$0xff] }
  0xbe   :  { %454 = vmatmul.f32.gmra.mxu0 %v193_v39  ;;  %495 = vmatmul.f32.gmra.mxu1 %v193_v39  ;;  %v807_v39 = vld [vmem:[#allocation5 + $0x380] sm:$0xff] }
  0xbf   :  { %667 = vmatpush.msra.mxu0 %v601_v38  ;;  %830 = vmatpush.msra.mxu2 %v807_v39  ;;  %v792_v38 = vld [vmem:[#allocation5 + $0x308] sm:$0xff] }
  0xc4   :  { %v302_v40 = vpop.f32.mrf.mxu1  ;;  %v196_v41 = vpop.f32.mrf.mxu0 }
  0xc5   :  { %375 = vmatmul.f32.gmra.mxu2 %v302_v40  ;;  %416 = vmatmul.f32.gmra.mxu3 %v302_v40  ;;  %v598_v40 = vld [vmem:[#allocation5 + $0x260] sm:$0xff] }
  0xc6   :  { %457 = vmatmul.f32.gmra.mxu0 %v196_v41  ;;  %498 = vmatmul.f32.gmra.mxu1 %v196_v41  ;;  %v599_v41 = vld [vmem:[#allocation5 + $0x268] sm:$0xff] }
  0xc7   :  { %627 = vmatpush.msrb.mxu3 %v598_v40  ;;  %668 = vmatpush.msra.mxu0 %v599_v41 }
  0xcc   :  { %v305_v42 = vpop.f32.mrf.mxu1  ;;  %v199_v43 = vpop.f32.mrf.mxu0 }
  0xcd   :  { %378 = vmatmul.f32.gmra.mxu2 %v305_v42  ;;  %419 = vmatmul.f32.gmra.mxu3 %v305_v42  ;;  %v805_v42 = vld [vmem:[#allocation5 + $0x370] sm:$0xff] }
  0xce   :  { %460 = vmatmul.f32.gmra.mxu0 %v199_v43  ;;  %501 = vmatmul.f32.gmra.mxu1 %v199_v43 }
  0xcf   :  { %831 = vmatpush.msra.mxu2 %v805_v42 }
  0xd4   :  { %v308_v44 = vpop.f32.mrf.mxu1  ;;  %v202_v45 = vpop.f32.mrf.mxu0 }
  0xd5   :  { %381 = vmatmul.f32.gmra.mxu2 %v308_v44  ;;  %422 = vmatmul.f32.gmra.mxu3 %v308_v44  ;;  %v596_v44 = vld [vmem:[#allocation5 + $0x250] sm:$0xff] }
  0xd6   :  { %463 = vmatmul.f32.gmra.mxu0 %v202_v45  ;;  %504 = vmatmul.f32.gmra.mxu1 %v202_v45  ;;  %v597_v45 = vld [vmem:[#allocation5 + $0x258] sm:$0xff] }
  0xd7   :  { %628 = vmatpush.msrb.mxu3 %v596_v44  ;;  %669 = vmatpush.msra.mxu0 %v597_v45 }
  0xdc   :  { %v311_v46 = vpop.f32.mrf.mxu1  ;;  %v205_v47 = vpop.f32.mrf.mxu0 }
  0xdd   :  { %384 = vmatmul.f32.gmra.mxu2 %v311_v46  ;;  %425 = vmatmul.f32.gmra.mxu3 %v311_v46  ;;  %v803_v46 = vld [vmem:[#allocation5 + $0x360] sm:$0xff] }
  0xde   :  { %466 = vmatmul.f32.gmra.mxu0 %v205_v47  ;;  %507 = vmatmul.f32.gmra.mxu1 %v205_v47  ;;  %v594_v47 = vld [vmem:[#allocation5 + $0x240] sm:$0xff] }
  0xdf   :  { %832 = vmatpush.msra.mxu2 %v803_v46  ;;  %629 = vmatpush.msrb.mxu3 %v594_v47 }
  0xe5   :  { %2348 = vmatmul.msk.f32.vlgmr.msrb.gmra.mxu2 %vm142_vm0, %v512_v48  ;;  %v595_v48 = vld [vmem:[#allocation5 + $0x248] sm:$0xff] }
  0xe6   :  { %2356 = vmatmul.msk.f32.vlgmr.msra.gmra.mxu1 %vm142_vm0, %v717_v49  ;;  %v801_v49 = vld [vmem:[#allocation5 + $0x350] sm:$0xff]  ;;  %670 = vmatpush.msra.mxu0 %v595_v48 }
  0xe7   :  { %833 = vmatpush.msra.mxu2 %v801_v49  ;;  %v922_v49 = vld [vmem:[#allocation2 + $0x100] sm:$0xff] }
  0xed   :  { %2349 = vmatmul.msk.f32.gmra.mxu2 %vm142_vm0, %v513_v50 }
  0xee   :  { %2357 = vmatmul.msk.f32.gmra.mxu1 %vm142_vm0, %v718_v51  ;;  %v592_v51 = vld [vmem:[#allocation5 + $0x230] sm:$0xff] }
  0xef   :  { %630 = vmatpush.msrb.mxu3 %v592_v51 }
  0xf5   :  { %2350 = vmatmul.msk.f32.gmra.mxu2 %vm142_vm0, %v514_v52  ;;  %v593_v52 = vld [vmem:[#allocation5 + $0x238] sm:$0xff] }
  0xf6   :  { %2358 = vmatmul.msk.f32.gmra.mxu1 %vm142_vm0, %v719_v53  ;;  %v799_v53 = vld [vmem:[#allocation5 + $0x340] sm:$0xff]  ;;  %671 = vmatpush.msra.mxu0 %v593_v52  ;;  %v923_v52 = vld [vmem:[#allocation2 + $0x108] sm:$0xff] }
  0xf7   :  { %834 = vmatpush.msra.mxu2 %v799_v53 }
  0xfd   :  { %2351 = vmatmul.msk.f32.gmra.mxu2 %vm142_vm0, %v515_v54  ;;  %v590_v54 = vld [vmem:[#allocation5 + $0x220] sm:$0xff] }
  0xfe   :  { %2359 = vmatmul.msk.f32.gmra.mxu1 %vm142_vm0, %v720_v55  ;;  %v591_v55 = vld [vmem:[#allocation5 + $0x228] sm:$0xff]  ;;  %631 = vmatpush.msrb.mxu3 %v590_v54  ;;  %v924_v54 = vld [vmem:[#allocation2 + $0x110] sm:$0xff] }
  0xff   :  { %672 = vmatpush.msra.mxu0 %v591_v55  ;;  %v925_v55 = vld [vmem:[#allocation2 + $0x118] sm:$0xff] }
 0x105   :  { %2352 = vmatmul.msk.f32.gmra.mxu2 %vm142_vm0, %v516_v56  ;;  %v797_v56 = vld [vmem:[#allocation5 + $0x330] sm:$0xff] }
 0x106   :  { %2360 = vmatmul.msk.f32.gmra.mxu1 %vm142_vm0, %v721_v57  ;;  %835 = vmatpush.msra.mxu2 %v797_v56 }
 0x10d   :  { %2353 = vmatmul.msk.f32.gmra.mxu2 %vm142_vm0, %v517_v58  ;;  %v588_v58 = vld [vmem:[#allocation5 + $0x210] sm:$0xff] }
 0x10e   :  { %2361 = vmatmul.msk.f32.gmra.mxu1 %vm142_vm0, %v722_v59  ;;  %v589_v59 = vld [vmem:[#allocation5 + $0x218] sm:$0xff]  ;;  %632 = vmatpush.msrb.mxu3 %v588_v58  ;;  %v926_v58 = vld [vmem:[#allocation2 + $0x120] sm:$0xff] }
 0x10f   :  { %673 = vmatpush.msra.mxu0 %v589_v59 }
 0x115   :  { %2354 = vmatmul.msk.f32.gmra.mxu2 %vm142_vm0, %v518_v60  ;;  %v795_v60 = vld [vmem:[#allocation5 + $0x320] sm:$0xff] }
 0x116   :  { %2362 = vmatmul.msk.f32.gmra.mxu1 %vm142_vm0, %v723_v61  ;;  %836 = vmatpush.msra.mxu2 %v795_v60  ;;  %v586_v61 = vld [vmem:[#allocation5 + $0x200] sm:$0xff]  ;;  %v927_v60 = vld [vmem:[#allocation2 + $0x128] sm:$0xff] }
 0x117   :  { %633 = vmatpush.msrb.mxu3 %v586_v61 }
 0x11d   :  { %2355 = vmatmul.msk.f32.gmra.mxu2 %vm142_vm0, %v519_v62  ;;  %v587_v62 = vld [vmem:[#allocation5 + $0x208] sm:$0xff] }
 0x11e   :  { %2363 = vmatmul.msk.f32.gmra.mxu1 %vm142_vm0, %v724_v63  ;;  %v793_v63 = vld [vmem:[#allocation5 + $0x310] sm:$0xff]  ;;  %674 = vmatpush.msra.mxu0 %v587_v62 }
 0x11f   :  { %837 = vmatpush.msra.mxu2 %v793_v63  ;;  %v928_v62 = vld [vmem:[#allocation2 + $0x130] sm:$0xff] }
 0x120   :  { %962 = vmatpush.msrb.mxu0 %v2749_v0 }
 0x121   :  { %838 = vmatpush.msra.mxu2 %v791_v11  ;;  %v929_v11 = vld [vmem:[#allocation2 + $0x138] sm:$0xff] }
 0x122   :  { %963 = vmatpush.msrb.mxu0 %v2754_v1 }
 0x123   :  { %v2850_v8 = vpop.f32.mrf.mxu1  ;;  %v2896_v44 = vpop.f32.mrf.mxu0 }
 0x124   :  { %964 = vmatpush.msrb.mxu0 %v2761_v2 }
 0x126   :  { %965 = vmatpush.msrb.mxu0 %v2768_v3 }
 0x128   :  { %v2852_v9 = vpop.f32.mrf.mxu2  ;;  %966 = vmatpush.msrb.mxu0 %v2775_v4  ;;  %v822_v4 = vld [vmem:[#allocation5 + $0x3f8] sm:$0xff] }
 0x129   :  { %864 = vmatpush.msra.mxu3 %v822_v4  ;;  %v1027_v4 = vld [vmem:[#allocation5 + $0x4f8] sm:$0xff] }
 0x12a   :  { %967 = vmatpush.msrb.mxu0 %v2782_v5  ;;  %1069 = vmatpush.msrb.mxu2 %v1027_v4 }
 0x12b   :  { %v2854_v15 = vpop.f32.mrf.mxu1  ;;  %865 = vmatpush.msra.mxu3 %v820_v17  ;;  %v2898_v48 = vpop.f32.mrf.mxu0  ;;  %v1024_v17 = vld [vmem:[#allocation5 + $0x4e0] sm:$0xff] }
 0x12c   :  { %968 = vmatpush.msrb.mxu0 %v2789_v6  ;;  %v818_v6 = vld [vmem:[#allocation5 + $0x3d8] sm:$0xff] }
 0x12d   :  { %866 = vmatpush.msra.mxu3 %v818_v6  ;;  %v1022_v6 = vld [vmem:[#allocation5 + $0x4d0] sm:$0xff] }
 0x12e   :  { %969 = vmatpush.msrb.mxu0 %v2796_v7  ;;  %v816_v7 = vld [vmem:[#allocation5 + $0x3c8] sm:$0xff] }
 0x12f   :  { %867 = vmatpush.msra.mxu3 %v816_v7  ;;  %v1023_v7 = vld [vmem:[#allocation5 + $0x4d8] sm:$0xff] }
 0x130   :  { %v2856_v22 = vpop.f32.mrf.mxu2 }
 0x131   :  { %868 = vmatpush.msra.mxu3 %v814_v19  ;;  %v1021_v19 = vld [vmem:[#allocation5 + $0x4c8] sm:$0xff] }
 0x133   :  { %v2858_v29 = vpop.f32.mrf.mxu1  ;;  %869 = vmatpush.msra.mxu3 %v812_v20  ;;  %v2902_v51 = vpop.f32.mrf.mxu0 }
 0x135   :  { %870 = vmatpush.msra.mxu3 %v810_v23  ;;  %v1019_v23 = vld [vmem:[#allocation5 + $0x4b8] sm:$0xff] }
 0x137   :  { %871 = vmatpush.msra.mxu3 %v808_v24  ;;  %v1016_v24 = vld [vmem:[#allocation5 + $0x4a0] sm:$0xff] }
 0x138   :  { %v2860_v36 = vpop.f32.mrf.mxu2 }
 0x139   :  { %872 = vmatpush.msra.mxu3 %v806_v26  ;;  %v1014_v26 = vld [vmem:[#allocation5 + $0x490] sm:$0xff] }
 0x13b   :  { %v2862_v43 = vpop.f32.mrf.mxu1  ;;  %873 = vmatpush.msra.mxu3 %v804_v27  ;;  %v2906_v53 = vpop.f32.mrf.mxu0  ;;  %v1015_v27 = vld [vmem:[#allocation5 + $0x498] sm:$0xff] }
 0x13d   :  { %874 = vmatpush.msra.mxu3 %v802_v30  ;;  %v1013_v30 = vld [vmem:[#allocation5 + $0x488] sm:$0xff] }
 0x13f   :  { %875 = vmatpush.msra.mxu3 %v800_v31 }
 0x140   :  { %v2864_v50 = vpop.f32.mrf.mxu2 }
 0x141   :  { %876 = vmatpush.msra.mxu3 %v798_v33  ;;  %v1010_v33 = vld [vmem:[#allocation5 + $0x470] sm:$0xff] }
 0x143   :  { %v2866_v57 = vpop.f32.mrf.mxu1  ;;  %877 = vmatpush.msra.mxu3 %v796_v34  ;;  %v2909_v56 = vpop.f32.mrf.mxu0  ;;  %v1011_v34 = vld [vmem:[#allocation5 + $0x478] sm:$0xff] }
 0x145   :  { %878 = vmatpush.msra.mxu3 %v794_v37  ;;  %v1009_v37 = vld [vmem:[#allocation5 + $0x468] sm:$0xff] }
 0x147   :  { %879 = vmatpush.msra.mxu3 %v792_v38  ;;  %v1006_v38 = vld [vmem:[#allocation5 + $0x450] sm:$0xff] }
 0x148   :  { %v2868_v10 = vpop.f32.mrf.mxu2 }
 0x14b   :  { %v2871_v12 = vpop.f32.mrf.mxu1  ;;  %v2913_v59 = vpop.f32.mrf.mxu0 }
 0x150   :  { %v2876_v13 = vpop.f32.mrf.mxu2 }
 0x153   :  { %v2879_v14 = vpop.f32.mrf.mxu1  ;;  %v2916_v61 = vpop.f32.mrf.mxu0 }
 0x158   :  { %v2884_v0 = vpop.f32.mrf.mxu2 }
 0x15b   :  { %v2886_v16 = vpop.f32.mrf.mxu1  ;;  %v2919_v63 = vpop.f32.mrf.mxu0 }
 0x160   :  { %v2888_v1 = vpop.f32.mrf.mxu2 }
 0x163   :  { %v2890_v2 = vpop.f32.mrf.mxu1 }
 0x164   :  { %839 = vmatmul.f32.vlgmr.msra.gmra.mxu2 %v2890_v2 }
 0x168   :  { %v561_v3 = vpop.f32.mrf.mxu2 }
 0x169   :  { %634 = vmatmul.f32.vlgmr.msrb.gmra.mxu3 %v561_v3  ;;  %675 = vmatmul.f32.vlgmr.msra.gmra.mxu0 %v561_v3  ;;  %v1026_v3 = vld [vmem:[#allocation5 + $0x4f0] sm:$0xff] }
 0x16a   :  { %1028 = vmatpush.msrb.mxu1 %v1026_v3 }
 0x16b   :  { %v2893_v5 = vpop.f32.mrf.mxu1 }
 0x16c   :  { %842 = vmatmul.f32.gmra.mxu2 %v2893_v5  ;;  %1029 = vmatpush.msrb.mxu1 %v1024_v17 }
 0x16e   :  { %1030 = vmatpush.msrb.mxu1 %v1022_v6 }
 0x170   :  { %v564_v18 = vpop.f32.mrf.mxu2 }
 0x171   :  { %637 = vmatmul.f32.gmra.mxu3 %v564_v18  ;;  %678 = vmatmul.f32.gmra.mxu0 %v564_v18  ;;  %v1020_v18 = vld [vmem:[#allocation5 + $0x4c0] sm:$0xff] }
 0x172   :  { %1031 = vmatpush.msrb.mxu1 %v1020_v18 }
 0x173   :  { %v772_v21 = vpop.f32.mrf.mxu1 }
 0x174   :  { %845 = vmatmul.f32.gmra.mxu2 %v772_v21 }
 0x178   :  { %v567_v25 = vpop.f32.mrf.mxu2 }
 0x179   :  { %640 = vmatmul.f32.gmra.mxu3 %v567_v25  ;;  %681 = vmatmul.f32.gmra.mxu0 %v567_v25  ;;  %v1017_v25 = vld [vmem:[#allocation5 + $0x4a8] sm:$0xff] }
 0x17b   :  { %v775_v28 = vpop.f32.mrf.mxu1 }
 0x17c   :  { %848 = vmatmul.f32.gmra.mxu2 %v775_v28 }
 0x180   :  { %v570_v32 = vpop.f32.mrf.mxu2 }
 0x181   :  { %643 = vmatmul.f32.gmra.mxu3 %v570_v32  ;;  %684 = vmatmul.f32.gmra.mxu0 %v570_v32  ;;  %v2928_v32 = vpop.f32.mrf.mxu3 }
 0x183   :  { %v778_v35 = vpop.f32.mrf.mxu1 }
 0x184   :  { %851 = vmatmul.f32.gmra.mxu2 %v778_v35 }
 0x188   :  { %v573_v39 = vpop.f32.mrf.mxu2 }
 0x189   :  { %646 = vmatmul.f32.gmra.mxu3 %v573_v39  ;;  %687 = vmatmul.f32.gmra.mxu0 %v573_v39  ;;  %v1007_v39 = vld [vmem:[#allocation5 + $0x458] sm:$0xff] }
 0x18b   :  { %v781_v40 = vpop.f32.mrf.mxu1 }
 0x18c   :  { %854 = vmatmul.f32.gmra.mxu2 %v781_v40 }
 0x190   :  { %v576_v41 = vpop.f32.mrf.mxu2 }
 0x191   :  { %649 = vmatmul.f32.gmra.mxu3 %v576_v41  ;;  %690 = vmatmul.f32.gmra.mxu0 %v576_v41  ;;  %v1005_v41 = vld [vmem:[#allocation5 + $0x448] sm:$0xff] }
 0x193   :  { %v784_v42 = vpop.f32.mrf.mxu1 }
 0x194   :  { %857 = vmatmul.f32.gmra.mxu2 %v784_v42 }
 0x198   :  { %v579_v45 = vpop.f32.mrf.mxu2 }
 0x199   :  { %652 = vmatmul.f32.gmra.mxu3 %v579_v45  ;;  %693 = vmatmul.f32.gmra.mxu0 %v579_v45  ;;  %v1002_v45 = vld [vmem:[#allocation5 + $0x430] sm:$0xff] }
 0x19b   :  { %v787_v46 = vpop.f32.mrf.mxu1 }
 0x19c   :  { %860 = vmatmul.f32.gmra.mxu2 %v787_v46 }
 0x1a0   :  { %v582_v47 = vpop.f32.mrf.mxu2 }
 0x1a1   :  { %655 = vmatmul.f32.gmra.mxu3 %v582_v47  ;;  %696 = vmatmul.f32.gmra.mxu0 %v582_v47  ;;  %v1000_v47 = vld [vmem:[#allocation5 + $0x420] sm:$0xff] }
 0x1a9   :  { %880 = vmatmul.f32.vlgmr.msra.gmra.mxu3 %v2890_v2  ;;  %2364 = vmatmul.msk.f32.vlgmr.msrb.gmra.mxu0 %vm142_vm0, %v922_v49  ;;  %v1001_v49 = vld [vmem:[#allocation5 + $0x428] sm:$0xff] }
 0x1b1   :  { %883 = vmatmul.f32.gmra.mxu3 %v2893_v5  ;;  %2365 = vmatmul.msk.f32.gmra.mxu0 %vm142_vm0, %v923_v52  ;;  %v1025_v5 = vld [vmem:[#allocation5 + $0x4e8] sm:$0xff]  ;;  %v2932_v52 = vpop.f32.mrf.mxu3 }
 0x1b2   :  { %1070 = vmatpush.msrb.mxu2 %v1025_v5 }
 0x1b4   :  { %1071 = vmatpush.msrb.mxu2 %v1023_v7 }
 0x1b6   :  { %1072 = vmatpush.msrb.mxu2 %v1021_v19 }
 0x1b8   :  { %1073 = vmatpush.msrb.mxu2 %v1019_v23 }
 0x1b9   :  { %886 = vmatmul.f32.gmra.mxu3 %v772_v21  ;;  %2366 = vmatmul.msk.f32.gmra.mxu0 %vm142_vm0, %v924_v54  ;;  %v1018_v21 = vld [vmem:[#allocation5 + $0x4b0] sm:$0xff] }
 0x1ba   :  { %1032 = vmatpush.msrb.mxu1 %v1018_v21  ;;  %1074 = vmatpush.msrb.mxu2 %v1017_v25  ;;  %v998_v54 = vld [vmem:[#allocation5 + $0x410] sm:$0xff] }
 0x1bc   :  { %1033 = vmatpush.msrb.mxu1 %v1016_v24  ;;  %1075 = vmatpush.msrb.mxu2 %v1015_v27 }
 0x1be   :  { %1034 = vmatpush.msrb.mxu1 %v1014_v26  ;;  %1076 = vmatpush.msrb.mxu2 %v1013_v30 }
 0x1c0   :  { %1077 = vmatpush.msrb.mxu2 %v1011_v34 }
 0x1c1   :  { %889 = vmatmul.f32.gmra.mxu3 %v775_v28  ;;  %2367 = vmatmul.msk.f32.gmra.mxu0 %vm142_vm0, %v925_v55  ;;  %v1012_v28 = vld [vmem:[#allocation5 + $0x480] sm:$0xff]  ;;  %v999_v55 = vld [vmem:[#allocation5 + $0x418] sm:$0xff] }
 0x1c2   :  { %1035 = vmatpush.msrb.mxu1 %v1012_v28  ;;  %1078 = vmatpush.msrb.mxu2 %v1009_v37 }
 0x1c4   :  { %1036 = vmatpush.msrb.mxu1 %v1010_v33  ;;  %1079 = vmatpush.msrb.mxu2 %v1007_v39 }
 0x1c6   :  { %1080 = vmatpush.msrb.mxu2 %v1005_v41 }
 0x1c9   :  { %892 = vmatmul.f32.gmra.mxu3 %v778_v35  ;;  %2368 = vmatmul.msk.f32.gmra.mxu0 %vm142_vm0, %v926_v58  ;;  %v1008_v35 = vld [vmem:[#allocation5 + $0x460] sm:$0xff] }
 0x1ca   :  { %1037 = vmatpush.msrb.mxu1 %v1008_v35  ;;  %v996_v58 = vld [vmem:[#allocation5 + $0x400] sm:$0xff] }
 0x1cc   :  { %1038 = vmatpush.msrb.mxu1 %v1006_v38 }
 0x1d1   :  { %895 = vmatmul.f32.gmra.mxu3 %v781_v40  ;;  %2369 = vmatmul.msk.f32.gmra.mxu0 %vm142_vm0, %v927_v60  ;;  %v1004_v40 = vld [vmem:[#allocation5 + $0x440] sm:$0xff]  ;;  %v997_v60 = vld [vmem:[#allocation5 + $0x408] sm:$0xff] }
 0x1d2   :  { %1039 = vmatpush.msrb.mxu1 %v1004_v40 }
 0x1d4   :  { %1040 = vmatpush.msrb.mxu1 %v1002_v45 }
 0x1d6   :  { %1041 = vmatpush.msrb.mxu1 %v1000_v47 }
 0x1d8   :  { %1042 = vmatpush.msrb.mxu1 %v998_v54 }
 0x1d9   :  { %898 = vmatmul.f32.gmra.mxu3 %v784_v42  ;;  %2370 = vmatmul.msk.f32.gmra.mxu0 %vm142_vm0, %v928_v62 }
 0x1da   :  { %1043 = vmatpush.msrb.mxu1 %v996_v58 }
 0x1e1   :  { %901 = vmatmul.f32.gmra.mxu3 %v787_v46  ;;  %2371 = vmatmul.msk.f32.gmra.mxu0 %vm142_vm0, %v929_v11  ;;  %v1003_v46 = vld [vmem:[#allocation5 + $0x438] sm:$0xff]  ;;  %v2936_v11 = vpop.f32.mrf.mxu3 }
 0x1e2   :  { %1081 = vmatpush.msrb.mxu2 %v1003_v46 }
 0x1e4   :  { %1082 = vmatpush.msrb.mxu2 %v1001_v49 }
 0x1e6   :  { %v2922_v2 = vpop.f32.mrf.mxu0  ;;  %1083 = vmatpush.msrb.mxu2 %v999_v55 }
 0x1e7   :  { %v2960_v35 = vpop.f32.mrf.mxu2 }
 0x1e8   :  { %1084 = vmatpush.msrb.mxu2 %v997_v60 }
 0x1e9   :  { %v2940_v4 = vpop.f32.mrf.mxu3 }
 0x1ee   :  { %v2924_v20 = vpop.f32.mrf.mxu0 }
 0x1ef   :  { %v2964_v39 = vpop.f32.mrf.mxu2 }
 0x1f1   :  { %v2946_v6 = vpop.f32.mrf.mxu3 }
 0x1f6   :  { %v2926_v31 = vpop.f32.mrf.mxu0 }
 0x1f7   :  { %v2968_v41 = vpop.f32.mrf.mxu2 }
 0x1f9   :  { %v2948_v18 = vpop.f32.mrf.mxu3 }
 0x1fe   :  { %v2930_v42 = vpop.f32.mrf.mxu0 }
 0x1ff   :  { %v2972_v46 = vpop.f32.mrf.mxu2 }
 0x201   :  { %v2950_v21 = vpop.f32.mrf.mxu3 }
 0x206   :  { %v2934_v62 = vpop.f32.mrf.mxu0 }
 0x207   :  { %v2976_v49 = vpop.f32.mrf.mxu2 }
 0x209   :  { %v2952_v24 = vpop.f32.mrf.mxu3 }
 0x20e   :  { %v2938_v3 = vpop.f32.mrf.mxu0 }
 0x20f   :  { %v2980_v55 = vpop.f32.mrf.mxu2 }
 0x210   :  { %3543 = vst [vmem:[#allocation17_spill] sm:$0xff] %v2980_v55  ;;  %v1313_v55 = vld [vmem:[#allocation7 + $0x160] sm:$0xff] }
 0x211   :  { %v2954_v26 = vpop.f32.mrf.mxu3 }
 0x216   :  { %v2942_v17 = vpop.f32.mrf.mxu0 }
 0x217   :  { %v2984_v60 = vpop.f32.mrf.mxu2 }
 0x218   :  { %3545 = vst [vmem:[#allocation19_spill] sm:$0xff] %v2984_v60 }
 0x219   :  { %v2956_v30 = vpop.f32.mrf.mxu3 }
 0x21e   :  { %v2944_v5 = vpop.f32.mrf.mxu0 }
 0x21f   :  { %3542 = vst [vmem:[#allocation16_spill] sm:$0xff] %v2944_v5  ;;  %v1327_v5 = vld [vmem:[#allocation7 + $0x1d0] sm:$0xff] }
 0x221   :  { %v2958_v34 = vpop.f32.mrf.mxu3 }
 0x226   :  { %v971_v7 = vpop.f32.mrf.mxu0 }
 0x227   :  { %1044 = vmatmul.f32.vlgmr.msrb.gmra.mxu1 %v971_v7  ;;  %1085 = vmatmul.f32.vlgmr.msrb.gmra.mxu2 %v971_v7 }
 0x229   :  { %v2962_v38 = vpop.f32.mrf.mxu3 }
 0x22e   :  { %v974_v19 = vpop.f32.mrf.mxu0 }
 0x22f   :  { %1047 = vmatmul.f32.gmra.mxu1 %v974_v19  ;;  %1088 = vmatmul.f32.gmra.mxu2 %v974_v19  ;;  %v2988_v19 = vpop.f32.mrf.mxu2 }
 0x230   :  { %3547 = vst [vmem:[#allocation21_spill] sm:$0xff] %v2988_v19 }
 0x231   :  { %v2966_v40 = vpop.f32.mrf.mxu3 }
 0x236   :  { %v977_v23 = vpop.f32.mrf.mxu0 }
 0x237   :  { %1050 = vmatmul.f32.gmra.mxu1 %v977_v23  ;;  %1091 = vmatmul.f32.gmra.mxu2 %v977_v23 }
 0x239   :  { %v2970_v45 = vpop.f32.mrf.mxu3 }
 0x23e   :  { %v980_v25 = vpop.f32.mrf.mxu0 }
 0x23f   :  { %1053 = vmatmul.f32.gmra.mxu1 %v980_v25  ;;  %1094 = vmatmul.f32.gmra.mxu2 %v980_v25 }
 0x241   :  { %v2974_v47 = vpop.f32.mrf.mxu3 }
 0x246   :  { %v983_v27 = vpop.f32.mrf.mxu0 }
 0x247   :  { %1056 = vmatmul.f32.gmra.mxu1 %v983_v27  ;;  %1097 = vmatmul.f32.gmra.mxu2 %v983_v27 }
 0x249   :  { %v2978_v54 = vpop.f32.mrf.mxu3 }
 0x24e   :  { %v986_v28 = vpop.f32.mrf.mxu0 }
 0x24f   :  { %1059 = vmatmul.f32.gmra.mxu1 %v986_v28  ;;  %1100 = vmatmul.f32.gmra.mxu2 %v986_v28 }
 0x251   :  { %v2982_v58 = vpop.f32.mrf.mxu3 }
 0x252   :  { %3544 = vst [vmem:[#allocation18_spill] sm:$0xff] %v2982_v58 }
 0x256   :  { %v989_v33 = vpop.f32.mrf.mxu0 }
 0x257   :  { %1062 = vmatmul.f32.gmra.mxu1 %v989_v33  ;;  %1103 = vmatmul.f32.gmra.mxu2 %v989_v33  ;;  %v1331_v33 = vld [vmem:[#allocation7 + $0x1f0] sm:$0xff] }
 0x258   :  { %1333 = vmatpush.msra.mxu0 %v1331_v33  ;;  %v1317_v33 = vld [vmem:[#allocation7 + $0x180] sm:$0xff] }
 0x259   :  { %v2986_v7 = vpop.f32.mrf.mxu3 }
 0x25a   :  { %3546 = vst [vmem:[#allocation20_spill] sm:$0xff] %v2986_v7  ;;  %v1325_v7 = vld [vmem:[#allocation7 + $0x1c0] sm:$0xff] }
 0x25e   :  { %v992_v37 = vpop.f32.mrf.mxu0 }
 0x25f   :  { %1065 = vmatmul.f32.gmra.mxu1 %v992_v37  ;;  %1106 = vmatmul.f32.gmra.mxu2 %v992_v37  ;;  %v1329_v37 = vld [vmem:[#allocation7 + $0x1e0] sm:$0xff] }
 0x260   :  { %1334 = vmatpush.msra.mxu0 %v1329_v37 }
 0x261   :  { %v2992_v25 = vpop.f32.mrf.mxu3 }
 0x262   :  { %3549 = vst [vmem:[#allocation23_spill] sm:$0xff] %v2992_v25  ;;  %1335 = vmatpush.msra.mxu0 %v1327_v5  ;;  %v1321_v25 = vld [vmem:[#allocation7 + $0x1a0] sm:$0xff]  ;;  %v1315_v5 = vld [vmem:[#allocation7 + $0x170] sm:$0xff] }
 0x264   :  { %1336 = vmatpush.msra.mxu0 %v1325_v7 }
 0x269   :  { %v3000_v60 = vpop.f32.mrf.mxu3 }
 0x2a4   :  { %v2990_v23 = vpop.f32.mrf.mxu1 }
 0x2a5   :  { %3548 = vst [vmem:[#allocation22_spill] sm:$0xff] %v2990_v23  ;;  %v1323_v23 = vld [vmem:[#allocation7 + $0x1b0] sm:$0xff] }
 0x2a6   :  { %1337 = vmatpush.msra.mxu0 %v1323_v23  ;;  %v1309_v23 = vld [vmem:[#allocation7 + $0x140] sm:$0xff] }
 0x2a8   :  { %1338 = vmatpush.msra.mxu0 %v1321_v25 }
 0x2aa   :  { %v2994_v27 = vpop.f32.mrf.mxu2 }
 0x2ab   :  { %3550 = vst [vmem:[#allocation24_spill] sm:$0xff] %v2994_v27  ;;  %v1319_v27 = vld [vmem:[#allocation7 + $0x190] sm:$0xff] }
 0x2ac   :  { %v2996_v28 = vpop.f32.mrf.mxu1  ;;  %1339 = vmatpush.msra.mxu0 %v1319_v27 }
 0x2ad   :  { %3551 = vst [vmem:[#allocation25_spill] sm:$0xff] %v2996_v28 }
 0x2ae   :  { %1340 = vmatpush.msra.mxu0 %v1317_v33  ;;  %v1303_v33 = vld [vmem:[#allocation7 + $0x110] sm:$0xff] }
 0x2b0   :  { %1341 = vmatpush.msra.mxu0 %v1315_v5  ;;  %v1301_v5 = vld [vmem:[#allocation7 + $0x100] sm:$0xff] }
 0x2b2   :  { %v2998_v58 = vpop.f32.mrf.mxu2  ;;  %1342 = vmatpush.msra.mxu0 %v1313_v55 }
 0x2b3   :  { %3552 = vst [vmem:[#allocation26_spill] sm:$0xff] %v2998_v58  ;;  %v3008_v58 = vpop.f32.mrf.mxu3 }
 0x2b4   :  { %v3002_v19 = vpop.f32.mrf.mxu1  ;;  %3556 = vst [vmem:[#allocation30_spill] sm:$0xff] %v3008_v58 }
 0x2b5   :  { %3553 = vst [vmem:[#allocation27_spill] sm:$0xff] %v3002_v19  ;;  %v1311_v19 = vld [vmem:[#allocation7 + $0x150] sm:$0xff] }
 0x2b6   :  { %1343 = vmatpush.msra.mxu0 %v1311_v19  ;;  %v447_v19 = vadd.f32 %v2896_v44, %v2852_v9  ;;  %v456_v9 = vadd.f32 %v2906_v53, %v2864_v50  ;;  %v497_v44 = vadd.f32 %v2862_v43, %v2940_v4  ;;  %v465_v50 = vadd.f32 %v2916_v61, %v2884_v0 }
 0x2b7   :  { %v506_v43 = vadd.f32 %v2879_v14, %v2950_v21 }
 0x2b8   :  { %1344 = vmatpush.msra.mxu0 %v1309_v23  ;;  %v488_v23 = vadd.f32 %v2850_v8, %v2928_v32  ;;  %v459_v8 = vadd.f32 %v2909_v56, %v2868_v10 }
 0x2ba   :  { %v3004_v28 = vpop.f32.mrf.mxu2  ;;  %v708_v53 = vadd.f32 %v2966_v40, %v459_v8  ;;  %v701_v56 = vadd.f32 %v2922_v2, %v488_v23 }
 0x2bb   :  { %3554 = vst [vmem:[#allocation28_spill] sm:$0xff] %v3004_v28  ;;  %v1307_v28 = vld [vmem:[#allocation7 + $0x130] sm:$0xff]  ;;  %v3014_v27 = vpop.f32.mrf.mxu3 }
 0x2bc   :  { %v3006_v37 = vpop.f32.mrf.mxu1  ;;  %1345 = vmatpush.msra.mxu0 %v1307_v28  ;;  %v450_v28 = vadd.f32 %v2898_v48, %v2856_v22  ;;  %v500_v22 = vadd.f32 %v2866_v57, %v2946_v6  ;;  %v468_v57 = vadd.f32 %v2919_v63, %v2888_v1  ;;  %v707_v1 = vadd.f32 %v2930_v42, %v497_v44  ;;  %v3559_v42 = vld [vmem:[#allocation17_spill] sm:$0xff] }
 0x2bd   :  { %3555 = vst [vmem:[#allocation29_spill] sm:$0xff] %v3006_v37  ;;  %v1305_v37 = vld [vmem:[#allocation7 + $0x120] sm:$0xff]  ;;  %v913_v6 = vadd.f32 %v2976_v49, %v708_v53  ;;  %v3573_v53 = vld [vmem:[#allocation22_spill] sm:$0xff] }
 0x2be   :  { %1346 = vmatpush.msra.mxu0 %v1305_v37  ;;  %v491_v37 = vadd.f32 %v2854_v15, %v2932_v52  ;;  %v462_v15 = vadd.f32 %v2913_v59, %v2876_v13  ;;  %v702_v10 = vadd.f32 %v2956_v30, %v450_v28  ;;  %v509_v13 = vadd.f32 %v2886_v16, %v2952_v24  ;;  %v3560_v24 = vld [vmem:[#allocation16_spill] sm:$0xff]  ;;  %v3561_v30 = vld [vmem:[#allocation19_spill] sm:$0xff] }
 0x2bf   :  { %v712_v59 = vadd.f32 %v2974_v47, %v465_v50  ;;  %v714_v16 = vadd.f32 %v2978_v54, %v468_v57  ;;  %v709_v2 = vadd.f32 %v2934_v62, %v500_v22  ;;  %v3562_v62 = vld [vmem:[#allocation21_spill] sm:$0xff]  ;;  %v3566_v54 = vld [vmem:[#allocation20_spill] sm:$0xff]  ;;  %v3572_v57 = vld [vmem:[#allocation27_spill] sm:$0xff] }
 0x2c0   :  { %1347 = vmatpush.msra.mxu0 %v1303_v33  ;;  %v453_v33 = vadd.f32 %v2902_v51, %v2860_v36  ;;  %v503_v36 = vadd.f32 %v2871_v12, %v2948_v18  ;;  %v706_v12 = vadd.f32 %v2962_v38, %v456_v9  ;;  %v703_v0 = vadd.f32 %v2924_v20, %v491_v37  ;;  %v3570_v50 = vld [vmem:[#allocation24_spill] sm:$0xff] }
 0x2c1   :  { %v710_v14 = vadd.f32 %v2970_v45, %v462_v15  ;;  %v907_v63 = vadd.f32 %v2964_v39, %v702_v10  ;;  %v713_v20 = vadd.f32 %v2942_v17, %v506_v43  ;;  %v919_v39 = vadd.f32 %v3562_v62, %v714_v16  ;;  %v3563_v17 = vld [vmem:[#allocation18_spill] sm:$0xff] }
 0x2c2   :  { %v3010_v7 = vpop.f32.mrf.mxu2  ;;  %1348 = vmatpush.msra.mxu0 %v1301_v5  ;;  %v494_v5 = vadd.f32 %v2858_v29, %v2936_v11  ;;  %v700_v29 = vadd.f32 %v2954_v26, %v447_v19  ;;  %v704_v51 = vadd.f32 %v2958_v34, %v453_v33  ;;  %v911_v11 = vadd.f32 %v2972_v46, %v706_v12  ;;  %v3567_v19 = vld [vmem:[#allocation30_spill] sm:$0xff] }
 0x2c3   :  { %3557 = vst [vmem:[#allocation31_spill] sm:$0xff] %v3010_v7  ;;  %v899_v7 = vpop.f32.mrf.mxu3  ;;  %v711_v4 = vadd.f32 %v2938_v3, %v503_v36  ;;  %v915_v21 = vadd.f32 %v3559_v42, %v710_v14  ;;  %v715_v26 = vadd.f32 %v3560_v24, %v509_v13  ;;  %v917_v34 = vadd.f32 %v3561_v30, %v712_v59  ;;  %v1126_v3 = vld [vmem:[%s3530_s3] sm:$0x3]  ;;  %v3571_v10 = vld [vmem:[#allocation26_spill] sm:$0xff]  ;;  %v3574_v59 = vld [vmem:[#allocation25_spill] sm:$0xff] }
 0x2c4   :  { %v3012_v25 = vpop.f32.mrf.mxu1  ;;  %v905_v61 = vadd.f32 %v2960_v35, %v700_v29  ;;  %v705_v32 = vadd.f32 %v2926_v31, %v494_v5  ;;  %v909_v52 = vadd.f32 %v2968_v41, %v704_v51  ;;  %v912_v31 = vadd.f32 %v3000_v60, %v707_v1  ;;  %v3564_v41 = vld [vmem:[#allocation23_spill] sm:$0xff]  ;;  %v3568_v5 = vld [vmem:[#allocation28_spill] sm:$0xff]  ;;  %v3569_v44 = vld [vmem:[#allocation29_spill] sm:$0xff] }
 0x2c5   :  { %3558 = vst [vmem:[#allocation32_spill] sm:$0xff] %v3012_v25  ;;  %v918_v35 = vadd.f32 %v899_v7, %v713_v20  ;;  %v906_v40 = vadd.f32 %v3563_v17, %v701_v56  ;;  %v908_v60 = vadd.f32 %v3566_v54, %v703_v0  ;;  %v914_v23 = vadd.f32 %v3567_v19, %v709_v2 }
 0x2c6   :  { %v910_v45 = vadd.f32 %v3564_v41, %v705_v32  ;;  %v916_v7 = vadd.f32 %v3014_v27, %v711_v4  ;;  %v1129_v33 = vperm.slane %v1126_v3, 1  ;;  %v1116_v8 = vadd.f32 %v3569_v44, %v911_v11 }
 0x2c7   :  { %v1128_v22 = vperm.slane %v1126_v3, 0  ;;  %v1111_v43 = vadd.f32 %v3570_v50, %v906_v40  ;;  %v1113_v51 = vadd.f32 %v3571_v10, %v908_v60  ;;  %v1114_v13 = vadd.f32 %v3572_v57, %v909_v52  ;;  %v1249_v50 = vld [vmem:[#allocation7 + $0xd8] sm:$0xff]  ;;  %v1243_v57 = vld [vmem:[#allocation7 + $0xa8] sm:$0xff] }
 0x2c8   :  { %v1115_v9 = vadd.f32 %v3568_v5, %v910_v45  ;;  %v1110_v27 = vadd.f32 %v3573_v53, %v905_v61  ;;  %v1112_v32 = vadd.f32 %v3574_v59, %v907_v63  ;;  %v1245_v10 = vld [vmem:[#allocation7 + $0xb8] sm:$0xff]  ;;  %v1250_v59 = vld [vmem:[#allocation7 + $0xe0] sm:$0xff] }
 0x2c9   :  { %v1133_v52 = vadd.f32 %v1129_v33, %v1111_v43  ;;  %v1136_v42 = vadd.f32 %v1128_v22, %v1114_v13  ;;  %v1247_v43 = vld [vmem:[#allocation7 + $0xc8] sm:$0xff]  ;;  %v1241_v13 = vld [vmem:[#allocation7 + $0x98] sm:$0xff] }
 0x2ca   :  { %v3016_v58 = vpop.f32.mrf.mxu2  ;;  %v3565_v46 = vld [vmem:[#allocation31_spill] sm:$0xff]  ;;  %v1137_v1 = vadd.f32 %v1129_v33, %v1115_v9 }
 0x2cb   :  { %v902_v38 = vpop.f32.mrf.mxu3  ;;  %v1117_v47 = vadd.f32 %v3565_v46, %v912_v31  ;;  %v1119_v56 = vadd.f32 %v3016_v58, %v914_v23  ;;  %v1152_v40 = vmax.f32 %v1136_v42, 0.0  ;;  %v1237_v53 = vld [vmem:[#allocation7 + $0x78] sm:$0xff]  ;;  %v2377_v42 = vld [vmem:[%s3531_s4 + $0x28] sm:$0xff] }
 0x2cc   :  { %v3018_v55 = vpop.f32.mrf.mxu1  ;;  %v920_v37 = vadd.f32 %v902_v38, %v715_v26  ;;  %v1153_v30 = vmax.f32 %v1137_v1, 0.0  ;;  %v1248_v1 = vld [vmem:[#allocation7 + $0xd0] sm:$0xff] }
 0x2cd   :  { %v1139_v12 = vadd.f32 %v1129_v33, %v1117_v47  ;;  %v1120_v0 = vadd.f32 %v3018_v55, %v915_v21  ;;  %v1141_v24 = vadd.f32 %v1129_v33, %v1119_v56  ;;  %v1134_v21 = vadd.f32 %v1128_v22, %v1112_v32  ;;  %v1235_v56 = vld [vmem:[#allocation7 + $0x68] sm:$0xff] }
 0x2ce   :  { %v1166_v60 = vmax.f32 %v1152_v40, %v1153_v30  ;;  %v1231_v32 = vld [vmem:[#allocation7 + $0x48] sm:$0xff]  ;;  %v1226_v30 = vld [vmem:[#allocation7 + $0x20] sm:$0xff] }
 0x2cf   :  { %v1155_v61 = vmax.f32 %v1139_v12, 0.0  ;;  %v1142_v58 = vadd.f32 %v1128_v22, %v1120_v0  ;;  %v1157_v45 = vmax.f32 %v1141_v24, 0.0  ;;  %v1150_v54 = vmax.f32 %v1134_v21, 0.0  ;;  %v1239_v12 = vld [vmem:[#allocation7 + $0x88] sm:$0xff]  ;;  %v1233_v0 = vld [vmem:[#allocation7 + $0x58] sm:$0xff]  ;;  %v1234_v24 = vld [vmem:[#allocation7 + $0x60] sm:$0xff] }
 0x2d0   :  { %v1228_v21 = vld [vmem:[#allocation7 + $0x30] sm:$0xff]  ;;  %v1517_v40 = vld [vmem:[#allocation7 + $0x2a8] sm:$0xff] }
 0x2d1   :  { %v1158_v3 = vmax.f32 %v1142_v58, 0.0  ;;  %v1232_v58 = vld [vmem:[#allocation7 + $0x50] sm:$0xff] }
 0x2d2   :  { %v1101_v25 = vpop.f32.mrf.mxu2 }
 0x2d3   :  { %v1121_v15 = vadd.f32 %v1101_v25, %v916_v7  ;;  %v1138_v25 = vadd.f32 %v1128_v22, %v1116_v8 }
 0x2d4   :  { %v1063_v48 = vpop.f32.mrf.mxu1 }
 0x2d5   :  { %v1122_v36 = vadd.f32 %v1063_v48, %v917_v34  ;;  %v3575_v48 = vld [vmem:[#allocation32_spill] sm:$0xff]  ;;  %v1143_v20 = vadd.f32 %v1129_v33, %v1121_v15  ;;  %v1154_v63 = vmax.f32 %v1138_v25, 0.0  ;;  %v1253_v15 = vld [vmem:[#allocation7 + $0xf8] sm:$0xff] }
 0x2d6   :  { %v1118_v16 = vadd.f32 %v3575_v48, %v913_v6  ;;  %v1229_v25 = vld [vmem:[#allocation7 + $0x38] sm:$0xff]  ;;  %v1246_v48 = vld [vmem:[#allocation7 + $0xc0] sm:$0xff] }
 0x2d7   :  { %v1144_v11 = vadd.f32 %v1128_v22, %v1122_v36  ;;  %v1167_v41 = vmax.f32 %v1154_v63, %v1155_v61  ;;  %v1177_v36 = vld [vmem:[%s3531_s4 + $0x8] sm:$0xff]  ;;  %v1236_v61 = vld [vmem:[#allocation7 + $0x70] sm:$0xff] }
 0x2d8   :  { %v1140_v34 = vadd.f32 %v1128_v22, %v1118_v16  ;;  %v2376_v16 = vld [vmem:[%s3531_s4 + $0x20] sm:$0xff]  ;;  %v1224_v63 = vld [vmem:[#allocation7 + $0x10] sm:$0xff] }
 0x2d9   :  { %v1160_v38 = vmax.f32 %v1144_v11, 0.0  ;;  %v1225_v11 = vld [vmem:[#allocation7 + $0x18] sm:$0xff] }
 0x2da   :  { %v1104_v18 = vpop.f32.mrf.mxu2  ;;  %v1156_v19 = vmax.f32 %v1140_v34, 0.0  ;;  %v1222_v34 = vld [vmem:[#allocation7] sm:$0xff] }
 0x2db   :  { %v1123_v28 = vadd.f32 %v1104_v18, %v918_v35  ;;  %v1135_v18 = vadd.f32 %v1129_v33, %v1113_v51  ;;  %v1159_v35 = vmax.f32 %v1143_v20, 0.0  ;;  %v1178_v51 = vld [vmem:[%s3531_s4 + $0x10] sm:$0xff] }
 0x2dc   :  { %v1066_v49 = vpop.f32.mrf.mxu1  ;;  %v1244_v20 = vld [vmem:[#allocation7 + $0xb0] sm:$0xff] }
 0x2dd   :  { %v1124_v29 = vadd.f32 %v1066_v49, %v919_v39  ;;  %v1145_v14 = vadd.f32 %v1129_v33, %v1123_v28  ;;  %v1132_v39 = vadd.f32 %v1128_v22, %v1110_v27  ;;  %v1151_v17 = vmax.f32 %v1135_v18, 0.0  ;;  %v1179_v27 = vld [vmem:[%s3531_s4 + $0x18] sm:$0xff]  ;;  %v1238_v18 = vld [vmem:[#allocation7 + $0x80] sm:$0xff] }
 0x2de   :  { %v1149_v49 = vmax.f32 %v1133_v52, 0.0  ;;  %v1169_v23 = vmax.f32 %v1158_v3, %v1159_v35  ;;  %v1240_v52 = vld [vmem:[#allocation7 + $0x90] sm:$0xff]  ;;  %v2379_v35 = vld [vmem:[%s3531_s4 + $0x38] sm:$0xff] }
 0x2df   :  { %v1146_v4 = vadd.f32 %v1128_v22, %v1124_v29  ;;  %v1161_v26 = vmax.f32 %v1145_v14, 0.0  ;;  %v1148_v28 = vmax.f32 %v1132_v39, 0.0  ;;  %v1176_v22 = vld [vmem:[%s3531_s4] sm:$0xff]  ;;  %v1251_v29 = vld [vmem:[#allocation7 + $0xe8] sm:$0xff]  ;;  %v1252_v14 = vld [vmem:[#allocation7 + $0xf0] sm:$0xff] }
 0x2e0   :  { %1391 = vmatpush.msra.mxu2 %v1252_v14  ;;  %v1521_v39 = vld [vmem:[#allocation7 + $0x2c8] sm:$0xff]  ;;  %v1511_v3 = vld [vmem:[#allocation7 + $0x278] sm:$0xff] }
 0x2e1   :  { %v1162_v6 = vmax.f32 %v1146_v4, 0.0  ;;  %v1170_v46 = vmax.f32 %v1160_v38, %v1161_v26  ;;  %v1164_v9 = vmax.f32 %v1148_v28, %v1149_v49  ;;  %v1242_v4 = vld [vmem:[#allocation7 + $0xa0] sm:$0xff]  ;;  %v1527_v38 = vld [vmem:[#allocation7 + $0x2f8] sm:$0xff]  ;;  %v1505_v49 = vld [vmem:[#allocation7 + $0x248] sm:$0xff] }
 0x2e2   :  { %v1107_v2 = vpop.f32.mrf.mxu2  ;;  %1392 = vmatpush.msra.mxu2 %v1250_v59  ;;  %v1230_v26 = vld [vmem:[#allocation7 + $0x40] sm:$0xff]  ;;  %v1332_v28 = vld [vmem:[#allocation7 + $0x1f8] sm:$0xff] }
 0x2e3   :  { %v1125_v31 = vadd.f32 %v1107_v2, %v920_v37  ;;  %v1165_v37 = vmax.f32 %v1150_v54, %v1151_v17  ;;  %v3098_v5 = vmax.f32 %v1166_v60, %v1170_v46  ;;  %v1227_v2 = vld [vmem:[#allocation7 + $0x28] sm:$0xff]  ;;  %v1519_v17 = vld [vmem:[#allocation7 + $0x2b8] sm:$0xff]  ;;  %1362 = vmatpush.msra.mxu1 %v1332_v28  ;;  %v1645_v28 = vld [vmem:[#allocation7 + $0x320] sm:$0xff] }
 0x2e4   :  { %1393 = vmatpush.msra.mxu2 %v1248_v1  ;;  %v1509_v46 = vld [vmem:[#allocation7 + $0x268] sm:$0xff]  ;;  %v1503_v54 = vld [vmem:[#allocation7 + $0x238] sm:$0xff] }
 0x2e5   :  { %v1147_v55 = vadd.f32 %v1129_v33, %v1125_v31  ;;  %v1168_v33 = vmax.f32 %v1156_v19, %v1157_v45  ;;  %v3102_v44 = vmax.f32 %v1165_v37, %v1169_v23  ;;  %v1223_v31 = vld [vmem:[#allocation7 + $0x8] sm:$0xff]  ;;  %v1499_v19 = vld [vmem:[#allocation7 + $0x218] sm:$0xff] }
 0x2e6   :  { %1394 = vmatpush.msra.mxu2 %v1246_v48  ;;  %v1513_v45 = vld [vmem:[#allocation7 + $0x288] sm:$0xff]  ;;  %v2395_v1 = vld [vmem:[%s3531_s4 + $0x78] sm:$0xff]  ;;  %v2384_v48 = vld [vmem:[%s3531_s4 + $0x40] sm:$0xff] }
 0x2e7   :  { %v1163_v62 = vmax.f32 %v1147_v55, 0.0  ;;  %v3106_v8 = vmax.f32 %v1164_v9, %v1168_v33  ;;  %v2378_v55 = vld [vmem:[%s3531_s4 + $0x30] sm:$0xff]  ;;  %v1501_v60 = vld [vmem:[#allocation7 + $0x228] sm:$0xff]  ;;  %v1328_v33 = vld [vmem:[#allocation7 + $0x1d8] sm:$0xff] }
 0x2e8   :  { %1395 = vmatpush.msra.mxu2 %v1244_v20  ;;  %v1497_v23 = vld [vmem:[#allocation7 + $0x208] sm:$0xff]  ;;  %v2387_v20 = vld [vmem:[%s3531_s4 + $0x58] sm:$0xff] }
 0x2e9   :  { %v1171_v47 = vmax.f32 %v1162_v6, %v1163_v62  ;;  %v1525_v6 = vld [vmem:[#allocation7 + $0x2e8] sm:$0xff]  ;;  %v1523_v62 = vld [vmem:[#allocation7 + $0x2d8] sm:$0xff] }
 0x2ea   :  { %1396 = vmatpush.msra.mxu2 %v1242_v4  ;;  %v1330_v37 = vld [vmem:[#allocation7 + $0x1e8] sm:$0xff]  ;;  %v1524_v4 = vld [vmem:[#allocation7 + $0x2e0] sm:$0xff] }
 0x2eb   :  { %v3096_v7 = vmax.f32 %v1167_v41, %v1171_v47  ;;  %v1515_v41 = vld [vmem:[#allocation7 + $0x298] sm:$0xff]  ;;  %1363 = vmatpush.msra.mxu1 %v1330_v37  ;;  %v1326_v9 = vld [vmem:[#allocation7 + $0x1c8] sm:$0xff] }
 0x2ec   :  { %1397 = vmatpush.msra.mxu2 %v1240_v52  ;;  %v1507_v47 = vld [vmem:[#allocation7 + $0x258] sm:$0xff]  ;;  %v1669_v52 = vld [vmem:[#allocation7 + $0x3e0] sm:$0xff] }
 0x2ed   :  { %1205 = vmatpush.msrb.mxu3 %v3096_v7  ;;  %1478 = vmatpush.msrb.mxu0 %v3096_v7 }
 0x2ee   :  { %1398 = vmatpush.msra.mxu2 %v1238_v18  ;;  %1364 = vmatpush.msra.mxu1 %v1328_v33  ;;  %v1522_v18 = vld [vmem:[#allocation7 + $0x2d0] sm:$0xff] }
 0x2ef   :  { %1206 = vmatpush.msrb.mxu3 %v3098_v5  ;;  %1479 = vmatpush.msrb.mxu0 %v3098_v5 }
 0x2f0   :  { %1399 = vmatpush.msra.mxu2 %v1236_v61  ;;  %1365 = vmatpush.msra.mxu1 %v1326_v9  ;;  %v1520_v61 = vld [vmem:[#allocation7 + $0x2c0] sm:$0xff] }
 0x2f1   :  { %1207 = vmatpush.msrb.mxu3 %v3102_v44  ;;  %1480 = vmatpush.msrb.mxu0 %v3102_v44 }
 0x2f2   :  { %1400 = vmatpush.msra.mxu2 %v1234_v24  ;;  %v1667_v24 = vld [vmem:[#allocation7 + $0x3d0] sm:$0xff] }
 0x2f3   :  { %1208 = vmatpush.msrb.mxu3 %v3106_v8  ;;  %1481 = vmatpush.msrb.mxu0 %v3106_v8 }
 0x2f4   :  { %2372 = vmatmul.msk.f32.vlgmr.msrb.gmra.mxu3 %vm1180_vm1, %v1176_v22  ;;  %1401 = vmatpush.msra.mxu2 %v1232_v58  ;;  %v1324_v22 = vld [vmem:[#allocation7 + $0x1b8] sm:$0xff]  ;;  %v1518_v58 = vld [vmem:[#allocation7 + $0x2b0] sm:$0xff] }
 0x2f5   :  { %1283 = vmatpush.msra.mxu3 %v3096_v7  ;;  %1366 = vmatpush.msra.mxu1 %v1324_v22  ;;  %v1496_v22 = vld [vmem:[#allocation7 + $0x200] sm:$0xff] }
 0x2f6   :  { %1402 = vmatpush.msra.mxu2 %v1230_v26  ;;  %v1665_v26 = vld [vmem:[#allocation7 + $0x3c0] sm:$0xff] }
 0x2f7   :  { %1284 = vmatpush.msra.mxu3 %v3098_v5 }
 0x2f8   :  { %1403 = vmatpush.msra.mxu2 %v1228_v21  ;;  %v1663_v21 = vld [vmem:[#allocation7 + $0x3b0] sm:$0xff] }
 0x2f9   :  { %1285 = vmatpush.msra.mxu3 %v3102_v44 }
 0x2fa   :  { %1404 = vmatpush.msra.mxu2 %v1226_v30  ;;  %v1514_v30 = vld [vmem:[#allocation7 + $0x290] sm:$0xff] }
 0x2fb   :  { %1286 = vmatpush.msra.mxu3 %v3106_v8 }
 0x2fc   :  { %2373 = vmatmul.msk.f32.gmra.mxu3 %vm1180_vm1, %v1177_v36  ;;  %1405 = vmatpush.msra.mxu2 %v1224_v63  ;;  %v1320_v36 = vld [vmem:[#allocation7 + $0x198] sm:$0xff]  ;;  %v1661_v63 = vld [vmem:[#allocation7 + $0x3a0] sm:$0xff] }
 0x2fd   :  { %1420 = vmatpush.msrb.mxu3 %v1253_v15  ;;  %v1322_v15 = vld [vmem:[#allocation7 + $0x1a8] sm:$0xff] }
 0x2fe   :  { %1406 = vmatpush.msra.mxu2 %v1222_v34  ;;  %1367 = vmatpush.msra.mxu1 %v1322_v15  ;;  %v1643_v15 = vld [vmem:[#allocation7 + $0x310] sm:$0xff] }
 0x2ff   :  { %1421 = vmatpush.msrb.mxu3 %v1251_v29  ;;  %v1318_v29 = vld [vmem:[#allocation7 + $0x188] sm:$0xff] }
 0x300   :  { %1557 = vmatpush.msrb.mxu2 %v1527_v38  ;;  %1368 = vmatpush.msra.mxu1 %v1320_v36  ;;  %v1659_v38 = vld [vmem:[#allocation7 + $0x390] sm:$0xff] }
 0x301   :  { %1422 = vmatpush.msrb.mxu3 %v1249_v50  ;;  %v1316_v50 = vld [vmem:[#allocation7 + $0x178] sm:$0xff] }
 0x302   :  { %1558 = vmatpush.msrb.mxu2 %v1525_v6  ;;  %1369 = vmatpush.msra.mxu1 %v1318_v29  ;;  %v1510_v6 = vld [vmem:[#allocation7 + $0x270] sm:$0xff] }
 0x303   :  { %1423 = vmatpush.msrb.mxu3 %v1247_v43  ;;  %v1314_v43 = vld [vmem:[#allocation7 + $0x168] sm:$0xff] }
 0x304   :  { %2374 = vmatmul.msk.f32.gmra.mxu3 %vm1180_vm1, %v1178_v51  ;;  %1559 = vmatpush.msrb.mxu2 %v1523_v62  ;;  %v1310_v51 = vld [vmem:[#allocation7 + $0x148] sm:$0xff]  ;;  %v1657_v62 = vld [vmem:[#allocation7 + $0x380] sm:$0xff] }
 0x305   :  { %1424 = vmatpush.msrb.mxu3 %v1245_v10  ;;  %1370 = vmatpush.msra.mxu1 %v1316_v50  ;;  %v1312_v10 = vld [vmem:[#allocation7 + $0x158] sm:$0xff]  ;;  %v1641_v50 = vld [vmem:[#allocation7 + $0x300] sm:$0xff] }
 0x306   :  { %1560 = vmatpush.msrb.mxu2 %v1521_v39  ;;  %v1508_v39 = vld [vmem:[#allocation7 + $0x260] sm:$0xff] }
 0x307   :  { %1425 = vmatpush.msrb.mxu3 %v1243_v57  ;;  %1371 = vmatpush.msra.mxu1 %v1314_v43  ;;  %v1308_v57 = vld [vmem:[#allocation7 + $0x138] sm:$0xff] }
 0x308   :  { %1561 = vmatpush.msrb.mxu2 %v1519_v17  ;;  %v1655_v17 = vld [vmem:[#allocation7 + $0x370] sm:$0xff]  ;;  %v1672_v43 = vld [vmem:[#allocation7 + $0x3f8] sm:$0xff] }
 0x309   :  { %1426 = vmatpush.msrb.mxu3 %v1241_v13  ;;  %1372 = vmatpush.msra.mxu1 %v1312_v10  ;;  %v1306_v13 = vld [vmem:[#allocation7 + $0x128] sm:$0xff] }
 0x30a   :  { %1562 = vmatpush.msrb.mxu2 %v1517_v40  ;;  %v1506_v40 = vld [vmem:[#allocation7 + $0x250] sm:$0xff]  ;;  %v1670_v10 = vld [vmem:[#allocation7 + $0x3e8] sm:$0xff] }
 0x30b   :  { %1427 = vmatpush.msrb.mxu3 %v1239_v12  ;;  %1373 = vmatpush.msra.mxu1 %v1310_v51  ;;  %v1304_v12 = vld [vmem:[#allocation7 + $0x118] sm:$0xff] }
 0x30c   :  { %2375 = vmatmul.msk.f32.gmra.mxu3 %vm1180_vm1, %v1179_v27  ;;  %1563 = vmatpush.msrb.mxu2 %v1515_v41  ;;  %v1302_v27 = vld [vmem:[#allocation7 + $0x108] sm:$0xff]  ;;  %v1653_v41 = vld [vmem:[#allocation7 + $0x360] sm:$0xff]  ;;  %v1668_v51 = vld [vmem:[#allocation7 + $0x3d8] sm:$0xff] }
 0x30d   :  { %1428 = vmatpush.msrb.mxu3 %v1237_v53  ;;  %1374 = vmatpush.msra.mxu1 %v1308_v57 }
 0x30e   :  { %1564 = vmatpush.msrb.mxu2 %v1513_v45 }
 0x30f   :  { %1429 = vmatpush.msrb.mxu3 %v1235_v56  ;;  %1375 = vmatpush.msra.mxu1 %v1306_v13 }
 0x310   :  { %1565 = vmatpush.msrb.mxu2 %v1511_v3  ;;  %v1504_v3 = vld [vmem:[#allocation7 + $0x240] sm:$0xff] }
 0x311   :  { %1430 = vmatpush.msrb.mxu3 %v1233_v0  ;;  %1376 = vmatpush.msra.mxu1 %v1304_v12 }
 0x312   :  { %1566 = vmatpush.msrb.mxu2 %v1509_v46  ;;  %v1651_v46 = vld [vmem:[#allocation7 + $0x350] sm:$0xff] }
 0x313   :  { %1431 = vmatpush.msrb.mxu3 %v1231_v32  ;;  %1377 = vmatpush.msra.mxu1 %v1302_v27  ;;  %v1666_v27 = vld [vmem:[#allocation7 + $0x3c8] sm:$0xff] }
 0x314   :  { %2380 = vmatmul.msk.f32.vlgmr.msra.gmra.mxu3 %vm1180_vm1, %v2376_v16  ;;  %1567 = vmatpush.msrb.mxu2 %v1507_v47  ;;  %v2385_v16 = vld [vmem:[%s3531_s4 + $0x48] sm:$0xff]  ;;  %v1502_v47 = vld [vmem:[#allocation7 + $0x230] sm:$0xff] }
 0x315   :  { %1432 = vmatpush.msrb.mxu3 %v1229_v25 }
 0x316   :  { %1568 = vmatpush.msrb.mxu2 %v1505_v49  ;;  %v1649_v49 = vld [vmem:[#allocation7 + $0x340] sm:$0xff] }
 0x317   :  { %1433 = vmatpush.msrb.mxu3 %v1227_v2  ;;  %v2386_v2 = vld [vmem:[%s3531_s4 + $0x50] sm:$0xff] }
 0x318   :  { %1569 = vmatpush.msrb.mxu2 %v1503_v54  ;;  %v1500_v54 = vld [vmem:[#allocation7 + $0x220] sm:$0xff] }
 0x319   :  { %1434 = vmatpush.msrb.mxu3 %v1225_v11  ;;  %v1526_v11 = vld [vmem:[#allocation7 + $0x2f0] sm:$0xff] }
 0x31a   :  { %1570 = vmatpush.msrb.mxu2 %v1501_v60  ;;  %1528 = vmatpush.msrb.mxu1 %v1526_v11  ;;  %v1647_v60 = vld [vmem:[#allocation7 + $0x330] sm:$0xff] }
 0x31b   :  { %1435 = vmatpush.msrb.mxu3 %v1223_v31  ;;  %v1671_v31 = vld [vmem:[#allocation7 + $0x3f0] sm:$0xff] }
 0x31c   :  { %2381 = vmatmul.msk.f32.gmra.mxu3 %vm1180_vm1, %v2377_v42  ;;  %1571 = vmatpush.msrb.mxu2 %v1499_v19 }
 0x31d   :  { %1623 = vmatpush.msra.mxu3 %v3096_v7  ;;  %1529 = vmatpush.msrb.mxu1 %v1524_v4 }
 0x31e   :  { %1572 = vmatpush.msrb.mxu2 %v1497_v23  ;;  %v1498_v23 = vld [vmem:[#allocation7 + $0x210] sm:$0xff] }
 0x31f   :  { %1624 = vmatpush.msra.mxu3 %v3098_v5  ;;  %1530 = vmatpush.msrb.mxu1 %v1522_v18  ;;  %v1646_v18 = vld [vmem:[#allocation7 + $0x328] sm:$0xff] }
 0x321   :  { %1625 = vmatpush.msra.mxu3 %v3102_v44  ;;  %1531 = vmatpush.msrb.mxu1 %v1520_v61 }
 0x323   :  { %1626 = vmatpush.msra.mxu3 %v3106_v8  ;;  %1532 = vmatpush.msrb.mxu1 %v1518_v58 }
 0x324   :  { %2382 = vmatmul.msk.f32.gmra.mxu3 %vm1180_vm1, %v2378_v55  ;;  %v1516_v55 = vld [vmem:[#allocation7 + $0x2a0] sm:$0xff] }
 0x325   :  { %1533 = vmatpush.msrb.mxu1 %v1516_v55 }
 0x327   :  { %1534 = vmatpush.msrb.mxu1 %v1514_v30  ;;  %v2400_v30 = vld [vmem:[%s3531_s4 + $0x80] sm:$0xff] }
 0x32c   :  { %2383 = vmatmul.msk.f32.gmra.mxu3 %vm1180_vm1, %v2379_v35  ;;  %v1512_v35 = vld [vmem:[#allocation7 + $0x280] sm:$0xff] }
 0x32d   :  { %1535 = vmatpush.msrb.mxu1 %v1512_v35  ;;  %v2403_v35 = vld [vmem:[%s3531_s4 + $0x98] sm:$0xff] }
 0x32f   :  { %1536 = vmatpush.msrb.mxu1 %v1510_v6  ;;  %v1817_v6 = vld [vmem:[#allocation7 + $0x4f8] sm:$0xff] }
 0x331   :  { %1537 = vmatpush.msrb.mxu1 %v1508_v39  ;;  %v1815_v39 = vld [vmem:[#allocation7 + $0x4e8] sm:$0xff] }
 0x333   :  { %1538 = vmatpush.msrb.mxu1 %v1506_v40  ;;  %v1813_v40 = vld [vmem:[#allocation7 + $0x4d8] sm:$0xff] }
 0x335   :  { %1539 = vmatpush.msrb.mxu1 %v1504_v3  ;;  %v1808_v3 = vld [vmem:[#allocation7 + $0x4b0] sm:$0xff] }
 0x337   :  { %1540 = vmatpush.msrb.mxu1 %v1502_v47  ;;  %v1806_v47 = vld [vmem:[#allocation7 + $0x4a0] sm:$0xff] }
 0x339   :  { %1541 = vmatpush.msrb.mxu1 %v1500_v54  ;;  %v1804_v54 = vld [vmem:[#allocation7 + $0x490] sm:$0xff] }
 0x33b   :  { %1542 = vmatpush.msrb.mxu1 %v1498_v23  ;;  %v1803_v23 = vld [vmem:[#allocation7 + $0x488] sm:$0xff] }
 0x33d   :  { %1543 = vmatpush.msrb.mxu1 %v1496_v22  ;;  %v1799_v22 = vld [vmem:[#allocation7 + $0x468] sm:$0xff] }
 0x377   :  { %v1210_v53 = vpop.f32.mrf.mxu3 }
 0x378   :  { %1407 = vmatmul.f32.vlgmr.msra.gmra.mxu2 %v1210_v53  ;;  %1436 = vmatmul.f32.vlgmr.msrb.gmra.mxu3 %v1210_v53 }
 0x379   :  { %1768 = vmatpush.msra.mxu2 %v3096_v7  ;;  %v2392_v7 = vld [vmem:[%s3531_s4 + $0x60] sm:$0xff] }
 0x37b   :  { %1769 = vmatpush.msra.mxu2 %v3098_v5  ;;  %v2393_v5 = vld [vmem:[%s3531_s4 + $0x68] sm:$0xff] }
 0x37d   :  { %1770 = vmatpush.msra.mxu2 %v3102_v44 }
 0x37f   :  { %1771 = vmatpush.msra.mxu2 %v3106_v8  ;;  %v1213_v56 = vpop.f32.mrf.mxu3  ;;  %v2394_v8 = vld [vmem:[%s3531_s4 + $0x70] sm:$0xff] }
 0x380   :  { %1410 = vmatmul.f32.gmra.mxu2 %v1213_v56  ;;  %1439 = vmatmul.f32.gmra.mxu3 %v1213_v56 }
 0x387   :  { %v1216_v0 = vpop.f32.mrf.mxu3 }
 0x388   :  { %1413 = vmatmul.f32.gmra.mxu2 %v1216_v0  ;;  %1442 = vmatmul.f32.gmra.mxu3 %v1216_v0 }
 0x38f   :  { %v1219_v14 = vpop.f32.mrf.mxu3 }
 0x390   :  { %1416 = vmatmul.f32.gmra.mxu2 %v1219_v14  ;;  %1445 = vmatmul.f32.gmra.mxu3 %v1219_v14  ;;  %v1664_v14 = vld [vmem:[#allocation7 + $0x3b8] sm:$0xff] }
 0x397   :  { %v1288_v59 = vpop.f32.mrf.mxu3 }
 0x398   :  { %1349 = vmatmul.f32.vlgmr.msra.gmra.mxu0 %v1288_v59  ;;  %1378 = vmatmul.f32.vlgmr.msra.gmra.mxu1 %v1288_v59  ;;  %v1660_v59 = vld [vmem:[#allocation7 + $0x398] sm:$0xff] }
 0x399   :  { %2396 = vmatmul.msk.f32.vlgmr.msra.gmra.mxu3 %vm1180_vm1, %v2392_v7  ;;  %1673 = vmatpush.msra.mxu0 %v1671_v31  ;;  %v1662_v7 = vld [vmem:[#allocation7 + $0x3a8] sm:$0xff] }
 0x39a   :  { %1702 = vmatpush.msra.mxu1 %v1672_v43  ;;  %v1650_v31 = vld [vmem:[#allocation7 + $0x348] sm:$0xff] }
 0x39b   :  { %1674 = vmatpush.msra.mxu0 %v1669_v52  ;;  %v1648_v52 = vld [vmem:[#allocation7 + $0x338] sm:$0xff] }
 0x39c   :  { %1703 = vmatpush.msra.mxu1 %v1670_v10  ;;  %v1794_v10 = vld [vmem:[#allocation7 + $0x440] sm:$0xff] }
 0x39d   :  { %1675 = vmatpush.msra.mxu0 %v1667_v24  ;;  %v1642_v24 = vld [vmem:[#allocation7 + $0x308] sm:$0xff] }
 0x39e   :  { %1704 = vmatpush.msra.mxu1 %v1668_v51  ;;  %v1795_v51 = vld [vmem:[#allocation7 + $0x448] sm:$0xff] }
 0x39f   :  { %v1291_v44 = vpop.f32.mrf.mxu3  ;;  %1676 = vmatpush.msra.mxu0 %v1665_v26 }
 0x3a0   :  { %1352 = vmatmul.f32.gmra.mxu0 %v1291_v44  ;;  %1381 = vmatmul.f32.gmra.mxu1 %v1291_v44 }
 0x3a1   :  { %2397 = vmatmul.msk.f32.gmra.mxu3 %vm1180_vm1, %v2393_v5  ;;  %1677 = vmatpush.msra.mxu0 %v1663_v21 }
 0x3a2   :  { %1705 = vmatpush.msra.mxu1 %v1666_v27  ;;  %v1788_v27 = vld [vmem:[#allocation7 + $0x410] sm:$0xff] }
 0x3a3   :  { %1678 = vmatpush.msra.mxu0 %v1661_v63  ;;  %v2401_v63 = vld [vmem:[%s3531_s4 + $0x88] sm:$0xff] }
 0x3a4   :  { %1706 = vmatpush.msra.mxu1 %v1664_v14  ;;  %v1789_v14 = vld [vmem:[#allocation7 + $0x418] sm:$0xff] }
 0x3a5   :  { %1679 = vmatpush.msra.mxu0 %v1659_v38  ;;  %v1816_v38 = vld [vmem:[#allocation7 + $0x4f0] sm:$0xff] }
 0x3a6   :  { %1707 = vmatpush.msra.mxu1 %v1662_v7  ;;  %1818 = vmatpush.msrb.mxu3 %v1816_v38  ;;  %v1946_v38 = vld [vmem:[%s3535_s8 + $0x48] sm:$0xff] }
 0x3a7   :  { %v1294_v32 = vpop.f32.mrf.mxu3  ;;  %1680 = vmatpush.msra.mxu0 %v1657_v62  ;;  %v1814_v62 = vld [vmem:[#allocation7 + $0x4e0] sm:$0xff] }
 0x3a8   :  { %1355 = vmatmul.f32.gmra.mxu0 %v1294_v32  ;;  %1384 = vmatmul.f32.gmra.mxu1 %v1294_v32 }
 0x3a9   :  { %2398 = vmatmul.msk.f32.gmra.mxu3 %vm1180_vm1, %v2394_v8  ;;  %1681 = vmatpush.msra.mxu0 %v1655_v17  ;;  %v1812_v17 = vld [vmem:[#allocation7 + $0x4d0] sm:$0xff] }
 0x3aa   :  { %1708 = vmatpush.msra.mxu1 %v1660_v59  ;;  %1819 = vmatpush.msrb.mxu3 %v1814_v62  ;;  %v1786_v59 = vld [vmem:[#allocation7 + $0x400] sm:$0xff] }
 0x3ab   :  { %1682 = vmatpush.msra.mxu0 %v1653_v41  ;;  %v1810_v41 = vld [vmem:[#allocation7 + $0x4c0] sm:$0xff] }
 0x3ac   :  { %1820 = vmatpush.msrb.mxu3 %v1812_v17  ;;  %v1944_v17 = vld [vmem:[%s3535_s8 + $0x38] sm:$0xff] }
 0x3ad   :  { %1683 = vmatpush.msra.mxu0 %v1651_v46  ;;  %v1809_v46 = vld [vmem:[#allocation7 + $0x4b8] sm:$0xff] }
 0x3ae   :  { %1821 = vmatpush.msrb.mxu3 %v1810_v41  ;;  %v1942_v41 = vld [vmem:[%s3535_s8 + $0x28] sm:$0xff] }
 0x3af   :  { %v1297_v25 = vpop.f32.mrf.mxu3  ;;  %1684 = vmatpush.msra.mxu0 %v1649_v49  ;;  %v1807_v49 = vld [vmem:[#allocation7 + $0x4a8] sm:$0xff] }
 0x3b0   :  { %1358 = vmatmul.f32.gmra.mxu0 %v1297_v25  ;;  %1387 = vmatmul.f32.gmra.mxu1 %v1297_v25 }
 0x3b1   :  { %2399 = vmatmul.msk.f32.gmra.mxu3 %vm1180_vm1, %v2395_v1  ;;  %1685 = vmatpush.msra.mxu0 %v1647_v60  ;;  %v1658_v1 = vld [vmem:[#allocation7 + $0x388] sm:$0xff]  ;;  %v1805_v60 = vld [vmem:[#allocation7 + $0x498] sm:$0xff] }
 0x3b2   :  { %1709 = vmatpush.msra.mxu1 %v1658_v1  ;;  %1822 = vmatpush.msrb.mxu3 %v1808_v3  ;;  %v1884_v3 = vld [vmem:[%s3533_s6] sm:$0x3] }
 0x3b3   :  { %1686 = vmatpush.msra.mxu0 %v1645_v28  ;;  %v1800_v28 = vld [vmem:[#allocation7 + $0x470] sm:$0xff] }
 0x3b4   :  { %1823 = vmatpush.msrb.mxu3 %v1806_v47 }
 0x3b5   :  { %1687 = vmatpush.msra.mxu0 %v1643_v15  ;;  %v1796_v15 = vld [vmem:[#allocation7 + $0x450] sm:$0xff] }
 0x3b6   :  { %1824 = vmatpush.msrb.mxu3 %v1804_v54 }
 0x3b7   :  { %1688 = vmatpush.msra.mxu0 %v1641_v50  ;;  %v1797_v50 = vld [vmem:[#allocation7 + $0x458] sm:$0xff] }
 0x3b8   :  { %2388 = vmatmul.msk.f32.vlgmr.msrb.gmra.mxu0 %vm1180_vm1, %v2384_v48 }
 0x3b9   :  { %1847 = vmatpush.msrb.mxu0 %v1817_v6 }
 0x3bb   :  { %1848 = vmatpush.msrb.mxu0 %v1815_v39  ;;  %v1945_v39 = vld [vmem:[%s3535_s8 + $0x40] sm:$0xff] }
 0x3bd   :  { %1849 = vmatpush.msrb.mxu0 %v1813_v40  ;;  %v1943_v40 = vld [vmem:[%s3535_s8 + $0x30] sm:$0xff] }
 0x3c0   :  { %2389 = vmatmul.msk.f32.gmra.mxu0 %vm1180_vm1, %v2385_v16  ;;  %v1656_v16 = vld [vmem:[#allocation7 + $0x378] sm:$0xff] }
 0x3c1   :  { %1710 = vmatpush.msra.mxu1 %v1656_v16 }
 0x3c8   :  { %2390 = vmatmul.msk.f32.gmra.mxu0 %vm1180_vm1, %v2386_v2  ;;  %v1654_v2 = vld [vmem:[#allocation7 + $0x368] sm:$0xff] }
 0x3c9   :  { %1711 = vmatpush.msra.mxu1 %v1654_v2 }
 0x3d0   :  { %2391 = vmatmul.msk.f32.gmra.mxu0 %vm1180_vm1, %v2387_v20  ;;  %v1652_v20 = vld [vmem:[#allocation7 + $0x358] sm:$0xff] }
 0x3d1   :  { %1712 = vmatpush.msra.mxu1 %v1652_v20 }
 0x3d3   :  { %1713 = vmatpush.msra.mxu1 %v1650_v31 }
 0x3d5   :  { %1714 = vmatpush.msra.mxu1 %v1648_v52 }
 0x3d7   :  { %1715 = vmatpush.msra.mxu1 %v1646_v18 }
 0x3fb   :  { %v1437_v42 = vpop.f32.mrf.mxu3  ;;  %v1408_v19 = vpop.f32.mrf.mxu2 }
 0x403   :  { %v1440_v34 = vpop.f32.mrf.mxu3  ;;  %v1411_v57 = vpop.f32.mrf.mxu2 }
 0x40b   :  { %v1443_v45 = vpop.f32.mrf.mxu3  ;;  %v1414_v5 = vpop.f32.mrf.mxu2 }
 0x413   :  { %v3188_v37 = vpop.f32.mrf.mxu3  ;;  %v3220_v43 = vpop.f32.mrf.mxu2 }
 0x415   :  { %v1350_v33 = vpop.f32.mrf.mxu0  ;;  %v1379_v9 = vpop.f32.mrf.mxu1 }
 0x416   :  { %v3190_v36 = vadd.f32 %v1408_v19, %v1350_v33  ;;  %v3192_v29 = vadd.f32 %v1437_v42, %v1379_v9  ;;  %v1644_v42 = vld [vmem:[#allocation7 + $0x318] sm:$0xff]  ;;  %v1802_v19 = vld [vmem:[#allocation7 + $0x480] sm:$0xff] }
 0x417   :  { %1716 = vmatpush.msra.mxu1 %v1644_v42  ;;  %1825 = vmatpush.msrb.mxu3 %v1802_v19  ;;  %v1801_v33 = vld [vmem:[#allocation7 + $0x478] sm:$0xff]  ;;  %v1798_v9 = vld [vmem:[#allocation7 + $0x460] sm:$0xff] }
 0x419   :  { %1717 = vmatpush.msra.mxu1 %v1642_v24  ;;  %1826 = vmatpush.msrb.mxu3 %v1800_v28  ;;  %v1939_v28 = vld [vmem:[%s3535_s8 + $0x10] sm:$0xff] }
 0x41b   :  { %1827 = vmatpush.msrb.mxu3 %v1798_v9  ;;  %v1886_v9 = vperm.slane %v1884_v3, 0 }
 0x41c   :  { %v1628_v13 = vpop.f32.mrf.mxu3 }
 0x41d   :  { %v1353_v12 = vpop.f32.mrf.mxu0  ;;  %v1382_v53 = vpop.f32.mrf.mxu1  ;;  %1689 = vmatmul.f32.vlgmr.msra.gmra.mxu0 %v1628_v13  ;;  %1828 = vmatpush.msrb.mxu3 %v1796_v15 }
 0x41e   :  { %v3194_v56 = vadd.f32 %v1411_v57, %v1353_v12  ;;  %v3196_v0 = vadd.f32 %v1440_v34, %v1382_v53  ;;  %v2402_v34 = vld [vmem:[%s3531_s4 + $0x90] sm:$0xff]  ;;  %v1790_v12 = vld [vmem:[#allocation7 + $0x420] sm:$0xff]  ;;  %v1791_v53 = vld [vmem:[#allocation7 + $0x428] sm:$0xff] }
 0x41f   :  { %1829 = vmatpush.msrb.mxu3 %v1794_v10  ;;  %v1792_v57 = vld [vmem:[#allocation7 + $0x430] sm:$0xff]  ;;  %v1937_v10 = vld [vmem:[%s3535_s8] sm:$0xff] }
 0x421   :  { %1830 = vmatpush.msrb.mxu3 %v1792_v57 }
 0x423   :  { %1831 = vmatpush.msrb.mxu3 %v1790_v12 }
 0x424   :  { %v1631_v44 = vpop.f32.mrf.mxu3 }
 0x425   :  { %v1356_v8 = vpop.f32.mrf.mxu0  ;;  %v1385_v32 = vpop.f32.mrf.mxu1  ;;  %1692 = vmatmul.f32.gmra.mxu0 %v1631_v44  ;;  %1832 = vmatpush.msrb.mxu3 %v1788_v27 }
 0x426   :  { %v3198_v25 = vadd.f32 %v1414_v5, %v1356_v8  ;;  %v3200_v48 = vadd.f32 %v1443_v45, %v1385_v32  ;;  %v1811_v45 = vld [vmem:[#allocation7 + $0x4c8] sm:$0xff] }
 0x427   :  { %1850 = vmatpush.msrb.mxu0 %v1811_v45  ;;  %v1787_v5 = vld [vmem:[#allocation7 + $0x408] sm:$0xff]  ;;  %1833 = vmatpush.msrb.mxu3 %v1786_v59 }
 0x429   :  { %1851 = vmatpush.msrb.mxu0 %v1809_v46  ;;  %v1941_v46 = vld [vmem:[%s3535_s8 + $0x20] sm:$0xff] }
 0x42b   :  { %1852 = vmatpush.msrb.mxu0 %v1807_v49 }
 0x42c   :  { %v1634_v11 = vpop.f32.mrf.mxu3 }
 0x42d   :  { %v3202_v4 = vpop.f32.mrf.mxu0  ;;  %1695 = vmatmul.f32.gmra.mxu0 %v1634_v11  ;;  %v1388_v2 = vpop.f32.mrf.mxu1 }
 0x42e   :  { %1853 = vmatpush.msrb.mxu0 %v1805_v60  ;;  %v1447_v20 = vadd.f32 %v3188_v37, %v1388_v2  ;;  %v1940_v60 = vld [vmem:[%s3535_s8 + $0x18] sm:$0xff] }
 0x430   :  { %1854 = vmatpush.msrb.mxu0 %v1803_v23  ;;  %v1887_v23 = vperm.slane %v1884_v3, 1  ;;  %v2445_v3 = vld [vmem:[%s3534_s7 + $0x18] sm:$0xff] }
 0x432   :  { %1855 = vmatpush.msrb.mxu0 %v1801_v33 }
 0x434   :  { %v1637_v61 = vpop.f32.mrf.mxu3  ;;  %1856 = vmatpush.msrb.mxu0 %v1799_v22 }
 0x435   :  { %v1483_v58 = vpop.f32.mrf.mxu0  ;;  %1698 = vmatmul.f32.gmra.mxu0 %v1637_v61 }
 0x436   :  { %1544 = vmatmul.f32.vlgmr.msrb.gmra.mxu1 %v1483_v58  ;;  %1573 = vmatmul.f32.vlgmr.msrb.gmra.mxu2 %v1483_v58  ;;  %v1952_v58 = vld [vmem:[%s3535_s8 + $0x78] sm:$0xff] }
 0x437   :  { %1857 = vmatpush.msrb.mxu0 %v1797_v50  ;;  %2015 = vmatpush.msra.mxu3 %v1952_v58 }
 0x439   :  { %1858 = vmatpush.msrb.mxu0 %v1795_v51 }
 0x43d   :  { %v1486_v26 = vpop.f32.mrf.mxu0 }
 0x43e   :  { %1547 = vmatmul.f32.gmra.mxu1 %v1486_v26  ;;  %1576 = vmatmul.f32.gmra.mxu2 %v1486_v26  ;;  %v1951_v26 = vld [vmem:[%s3535_s8 + $0x70] sm:$0xff] }
 0x43f   :  { %2016 = vmatpush.msra.mxu3 %v1951_v26 }
 0x445   :  { %v1489_v55 = vpop.f32.mrf.mxu0 }
 0x446   :  { %1550 = vmatmul.f32.gmra.mxu1 %v1489_v55  ;;  %1579 = vmatmul.f32.gmra.mxu2 %v1489_v55 }
 0x44d   :  { %v1492_v21 = vpop.f32.mrf.mxu0 }
 0x44e   :  { %1553 = vmatmul.f32.gmra.mxu1 %v1492_v21  ;;  %1582 = vmatmul.f32.gmra.mxu2 %v1492_v21 }
 0x456   :  { %1718 = vmatmul.f32.vlgmr.msra.gmra.mxu1 %v1628_v13  ;;  %2404 = vmatmul.msk.f32.vlgmr.msra.gmra.mxu2 %vm1180_vm1, %v2400_v30  ;;  %v1793_v13 = vld [vmem:[#allocation7 + $0x438] sm:$0xff]  ;;  %v1950_v30 = vld [vmem:[%s3535_s8 + $0x68] sm:$0xff] }
 0x457   :  { %1859 = vmatpush.msrb.mxu0 %v1793_v13  ;;  %2017 = vmatpush.msra.mxu3 %v1950_v30 }
 0x459   :  { %1860 = vmatpush.msrb.mxu0 %v1791_v53 }
 0x45b   :  { %1861 = vmatpush.msrb.mxu0 %v1789_v14 }
 0x45d   :  { %1862 = vmatpush.msrb.mxu0 %v1787_v5 }
 0x45e   :  { %1721 = vmatmul.f32.gmra.mxu1 %v1631_v44  ;;  %2405 = vmatmul.msk.f32.gmra.mxu2 %vm1180_vm1, %v2401_v63  ;;  %v1949_v63 = vld [vmem:[%s3535_s8 + $0x60] sm:$0xff] }
 0x45f   :  { %2018 = vmatpush.msra.mxu3 %v1949_v63 }
 0x466   :  { %1724 = vmatmul.f32.gmra.mxu1 %v1634_v11  ;;  %2406 = vmatmul.msk.f32.gmra.mxu2 %vm1180_vm1, %v2402_v34  ;;  %v1948_v34 = vld [vmem:[%s3535_s8 + $0x58] sm:$0xff] }
 0x467   :  { %2019 = vmatpush.msra.mxu3 %v1948_v34 }
 0x46e   :  { %1727 = vmatmul.f32.gmra.mxu1 %v1637_v61  ;;  %2407 = vmatmul.msk.f32.gmra.mxu2 %vm1180_vm1, %v2403_v35  ;;  %v1947_v35 = vld [vmem:[%s3535_s8 + $0x50] sm:$0xff] }
 0x46f   :  { %2020 = vmatpush.msra.mxu3 %v1947_v35 }
 0x471   :  { %2021 = vmatpush.msra.mxu3 %v1946_v38 }
 0x473   :  { %2022 = vmatpush.msra.mxu3 %v1945_v39 }
 0x475   :  { %2023 = vmatpush.msra.mxu3 %v1944_v17 }
 0x477   :  { %2024 = vmatpush.msra.mxu3 %v1943_v40 }
 0x479   :  { %2025 = vmatpush.msra.mxu3 %v1942_v41 }
 0x47b   :  { %2026 = vmatpush.msra.mxu3 %v1941_v46  ;;  %v2426_v46 = vld [vmem:[%s3535_s8 + $0xf8] sm:$0xff] }
 0x47c   :  { %1995 = vmatpush.msrb.mxu2 %v2426_v46  ;;  %v2469_v46 = vld [vmem:[%s3535_s8 + $0x220] sm:$0xff] }
 0x47d   :  { %2027 = vmatpush.msra.mxu3 %v1940_v60  ;;  %v2422_v60 = vld [vmem:[%s3535_s8 + $0xd8] sm:$0xff] }
 0x47f   :  { %2028 = vmatpush.msra.mxu3 %v1939_v28  ;;  %v2419_v28 = vld [vmem:[%s3535_s8 + $0xc0] sm:$0xff] }
 0x49a   :  { %v1690_v42 = vpop.f32.mrf.mxu0 }
 0x4a2   :  { %v1693_v24 = vpop.f32.mrf.mxu0 }
 0x4aa   :  { %v3240_v55 = vpop.f32.mrf.mxu0 }
 0x4b2   :  { %v3259_v6 = vpop.f32.mrf.mxu0 }
 0x4b9   :  { %v1574_v7 = vpop.f32.mrf.mxu2 }
 0x4ba   :  { %v1587_v44 = vadd.f32 %v1574_v7, %v3192_v29 }
 0x4c1   :  { %v1577_v8 = vpop.f32.mrf.mxu2 }
 0x4c2   :  { %v3224_v32 = vadd.f32 %v1577_v8, %v3196_v0 }
 0x4c9   :  { %v1580_v1 = vpop.f32.mrf.mxu2 }
 0x4ca   :  { %v3227_v16 = vadd.f32 %v1580_v1, %v3200_v48  ;;  %v1545_v48 = vpop.f32.mrf.mxu1 }
 0x4cb   :  { %v1586_v47 = vadd.f32 %v1545_v48, %v3190_v36  ;;  %v1938_v36 = vld [vmem:[%s3535_s8 + $0x8] sm:$0xff] }
 0x4cc   :  { %2029 = vmatpush.msra.mxu3 %v1938_v36  ;;  %v2415_v36 = vld [vmem:[%s3535_s8 + $0xa0] sm:$0xff] }
 0x4cd   :  { %v1731_v33 = vadd.f32 %v1690_v42, %v1586_v47  ;;  %v2425_v47 = vld [vmem:[%s3535_s8 + $0xf0] sm:$0xff] }
 0x4ce   :  { %2030 = vmatpush.msra.mxu3 %v1937_v10  ;;  %1996 = vmatpush.msrb.mxu2 %v2425_v47  ;;  %v2443_v10 = vld [vmem:[%s3535_s8 + $0x170] sm:$0xff]  ;;  %v2468_v47 = vld [vmem:[%s3535_s8 + $0x218] sm:$0xff] }
 0x4d1   :  { %v1583_v11 = vpop.f32.mrf.mxu2 }
 0x4d2   :  { %v3230_v31 = vadd.f32 %v1583_v11, %v1447_v20  ;;  %v1548_v61 = vpop.f32.mrf.mxu1 }
 0x4d3   :  { %v1588_v57 = vadd.f32 %v1548_v61, %v3194_v56  ;;  %v1418_v61 = vadd.f32 %v3220_v43, %v3202_v4 }
 0x4d5   :  { %v1733_v59 = vadd.f32 %v1693_v24, %v1588_v57  ;;  %v2442_v57 = vld [vmem:[%s3535_s8 + $0x168] sm:$0xff] }
 0x4d9   :  { %v1773_v52 = vpop.f32.mrf.mxu2 }
 0x4da   :  { %1834 = vmatmul.f32.vlgmr.msrb.gmra.mxu3 %v1773_v52  ;;  %1863 = vmatmul.f32.vlgmr.msrb.gmra.mxu0 %v1773_v52  ;;  %v3232_v37 = vpop.f32.mrf.mxu1 }
 0x4db   :  { %v1590_v20 = vadd.f32 %v3232_v37, %v3198_v25 }
 0x4e1   :  { %v1776_v29 = vpop.f32.mrf.mxu2 }
 0x4e2   :  { %1837 = vmatmul.f32.gmra.mxu3 %v1776_v29  ;;  %1866 = vmatmul.f32.gmra.mxu0 %v1776_v29  ;;  %v3242_v21 = vpop.f32.mrf.mxu1 }
 0x4e3   :  { %v1592_v30 = vadd.f32 %v3242_v21, %v1418_v61  ;;  %v2409_v21 = vld [vmem:[%s3534_s7 + $0x8] sm:$0xff] }
 0x4e4   :  { %v2452_v61 = vld [vmem:[%s3535_s8 + $0x1a8] sm:$0xff] }
 0x4e5   :  { %v1737_v35 = vadd.f32 %v3259_v6, %v1592_v30  ;;  %v2427_v6 = vld [vmem:[%s3534_s7 + $0x10] sm:$0xff]  ;;  %v2450_v30 = vld [vmem:[%s3535_s8 + $0x198] sm:$0xff] }
 0x4e9   :  { %v1779_v18 = vpop.f32.mrf.mxu2 }
 0x4ea   :  { %1840 = vmatmul.f32.gmra.mxu3 %v1779_v18  ;;  %1869 = vmatmul.f32.gmra.mxu0 %v1779_v18  ;;  %v1719_v62 = vpop.f32.mrf.mxu1  ;;  %v1735_v18 = vadd.f32 %v3240_v55, %v1590_v20  ;;  %v2436_v20 = vld [vmem:[%s3535_s8 + $0x138] sm:$0xff] }
 0x4eb   :  { %v1732_v49 = vadd.f32 %v1719_v62, %v1587_v44 }
 0x4f1   :  { %v1782_v0 = vpop.f32.mrf.mxu2 }
 0x4f2   :  { %1843 = vmatmul.f32.gmra.mxu3 %v1782_v0  ;;  %1872 = vmatmul.f32.gmra.mxu0 %v1782_v0  ;;  %v1722_v54 = vpop.f32.mrf.mxu1 }
 0x4f3   :  { %v1734_v13 = vadd.f32 %v1722_v54, %v3224_v32  ;;  %v2423_v54 = vld [vmem:[%s3535_s8 + $0xe0] sm:$0xff] }
 0x4fa   :  { %v1725_v7 = vpop.f32.mrf.mxu1 }
 0x4fb   :  { %v1736_v11 = vadd.f32 %v1725_v7, %v3227_v16  ;;  %v2461_v7 = vld [vmem:[%s3535_s8 + $0x1f0] sm:$0xff] }
 0x502   :  { %v1728_v48 = vpop.f32.mrf.mxu1 }
 0x503   :  { %v1738_v25 = vadd.f32 %v1728_v48, %v3230_v31  ;;  %v1912_v31 = vld [vmem:[%s3534_s7] sm:$0xff]  ;;  %v2453_v48 = vld [vmem:[%s3535_s8 + $0x1b0] sm:$0xff] }
 0x557   :  { %v1864_v45 = vpop.f32.mrf.mxu0 }
 0x558   :  { %v1877_v19 = vadd.f32 %v1864_v45, %v1732_v49  ;;  %v2424_v49 = vld [vmem:[%s3535_s8 + $0xe8] sm:$0xff] }
 0x559   :  { %1997 = vmatpush.msrb.mxu2 %v2424_v49  ;;  %v2467_v49 = vld [vmem:[%s3535_s8 + $0x210] sm:$0xff] }
 0x55a   :  { %v1891_v15 = vadd.f32 %v1887_v23, %v1877_v19  ;;  %v2421_v19 = vld [vmem:[%s3535_s8 + $0xd0] sm:$0xff] }
 0x55b   :  { %1998 = vmatpush.msrb.mxu2 %v2423_v54  ;;  %v2466_v54 = vld [vmem:[%s3535_s8 + $0x208] sm:$0xff] }
 0x55c   :  { %v1899_v53 = vmax.f32 %v1891_v15, 0.0  ;;  %v2444_v15 = vld [vmem:[%s3535_s8 + $0x178] sm:$0xff] }
 0x55d   :  { %v1835_v22 = vpop.f32.mrf.mxu3  ;;  %1999 = vmatpush.msrb.mxu2 %v2422_v60  ;;  %2077 = vmatpush.msra.mxu0 %v2444_v15  ;;  %v2465_v60 = vld [vmem:[%s3535_s8 + $0x200] sm:$0xff]  ;;  %v2239_v15 = vld [vmem:[#allocation8 + $0x48] sm:$0xff] }
 0x55e   :  { %v1876_v50 = vadd.f32 %v1835_v22, %v1731_v33  ;;  %v2418_v33 = vld [vmem:[%s3535_s8 + $0xb8] sm:$0xff]  ;;  %v2416_v22 = vld [vmem:[%s3535_s8 + $0xa8] sm:$0xff] }
 0x55f   :  { %v1867_v51 = vpop.f32.mrf.mxu0  ;;  %2000 = vmatpush.msrb.mxu2 %v2421_v19  ;;  %2078 = vmatpush.msra.mxu0 %v2443_v10  ;;  %v2245_v19 = vld [vmem:[#allocation8 + $0x78] sm:$0xff] }
 0x560   :  { %v1890_v12 = vadd.f32 %v1886_v9, %v1876_v50  ;;  %v1879_v14 = vadd.f32 %v1867_v51, %v1734_v13  ;;  %v2414_v50 = vld [vmem:[%s3535_s8 + $0x98] sm:$0xff]  ;;  %v2413_v51 = vld [vmem:[%s3535_s8 + $0x90] sm:$0xff]  ;;  %v2412_v13 = vld [vmem:[%s3535_s8 + $0x88] sm:$0xff] }
 0x561   :  { %2079 = vmatpush.msra.mxu0 %v2442_v57  ;;  %v2237_v10 = vld [vmem:[#allocation8 + $0x38] sm:$0xff]  ;;  %v2236_v57 = vld [vmem:[#allocation8 + $0x30] sm:$0xff] }
 0x562   :  { %v1898_v27 = vmax.f32 %v1890_v12, 0.0  ;;  %v1893_v8 = vadd.f32 %v1887_v23, %v1879_v14  ;;  %v2441_v12 = vld [vmem:[%s3535_s8 + $0x160] sm:$0xff]  ;;  %v2440_v14 = vld [vmem:[%s3535_s8 + $0x158] sm:$0xff] }
 0x563   :  { %2080 = vmatpush.msra.mxu0 %v2441_v12  ;;  %v2234_v12 = vld [vmem:[#allocation8 + $0x20] sm:$0xff] }
 0x564   :  { %v1906_v5 = vmax.f32 %v1898_v27, %v1899_v53  ;;  %v1901_v52 = vmax.f32 %v1893_v8, 0.0  ;;  %v2411_v53 = vld [vmem:[%s3535_s8 + $0x80] sm:$0xff]  ;;  %v2462_v27 = vld [vmem:[%s3535_s8 + $0x1f8] sm:$0xff] }
 0x565   :  { %v1838_v44 = vpop.f32.mrf.mxu3  ;;  %2081 = vmatpush.msra.mxu0 %v2440_v14  ;;  %v2459_v8 = vld [vmem:[%s3535_s8 + $0x1e0] sm:$0xff]  ;;  %v2231_v14 = vld [vmem:[#allocation8 + $0x8] sm:$0xff] }
 0x566   :  { %v1878_v1 = vadd.f32 %v1838_v44, %v1733_v59  ;;  %v2439_v59 = vld [vmem:[%s3535_s8 + $0x150] sm:$0xff]  ;;  %v2438_v44 = vld [vmem:[%s3535_s8 + $0x148] sm:$0xff] }
 0x567   :  { %v1870_v2 = vpop.f32.mrf.mxu0  ;;  %2082 = vmatpush.msra.mxu0 %v2439_v59  ;;  %v2286_v59 = vld [vmem:[#allocation10 + $0x78] sm:$0xff] }
 0x568   :  { %v1892_v56 = vadd.f32 %v1886_v9, %v1878_v1  ;;  %v1881_v29 = vadd.f32 %v1870_v2, %v1736_v11  ;;  %v2437_v1 = vld [vmem:[%s3535_s8 + $0x140] sm:$0xff]  ;;  %v2458_v2 = vld [vmem:[%s3535_s8 + $0x1d8] sm:$0xff]  ;;  %v2457_v11 = vld [vmem:[%s3535_s8 + $0x1d0] sm:$0xff] }
 0x569   :  { %2083 = vmatpush.msra.mxu0 %v2438_v44  ;;  %v2284_v44 = vld [vmem:[#allocation10 + $0x68] sm:$0xff] }
 0x56a   :  { %v1900_v32 = vmax.f32 %v1892_v56, 0.0  ;;  %v1895_v24 = vadd.f32 %v1887_v23, %v1881_v29  ;;  %v2435_v56 = vld [vmem:[%s3535_s8 + $0x130] sm:$0xff]  ;;  %v2455_v29 = vld [vmem:[%s3535_s8 + $0x1c0] sm:$0xff] }
 0x56b   :  { %2084 = vmatpush.msra.mxu0 %v2437_v1  ;;  %v2282_v1 = vld [vmem:[#allocation10 + $0x58] sm:$0xff] }
 0x56c   :  { %v1907_v0 = vmax.f32 %v1900_v32, %v1901_v52  ;;  %v1903_v37 = vmax.f32 %v1895_v24, 0.0  ;;  %v2456_v52 = vld [vmem:[%s3535_s8 + $0x1c8] sm:$0xff]  ;;  %v2431_v24 = vld [vmem:[%s3535_s8 + $0x110] sm:$0xff] }
 0x56d   :  { %v1841_v42 = vpop.f32.mrf.mxu3  ;;  %2085 = vmatpush.msra.mxu0 %v2436_v20  ;;  %v2434_v32 = vld [vmem:[%s3535_s8 + $0x128] sm:$0xff] }
 0x56e   :  { %v1880_v58 = vadd.f32 %v1841_v42, %v1735_v18  ;;  %v2433_v18 = vld [vmem:[%s3535_s8 + $0x120] sm:$0xff]  ;;  %v2432_v42 = vld [vmem:[%s3535_s8 + $0x118] sm:$0xff]  ;;  %v2280_v20 = vld [vmem:[#allocation10 + $0x48] sm:$0xff] }
 0x56f   :  { %v1873_v26 = vpop.f32.mrf.mxu0  ;;  %2086 = vmatpush.msra.mxu0 %v2435_v56 }
 0x570   :  { %v1894_v16 = vadd.f32 %v1886_v9, %v1880_v58  ;;  %v1883_v34 = vadd.f32 %v1873_v26, %v1738_v25  ;;  %v2430_v58 = vld [vmem:[%s3535_s8 + $0x108] sm:$0xff]  ;;  %v2451_v26 = vld [vmem:[%s3535_s8 + $0x1a0] sm:$0xff] }
 0x571   :  { %2087 = vmatpush.msra.mxu0 %v2434_v32  ;;  %v2429_v25 = vld [vmem:[%s3535_s8 + $0x100] sm:$0xff]  ;;  %v2277_v32 = vld [vmem:[#allocation10 + $0x30] sm:$0xff] }
 0x572   :  { %v1902_v63 = vmax.f32 %v1894_v16, 0.0  ;;  %v1897_v39 = vadd.f32 %v1887_v23, %v1883_v34  ;;  %v2420_v23 = vld [vmem:[%s3535_s8 + $0xc8] sm:$0xff]  ;;  %v2449_v16 = vld [vmem:[%s3535_s8 + $0x190] sm:$0xff]  ;;  %v2480_v34 = vld [vmem:[%s3535_s8 + $0x278] sm:$0xff] }
 0x573   :  { %2001 = vmatpush.msrb.mxu2 %v2420_v23  ;;  %2088 = vmatpush.msra.mxu0 %v2433_v18  ;;  %v2244_v23 = vld [vmem:[#allocation8 + $0x70] sm:$0xff]  ;;  %v2276_v18 = vld [vmem:[#allocation10 + $0x28] sm:$0xff] }
 0x574   :  { %v1908_v55 = vmax.f32 %v1902_v63, %v1903_v37  ;;  %v1905_v4 = vmax.f32 %v1897_v39, 0.0  ;;  %v2448_v37 = vld [vmem:[%s3535_s8 + $0x188] sm:$0xff]  ;;  %v2447_v63 = vld [vmem:[%s3535_s8 + $0x180] sm:$0xff] }
 0x575   :  { %v1844_v38 = vpop.f32.mrf.mxu3  ;;  %2002 = vmatpush.msrb.mxu2 %v2419_v28  ;;  %2089 = vmatpush.msra.mxu0 %v2432_v42  ;;  %v2243_v28 = vld [vmem:[#allocation8 + $0x68] sm:$0xff] }
 0x576   :  { %v1910_v62 = vmax.f32 %v1906_v5, %v1908_v55  ;;  %v1882_v17 = vadd.f32 %v1844_v38, %v1737_v35  ;;  %v2460_v5 = vld [vmem:[%s3535_s8 + $0x1e8] sm:$0xff]  ;;  %v2479_v35 = vld [vmem:[%s3535_s8 + $0x270] sm:$0xff]  ;;  %v2477_v38 = vld [vmem:[%s3535_s8 + $0x260] sm:$0xff] }
 0x577   :  { %2003 = vmatpush.msrb.mxu2 %v2418_v33  ;;  %2090 = vmatpush.msra.mxu0 %v2431_v24  ;;  %v2478_v55 = vld [vmem:[%s3535_s8 + $0x268] sm:$0xff]  ;;  %v2242_v33 = vld [vmem:[#allocation8 + $0x60] sm:$0xff]  ;;  %v2274_v24 = vld [vmem:[#allocation10 + $0x18] sm:$0xff] }
 0x578   :  { %v1896_v40 = vadd.f32 %v1886_v9, %v1882_v17  ;;  %v2417_v9 = vld [vmem:[%s3535_s8 + $0xb0] sm:$0xff] }
 0x579   :  { %2004 = vmatpush.msrb.mxu2 %v2417_v9  ;;  %2091 = vmatpush.msra.mxu0 %v2430_v58  ;;  %v2475_v17 = vld [vmem:[%s3535_s8 + $0x250] sm:$0xff]  ;;  %v2241_v9 = vld [vmem:[#allocation8 + $0x58] sm:$0xff] }
 0x57a   :  { %v1904_v43 = vmax.f32 %v1896_v40, 0.0  ;;  %v2474_v40 = vld [vmem:[%s3535_s8 + $0x248] sm:$0xff] }
 0x57b   :  { %2005 = vmatpush.msrb.mxu2 %v2416_v22  ;;  %2092 = vmatpush.msra.mxu0 %v2429_v25 }
 0x57c   :  { %v1909_v41 = vmax.f32 %v1904_v43, %v1905_v4  ;;  %v2473_v4 = vld [vmem:[%s3535_s8 + $0x240] sm:$0xff] }
 0x57d   :  { %2006 = vmatpush.msrb.mxu2 %v2415_v36  ;;  %v2463_v43 = vld [vmem:[%s3534_s7 + $0x20] sm:$0xff]  ;;  %v2240_v36 = vld [vmem:[#allocation8 + $0x50] sm:$0xff]  ;;  %2291 = vmatpush.msrb.mxu0 %v2286_v59 }
 0x57e   :  { %v1911_v45 = vmax.f32 %v1907_v0, %v1909_v41  ;;  %v2454_v0 = vld [vmem:[%s3535_s8 + $0x1b8] sm:$0xff] }
 0x57f   :  { %2007 = vmatpush.msrb.mxu2 %v2414_v50  ;;  %v2472_v41 = vld [vmem:[%s3535_s8 + $0x238] sm:$0xff]  ;;  %v2238_v50 = vld [vmem:[#allocation8 + $0x40] sm:$0xff] }
 0x580   :  { %1931 = vmatpush.msrb.mxu1 %v1911_v45  ;;  %2180 = vmatpush.msrb.mxu3 %v1911_v45 }
 0x581   :  { %2008 = vmatpush.msrb.mxu2 %v2413_v51 }
 0x582   :  { %1932 = vmatpush.msrb.mxu1 %v1910_v62  ;;  %2181 = vmatpush.msrb.mxu3 %v1910_v62 }
 0x583   :  { %2408 = vmatmul.msk.f32.vlgmr.msrb.gmra.mxu1 %vm1913_vm2, %v1912_v31  ;;  %2009 = vmatpush.msrb.mxu2 %v2412_v13  ;;  %v2471_v31 = vld [vmem:[%s3535_s8 + $0x230] sm:$0xff]  ;;  %v2235_v13 = vld [vmem:[#allocation8 + $0x28] sm:$0xff] }
 0x584   :  { %1972 = vmatpush.msra.mxu1 %v1911_v45 }
 0x585   :  { %2010 = vmatpush.msrb.mxu2 %v2411_v53  ;;  %v2233_v53 = vld [vmem:[#allocation8 + $0x18] sm:$0xff] }
 0x586   :  { %1973 = vmatpush.msra.mxu1 %v1910_v62 }
 0x587   :  { %2140 = vmatpush.msra.mxu2 %v2462_v27  ;;  %v2232_v27 = vld [vmem:[#allocation8 + $0x10] sm:$0xff] }
 0x588   :  { %2054 = vmatpush.msrb.mxu1 %v1911_v45 }
 0x589   :  { %2141 = vmatpush.msra.mxu2 %v2461_v7  ;;  %v2230_v7 = vld [vmem:[#allocation8] sm:$0xff] }
 0x58a   :  { %2055 = vmatpush.msrb.mxu1 %v1910_v62 }
 0x58b   :  { %2410 = vmatmul.msk.f32.vlgmr.msra.gmra.mxu1 %vm1913_vm2, %v2409_v21  ;;  %2142 = vmatpush.msra.mxu2 %v2460_v5  ;;  %v2470_v21 = vld [vmem:[%s3535_s8 + $0x228] sm:$0xff]  ;;  %v2285_v5 = vld [vmem:[#allocation10 + $0x70] sm:$0xff] }
 0x58c   :  { %2117 = vmatpush.msra.mxu1 %v1911_v45  ;;  %2292 = vmatpush.msrb.mxu0 %v2285_v5 }
 0x58d   :  { %2143 = vmatpush.msra.mxu2 %v2459_v8  ;;  %v2283_v8 = vld [vmem:[#allocation10 + $0x60] sm:$0xff] }
 0x58e   :  { %2118 = vmatpush.msra.mxu1 %v1910_v62  ;;  %v2476_v62 = vld [vmem:[%s3535_s8 + $0x258] sm:$0xff]  ;;  %2293 = vmatpush.msrb.mxu0 %v2284_v44 }
 0x58f   :  { %2144 = vmatpush.msra.mxu2 %v2458_v2  ;;  %v2281_v2 = vld [vmem:[#allocation10 + $0x50] sm:$0xff] }
 0x590   :  { %2294 = vmatpush.msrb.mxu0 %v2283_v8 }
 0x591   :  { %2145 = vmatpush.msra.mxu2 %v2457_v11  ;;  %v2279_v11 = vld [vmem:[#allocation10 + $0x40] sm:$0xff] }
 0x592   :  { %2295 = vmatpush.msrb.mxu0 %v2282_v1 }
 0x593   :  { %2428 = vmatmul.msk.f32.vlgmr.msrb.gmra.mxu1 %vm1913_vm2, %v2427_v6  ;;  %2146 = vmatpush.msra.mxu2 %v2456_v52  ;;  %v2278_v52 = vld [vmem:[#allocation10 + $0x38] sm:$0xff] }
 0x594   :  { %2203 = vmatpush.msrb.mxu1 %v2480_v34  ;;  %2296 = vmatpush.msrb.mxu0 %v2281_v2  ;;  %v2272_v34 = vld [vmem:[#allocation10 + $0x8] sm:$0xff] }
 0x595   :  { %2147 = vmatpush.msra.mxu2 %v2455_v29 }
 0x596   :  { %2204 = vmatpush.msrb.mxu1 %v2479_v35  ;;  %2297 = vmatpush.msrb.mxu0 %v2280_v20  ;;  %v2271_v35 = vld [vmem:[#allocation10] sm:$0xff] }
 0x597   :  { %2148 = vmatpush.msra.mxu2 %v2454_v0 }
 0x598   :  { %2205 = vmatpush.msrb.mxu1 %v2478_v55  ;;  %2298 = vmatpush.msrb.mxu0 %v2279_v11  ;;  %v2492_v55 = vld [vmem:[%s3538_s11] ss:$0 sm:$0xff] }
 0x599   :  { %2149 = vmatpush.msra.mxu2 %v2453_v48  ;;  %v2275_v48 = vld [vmem:[#allocation10 + $0x20] sm:$0xff] }
 0x59a   :  { %2206 = vmatpush.msrb.mxu1 %v2477_v38  ;;  %2299 = vmatpush.msrb.mxu0 %v2278_v52 }
 0x59b   :  { %2446 = vmatmul.msk.f32.vlgmr.msra.gmra.mxu1 %vm1913_vm2, %v2445_v3  ;;  %2150 = vmatpush.msra.mxu2 %v2452_v61 }
 0x59c   :  { %2207 = vmatpush.msrb.mxu1 %v2476_v62  ;;  %2300 = vmatpush.msrb.mxu0 %v2277_v32 }
 0x59d   :  { %2151 = vmatpush.msra.mxu2 %v2451_v26  ;;  %v2491_v26 = vld [vmem:[%s3536_s9] ss:$0 sm:$0xff] }
 0x59e   :  { %2208 = vmatpush.msrb.mxu1 %v2475_v17  ;;  %2301 = vmatpush.msrb.mxu0 %v2276_v18  ;;  %v2493_v17 = vld [vmem:[%s3540_s13] ss:$0 sm:$0xff] }
 0x59f   :  { %2152 = vmatpush.msra.mxu2 %v2450_v30 }
 0x5a0   :  { %2209 = vmatpush.msrb.mxu1 %v2474_v40  ;;  %2302 = vmatpush.msrb.mxu0 %v2275_v48 }
 0x5a1   :  { %2153 = vmatpush.msra.mxu2 %v2449_v16 }
 0x5a2   :  { %2210 = vmatpush.msrb.mxu1 %v2473_v4  ;;  %2303 = vmatpush.msrb.mxu0 %v2274_v24 }
 0x5a3   :  { %2154 = vmatpush.msra.mxu2 %v2448_v37 }
 0x5a4   :  { %2211 = vmatpush.msrb.mxu1 %v2472_v41 }
 0x5a5   :  { %2155 = vmatpush.msra.mxu2 %v2447_v63  ;;  %v2273_v63 = vld [vmem:[#allocation10 + $0x10] sm:$0xff] }
 0x5a6   :  { %2212 = vmatpush.msrb.mxu1 %v2471_v31  ;;  %2304 = vmatpush.msrb.mxu0 %v2273_v63 }
 0x5a8   :  { %2213 = vmatpush.msrb.mxu1 %v2470_v21  ;;  %2305 = vmatpush.msrb.mxu0 %v2272_v34 }
 0x5aa   :  { %2214 = vmatpush.msrb.mxu1 %v2469_v46  ;;  %2306 = vmatpush.msrb.mxu0 %v2271_v35 }
 0x5ac   :  { %2215 = vmatpush.msrb.mxu1 %v2468_v47 }
 0x5ae   :  { %2216 = vmatpush.msrb.mxu1 %v2467_v49 }
 0x5b0   :  { %2217 = vmatpush.msrb.mxu1 %v2466_v54 }
 0x5b2   :  { %2218 = vmatpush.msrb.mxu1 %v2465_v60 }
 0x600   :  { %v1934_v39 = vpop.f32.mrf.mxu1 }
 0x601   :  { %2031 = vmatmul.f32.vlgmr.msra.gmra.mxu3 %v1934_v39 }
 0x602   :  { %2250 = vmatpush.msra.mxu3 %v2245_v19 }
 0x604   :  { %2251 = vmatpush.msra.mxu3 %v2244_v23 }
 0x606   :  { %2252 = vmatpush.msra.mxu3 %v2243_v28 }
 0x608   :  { %v1975_v45 = vpop.f32.mrf.mxu1  ;;  %2253 = vmatpush.msra.mxu3 %v2242_v33 }
 0x609   :  { %2464 = vmatmul.msk.f32.vlgmr.msrb.gmra.mxu3 %vm1913_vm2, %v2463_v43  ;;  %2011 = vmatmul.f32.vlgmr.msrb.gmra.mxu2 %v1975_v45 }
 0x60a   :  { %2254 = vmatpush.msra.mxu3 %v2241_v9 }
 0x60c   :  { %2255 = vmatpush.msra.mxu3 %v2240_v36 }
 0x60e   :  { %2256 = vmatpush.msra.mxu3 %v2239_v15 }
 0x610   :  { %v2057_v6 = vpop.f32.mrf.mxu1  ;;  %2257 = vmatpush.msra.mxu3 %v2238_v50 }
 0x611   :  { %2093 = vmatmul.f32.vlgmr.msra.gmra.mxu0 %v2057_v6 }
 0x612   :  { %2258 = vmatpush.msra.mxu3 %v2237_v10 }
 0x614   :  { %2259 = vmatpush.msra.mxu3 %v2236_v57 }
 0x616   :  { %2260 = vmatpush.msra.mxu3 %v2235_v13 }
 0x618   :  { %v2120_v3 = vpop.f32.mrf.mxu1  ;;  %2261 = vmatpush.msra.mxu3 %v2234_v12 }
 0x619   :  { %2156 = vmatmul.f32.vlgmr.msra.gmra.mxu2 %v2120_v3 }
 0x61a   :  { %2262 = vmatpush.msra.mxu3 %v2233_v53 }
 0x61c   :  { %2263 = vmatpush.msra.mxu3 %v2232_v27 }
 0x61e   :  { %2264 = vmatpush.msra.mxu3 %v2231_v14 }
 0x620   :  { %2265 = vmatpush.msra.mxu3 %v2230_v7 }
 0x684   :  { %v2032_v22 = vpop.f32.mrf.mxu3 }
 0x68c   :  { %v2183_v51 = vpop.f32.mrf.mxu3  ;;  %v2012_v56 = vpop.f32.mrf.mxu2 }
 0x68d   :  { %2219 = vmatmul.f32.vlgmr.msrb.gmra.mxu1 %v2183_v51  ;;  %v2033_v29 = vadd.f32 %v2032_v22, %v2012_v56 }
 0x68e   :  { %v2094_v0 = vpop.f32.mrf.mxu0 }
 0x68f   :  { %v2097_v61 = vadd.f32 %v2094_v0, %v2033_v29 }
 0x69c   :  { %v2157_v42 = vpop.f32.mrf.mxu2 }
 0x69d   :  { %v2160_v58 = vadd.f32 %v2157_v42, %v2097_v61 }
 0x70a   :  { %v2220_v30 = vpop.f32.mrf.mxu1 }
 0x70b   :  { %v2223_v25 = vadd.f32 %v2220_v30, %v2160_v58 }
 0x70d   :  { %v2228_v16 = vadd.f32 %v2491_v26, %v2223_v25 }
 0x70f   :  { %v2229_v37 = vmax.f32 %v2228_v16, 0.0 }
 0x711   :  { %2266 = vmatmul.f32.vlgmr.msra.gmra.mxu3 %v2229_v37 }
 0x794   :  { %v2267_v38 = vpop.f32.mrf.mxu3 }
 0x795   :  { %v2268_v62 = vadd.f32 %v2492_v55, %v2267_v38 }
 0x797   :  { %v2270_v39 = vmax.f32 %v2268_v62, 0.0 }
 0x799   :  { %2307 = vmatmul.f32.vlgmr.msrb.gmra.mxu0 %v2270_v39 }
 0x816   :  { %v2308_v40 = vpop.f32.mrf.mxu0 }
 0x817   :  { %v2309_v4 = vadd.f32 %v2493_v17, %v2308_v40 }
 0x819   :  { %2312 = vst.msk [vmem:[#allocation11] sm:$0x3] %vm2311_vm3, %v2309_v4 }
 0x81a   :  { %2323 = dma.vmem_to_hbm [thread:$0]  %s2319_s17, 32, %s2321_s0, [#allocation4]  }
 0x81b   :  { %2644 = dma.done.wait [#allocation4], 32  }
 0x81c   :  { %2645 = vsyncadd [#allocation4], 4294967264 }
 0x81d   :  { %2328 = vsyncpa [#allocation3], 1 }
 0x81e   :  { %2329 = vsyncpa [#allocation6], 1 }
 0x81f   :  { %2330 = vsyncpa [#allocation9], 1 }
 0x820   :  { %2331 = vsyncpa [#allocation4], 1 }

</bundles_post_ra>
